<compile_context>
chip_gen: v7x
topology: tpu7x:2x2x1
jax: 0.10.0
libtpu: 0.0.40
codegen_flags: <defaults>
</compile_context>

<pallas_src>
import numpy as np
import jax
import jax.numpy as jnp
from jax.experimental import pallas as pl
from jax.experimental.pallas import tpu as pltpu  # noqa: F401  (kept for TODO path)

# ------------------------- synthetic small config -------------------------
BATCH    = 2
SEQ_LEN  = 8                    # input_embeds sequence length
N_EMBD   = 32                   # config.n_embd
NUM_Q    = 4                    # config.num_q (learned query tokens)
DIM_Z    = 16                   # config.dim_z
N_HEAD   = 4
HEAD_D   = N_EMBD // N_HEAD     # 8
ROT_DIM  = 4                    # config.rotary_dim (per head, even, <= HEAD_D)
N_LAYER  = 2                    # config.latent_aggregator_layers
N_INNER  = 4 * N_EMBD           # GPT-J MLP inner dim
LN_EPS   = 1e-5                 # config.layer_norm_epsilon
T_TOTAL  = SEQ_LEN + NUM_Q      # 12
D2       = 2 * DIM_Z // NUM_Q   # h2z output features per query token
NEG_BIAS = -1e9                 # additive mask value (== masked-out after softmax)


def _layernorm(x, w, b):
    mu = jnp.mean(x, axis=-1, keepdims=True)
    var = jnp.mean((x - mu) ** 2, axis=-1, keepdims=True)
    return (x - mu) * jax.lax.rsqrt(var + LN_EPS) * w + b


def _gelu_new(x):
    # GPT-J "gelu_new" (tanh approximation) -> EUP tanh slot.
    return 0.5 * x * (1.0 + jnp.tanh(np.sqrt(2.0 / np.pi) * (x + 0.044715 * x * x * x)))


# ------------------------------- the kernel -------------------------------
def _latent_aggregator_kernel(x0_ref, bias_ref, cos_ref, sin_ref, rotm_ref,
                              lnin_w_ref, lnin_b_ref,
                              ln1_w_ref, ln1_b_ref,
                              wqkv_ref, wout_ref,
                              fcin_w_ref, fcin_b_ref,
                              fcout_w_ref, fcout_b_ref,
                              lnout_w_ref, lnout_b_ref,
                              h2z_w_ref, h2z_b_ref,
                              lat_ref):
    # grid-invariant tables loaded once
    cos = cos_ref[...]          # [T, E]
    sin = sin_ref[...]          # [T, E]
    rotm = rotm_ref[...]        # [E, E] signed permutation (rotate_every_two)
    inv_scale = 1.0 / float(np.sqrt(HEAD_D))

    for b in range(BATCH):                                     # static, B=2
        bias_b = bias_ref[b]                                   # [T, T] additive mask
        # ln_input over concat([input_embeds, queries])
        h = _layernorm(x0_ref[b], lnin_w_ref[...], lnin_b_ref[...])   # [T, E]

        for l in range(N_LAYER):                               # static layer loop
            x = _layernorm(h, ln1_w_ref[l], ln1_b_ref[l])      # GPTJBlock.ln_1

            # fused q/k/v projection (bias-free in GPT-J)
            qkv = jnp.dot(x, wqkv_ref[l], preferred_element_type=jnp.float32)  # [T, 3E]
            q = qkv[:, :N_EMBD]
            k = qkv[:, N_EMBD:2 * N_EMBD]
            v = qkv[:, 2 * N_EMBD:]

            # rotary: x*cos + rotate_every_two(x)*sin (pass-through lanes cos=1/sin=0)
            q = q * cos + jnp.dot(q, rotm, preferred_element_type=jnp.float32) * sin
            k = k * cos + jnp.dot(k, rotm, preferred_element_type=jnp.float32) * sin

            # multi-head attention; out_proj folded per-head (== concat(heads) @ Wout)
            wout_l = wout_ref[l]                               # [E, E]
            attn = None
            for hd in range(N_HEAD):
                c0 = hd * HEAD_D
                qh = q[:, c0:c0 + HEAD_D]                      # [T, Hd]
                kh = k[:, c0:c0 + HEAD_D]
                vh = v[:, c0:c0 + HEAD_D]
                s = jnp.einsum('td,sd->ts', qh, kh,
                               preferred_element_type=jnp.float32) * inv_scale + bias_b
                s = s - jnp.max(s, axis=-1, keepdims=True)
                p = jnp.exp(s)
                p = p / jnp.sum(p, axis=-1, keepdims=True)
                oh = jnp.dot(p, vh, preferred_element_type=jnp.float32)        # [T, Hd]
                contrib = jnp.dot(oh, wout_l[c0:c0 + HEAD_D, :],
                                  preferred_element_type=jnp.float32)          # [T, E]
                attn = contrib if attn is None else attn + contrib

            # parallel GPT-J MLP branch (takes ln_1 output)
            m = jnp.dot(x, fcin_w_ref[l], preferred_element_type=jnp.float32) + fcin_b_ref[l]
            m = _gelu_new(m)
            m = jnp.dot(m, fcout_w_ref[l], preferred_element_type=jnp.float32) + fcout_b_ref[l]

            h = attn + m + h                                   # residual (parallel attn+mlp)

        # ln_output + h2z on the trailing NUM_Q query rows
        hq = _layernorm(h[SEQ_LEN:, :], lnout_w_ref[...], lnout_b_ref[...])     # [Q, E]
        lat = jnp.dot(hq, h2z_w_ref[...], preferred_element_type=jnp.float32) + h2z_b_ref[...]
        lat_ref[b] = lat.astype(lat_ref.dtype)                 # [Q, D2]


# ------------------------------ host wrapper -------------------------------
def latent_aggregator_forward(input_embeds, params, input_embeds_mask=None,
                              fix_entropy=False):
    B, S, E = input_embeds.shape
    assert (B, S, E) == (BATCH, SEQ_LEN, N_EMBD)

    if input_embeds_mask is None:
        input_embeds_mask = jnp.ones((B, S), jnp.float32)
    full_mask = jnp.concatenate(
        [input_embeds_mask.astype(jnp.float32), jnp.ones((B, NUM_Q), jnp.float32)], axis=1)
    causal = jnp.tril(jnp.ones((T_TOTAL, T_TOTAL), jnp.float32))
    allowed = causal[None, :, :] * full_mask[:, None, :]
    attn_bias = (1.0 - allowed) * NEG_BIAS                     # [B, T, T] additive

    # concat learned queries after the input embeddings (layout-only glue)
    x0 = jnp.concatenate(
        [input_embeds, jnp.broadcast_to(params["queries"], (B, NUM_Q, E))], axis=1)

    lat = pl.pallas_call(
        _latent_aggregator_kernel,
        out_shape=jax.ShapeDtypeStruct((BATCH, NUM_Q, D2), jnp.float32),
    )(x0, attn_bias, params["cos"], params["sin"], params["rotm"],
      params["lnin_w"], params["lnin_b"],
      params["ln1_w"], params["ln1_b"],
      params["wqkv"], params["wout"],
      params["fcin_w"], params["fcin_b"],
      params["fcout_w"], params["fcout_b"],
      params["lnout_w"], params["lnout_b"],
      params["h2z_w"], params["h2z_b"])

    half = DIM_Z // NUM_Q
    mean = lat[:, :, :half].reshape(B, DIM_Z)
    logvar = lat[:, :, half:].reshape(B, DIM_Z)
    if fix_entropy:
        logvar = logvar - logvar.sum(axis=-1, keepdims=True) / DIM_Z
    return mean, logvar


# -------------------------- parameters / tables ----------------------------
def _rotary_tables():
    pos = np.arange(T_TOTAL, dtype=np.float32)
    inv_freq = 1.0 / (10000.0 ** (np.arange(0, ROT_DIM, 2, dtype=np.float32) / ROT_DIM))
    ang = pos[:, None] * inv_freq[None, :]                               # [T, rd/2]
    sin = np.repeat(np.sin(ang), 2, axis=-1).astype(np.float32)          # [T, rd]
    cos = np.repeat(np.cos(ang), 2, axis=-1).astype(np.float32)
    pad = HEAD_D - ROT_DIM
    cos_h = np.concatenate([cos, np.ones((T_TOTAL, pad), np.float32)], axis=-1)
    sin_h = np.concatenate([sin, np.zeros((T_TOTAL, pad), np.float32)], axis=-1)
    cos_tab = np.tile(cos_h, (1, N_HEAD))                                # [T, E]
    sin_tab = np.tile(sin_h, (1, N_HEAD))
    # rotate_every_two as a signed permutation on the flat (head-major) embedding:
    #   out[:, 2i] = -x[:, 2i+1],  out[:, 2i+1] = x[:, 2i]   (rotary lanes only)
    rotm = np.zeros((N_EMBD, N_EMBD), np.float32)
    for h in range(N_HEAD):
        for w in range(0, ROT_DIM, 2):
            c0 = h * HEAD_D + w
            rotm[c0 + 1, c0] = -1.0
            rotm[c0, c0 + 1] = 1.0
    return jnp.asarray(cos_tab), jnp.asarray(sin_tab), jnp.asarray(rotm)


def init_params(key):
    ks = jax.random.split(key, 13)
    s = 0.05
    init_range = 0.02
    params = dict(
        queries=init_range * jax.random.normal(ks[0], (1, NUM_Q, N_EMBD), jnp.float32),
        lnin_w=1.0 + 0.1 * jax.random.normal(ks[1], (1, N_EMBD), jnp.float32),
        lnin_b=0.1 * jax.random.normal(ks[2], (1, N_EMBD), jnp.float32),
        ln1_w=1.0 + 0.1 * jax.random.normal(ks[3], (N_LAYER, 1, N_EMBD), jnp.float32),
        ln1_b=0.1 * jax.random.normal(ks[4], (N_LAYER, 1, N_EMBD), jnp.float32),
        wqkv=s * jax.random.normal(ks[5], (N_LAYER, N_EMBD, 3 * N_EMBD), jnp.float32),
        wout=s * jax.random.normal(ks[6], (N_LAYER, N_EMBD, N_EMBD), jnp.float32),
        fcin_w=s * jax.random.normal(ks[7], (N_LAYER, N_EMBD, N_INNER), jnp.float32),
        fcin_b=s * jax.random.normal(ks[8], (N_LAYER, 1, N_INNER), jnp.float32),
        fcout_w=s * jax.random.normal(ks[9], (N_LAYER, N_INNER, N_EMBD), jnp.float32),
        fcout_b=s * jax.random.normal(ks[10], (N_LAYER, 1, N_EMBD), jnp.float32),
        lnout_w=jnp.ones((1, N_EMBD), jnp.float32),     # module inits ln_output.weight = 1
        lnout_b=jnp.zeros((1, N_EMBD), jnp.float32),    # module inits ln_output.bias = 0
        h2z_w=s * jax.random.normal(ks[11], (N_EMBD, D2), jnp.float32),
        h2z_b=s * jax.random.normal(ks[12], (1, D2), jnp.float32),
    )
    cos_tab, sin_tab, rotm = _rotary_tables()
    params.update(cos=cos_tab, sin=sin_tab, rotm=rotm)
    return params


# -------------------------- pure-JAX reference ------------------------------
def reference_forward(input_embeds, params, input_embeds_mask=None, fix_entropy=False):
    B, S, E = input_embeds.shape
    if input_embeds_mask is None:
        input_embeds_mask = jnp.ones((B, S), jnp.float32)
    full_mask = jnp.concatenate(
        [input_embeds_mask.astype(jnp.float32), jnp.ones((B, NUM_Q), jnp.float32)], axis=1)
    causal = jnp.tril(jnp.ones((T_TOTAL, T_TOTAL), jnp.float32))
    allowed = causal[None] * full_mask[:, None, :]
    bias = ((1.0 - allowed) * NEG_BIAS)[:, None, :, :]          # [B, 1, T, T]

    def ln(x, w, b):
        mu = x.mean(-1, keepdims=True)
        var = ((x - mu) ** 2).mean(-1, keepdims=True)
        return (x - mu) * jax.lax.rsqrt(var + LN_EPS) * w + b

    cos, sin, rotm = params["cos"], params["sin"], params["rotm"]
    h = jnp.concatenate(
        [input_embeds, jnp.broadcast_to(params["queries"], (B, NUM_Q, E))], axis=1)
    h = ln(h, params["lnin_w"][0], params["lnin_b"][0])
    for l in range(N_LAYER):
        x = ln(h, params["ln1_w"][l, 0], params["ln1_b"][l, 0])
        qkv = x @ params["wqkv"][l]
        q, k, v = qkv[..., :E], qkv[..., E:2 * E], qkv[..., 2 * E:]
        q = q * cos + (q @ rotm) * sin
        k = k * cos + (k @ rotm) * sin
        qh = q.reshape(B, T_TOTAL, N_HEAD, HEAD_D).transpose(0, 2, 1, 3)
        kh = k.reshape(B, T_TOTAL, N_HEAD, HEAD_D).transpose(0, 2, 1, 3)
        vh = v.reshape(B, T_TOTAL, N_HEAD, HEAD_D).transpose(0, 2, 1, 3)
        s_ = jnp.einsum('bhtd,bhsd->bhts', qh, kh) / np.sqrt(HEAD_D) + bias
        p = jax.nn.softmax(s_, axis=-1)
        o = jnp.einsum('bhts,bhsd->bhtd', p, vh).transpose(0, 2, 1, 3).reshape(B, T_TOTAL, E)
        attn = o @ params["wout"][l]
        m = x @ params["fcin_w"][l] + params["fcin_b"][l, 0]
        m = 0.5 * m * (1.0 + jnp.tanh(np.sqrt(2.0 / np.pi) * (m + 0.044715 * m ** 3)))
        m = m @ params["fcout_w"][l] + params["fcout_b"][l, 0]
        h = attn + m + h
    hq = ln(h[:, -NUM_Q:, :], params["lnout_w"][0], params["lnout_b"][0])
    lat = hq @ params["h2z_w"] + params["h2z_b"][0]
    half = DIM_Z // NUM_Q
    mean = lat[:, :, :half].reshape(B, DIM_Z)
    logvar = lat[:, :, half:].reshape(B, DIM_Z)
    if fix_entropy:
        logvar = logvar - logvar.sum(-1, keepdims=True) / DIM_Z
    return mean, logvar


if __name__ == "__main__":
    root = jax.random.PRNGKey(0)
    k_x, k_par = jax.random.split(root, 2)
    input_embeds = jax.random.normal(k_x, (BATCH, SEQ_LEN, N_EMBD), jnp.float32)
    params = init_params(k_par)

    mean, logvar = latent_aggregator_forward(input_embeds, params)
    jax.block_until_ready((mean, logvar))

    mean_r, logvar_r = reference_forward(input_embeds, params)
    assert mean.shape == (BATCH, DIM_Z) and logvar.shape == (BATCH, DIM_Z)
    np.testing.assert_allclose(np.asarray(mean), np.asarray(mean_r), atol=2e-4, rtol=2e-4)
    np.testing.assert_allclose(np.asarray(logvar), np.asarray(logvar_r), atol=2e-4, rtol=2e-4)

    print("KERNEL_OK")
</pallas_src>

<mosaic_0001>
module attributes {stable_mosaic.version = 11 : i64} {
  func.func @_latent_aggregator_kernel(%arg0: memref<2x12x32xf32, #tpu.memory_space<vmem>>, %arg1: memref<2x12x12xf32, #tpu.memory_space<vmem>>, %arg2: memref<12x32xf32, #tpu.memory_space<vmem>>, %arg3: memref<12x32xf32, #tpu.memory_space<vmem>>, %arg4: memref<32x32xf32, #tpu.memory_space<vmem>>, %arg5: memref<1x32xf32, #tpu.memory_space<vmem>>, %arg6: memref<1x32xf32, #tpu.memory_space<vmem>>, %arg7: memref<2x1x32xf32, #tpu.memory_space<vmem>>, %arg8: memref<2x1x32xf32, #tpu.memory_space<vmem>>, %arg9: memref<2x32x96xf32, #tpu.memory_space<vmem>>, %arg10: memref<2x32x32xf32, #tpu.memory_space<vmem>>, %arg11: memref<2x32x128xf32, #tpu.memory_space<vmem>>, %arg12: memref<2x1x128xf32, #tpu.memory_space<vmem>>, %arg13: memref<2x128x32xf32, #tpu.memory_space<vmem>>, %arg14: memref<2x1x32xf32, #tpu.memory_space<vmem>>, %arg15: memref<1x32xf32, #tpu.memory_space<vmem>>, %arg16: memref<1x32xf32, #tpu.memory_space<vmem>>, %arg17: memref<32x8xf32, #tpu.memory_space<vmem>>, %arg18: memref<1x8xf32, #tpu.memory_space<vmem>>, %arg19: memref<2x4x8xf32, #tpu.memory_space<vmem>>) attributes {dimension_semantics = [], scalar_prefetch = 0 : i64, scratch_operands = 0 : i64, tpu.core_type = #tpu.core_type<tc>} {
    %c0 = arith.constant 0 : index
    %c0_0 = arith.constant 0 : index
    %0 = vector.load %arg2[%c0, %c0_0] : memref<12x32xf32, #tpu.memory_space<vmem>>, vector<12x32xf32>
    %c0_1 = arith.constant 0 : index
    %c0_2 = arith.constant 0 : index
    %1 = vector.load %arg3[%c0_1, %c0_2] : memref<12x32xf32, #tpu.memory_space<vmem>>, vector<12x32xf32>
    %c0_3 = arith.constant 0 : index
    %c0_4 = arith.constant 0 : index
    %2 = vector.load %arg4[%c0_3, %c0_4] : memref<32x32xf32, #tpu.memory_space<vmem>>, vector<32x32xf32>
    %c0_5 = arith.constant 0 : index
    %c0_6 = arith.constant 0 : index
    %c0_7 = arith.constant 0 : index
    %3 = vector.load %arg1[%c0_5, %c0_6, %c0_7] : memref<2x12x12xf32, #tpu.memory_space<vmem>>, vector<1x12x12xf32>
    %4 = vector.shape_cast %3 : vector<1x12x12xf32> to vector<12x12xf32>
    %c0_8 = arith.constant 0 : index
    %c0_9 = arith.constant 0 : index
    %c0_10 = arith.constant 0 : index
    %5 = vector.load %arg0[%c0_8, %c0_9, %c0_10] : memref<2x12x32xf32, #tpu.memory_space<vmem>>, vector<1x12x32xf32>
    %6 = vector.shape_cast %5 : vector<1x12x32xf32> to vector<12x32xf32>
    %c0_11 = arith.constant 0 : index
    %c0_12 = arith.constant 0 : index
    %7 = vector.load %arg5[%c0_11, %c0_12] : memref<1x32xf32, #tpu.memory_space<vmem>>, vector<1x32xf32>
    %c0_13 = arith.constant 0 : index
    %c0_14 = arith.constant 0 : index
    %8 = vector.load %arg6[%c0_13, %c0_14] : memref<1x32xf32, #tpu.memory_space<vmem>>, vector<1x32xf32>
    %cst = arith.constant dense<0.000000e+00> : vector<12xf32>
    %9 = vector.multi_reduction <add>, %6, %cst [1] : vector<12x32xf32> to vector<12xf32>
    %10 = vector.shape_cast %9 : vector<12xf32> to vector<12x1xf32>
    %cst_15 = arith.constant 3.200000e+01 : f32
    %11 = vector.broadcast %cst_15 : f32 to vector<12x1xf32>
    %12 = arith.divf %10, %11 : vector<12x1xf32>
    %13 = vector.broadcast %12 : vector<12x1xf32> to vector<12x32xf32>
    %14 = arith.subf %6, %13 : vector<12x32xf32>
    %15 = arith.mulf %14, %14 : vector<12x32xf32>
    %cst_16 = arith.constant dense<0.000000e+00> : vector<12xf32>
    %16 = vector.multi_reduction <add>, %15, %cst_16 [1] : vector<12x32xf32> to vector<12xf32>
    %17 = vector.shape_cast %16 : vector<12xf32> to vector<12x1xf32>
    %cst_17 = arith.constant 3.200000e+01 : f32
    %18 = vector.broadcast %cst_17 : f32 to vector<12x1xf32>
    %19 = arith.divf %17, %18 : vector<12x1xf32>
    %20 = vector.broadcast %12 : vector<12x1xf32> to vector<12x32xf32>
    %21 = arith.subf %6, %20 : vector<12x32xf32>
    %cst_18 = arith.constant 9.99999974E-6 : f32
    %22 = vector.broadcast %cst_18 : f32 to vector<12x1xf32>
    %23 = arith.addf %19, %22 : vector<12x1xf32>
    %24 = math.rsqrt %23 : vector<12x1xf32>
    %25 = vector.broadcast %24 : vector<12x1xf32> to vector<12x32xf32>
    %26 = arith.mulf %21, %25 : vector<12x32xf32>
    %27 = vector.broadcast %7 : vector<1x32xf32> to vector<12x32xf32>
    %28 = arith.mulf %26, %27 : vector<12x32xf32>
    %29 = vector.broadcast %8 : vector<1x32xf32> to vector<12x32xf32>
    %30 = arith.addf %28, %29 : vector<12x32xf32>
    %c0_19 = arith.constant 0 : index
    %c0_20 = arith.constant 0 : index
    %c0_21 = arith.constant 0 : index
    %31 = vector.load %arg7[%c0_19, %c0_20, %c0_21] : memref<2x1x32xf32, #tpu.memory_space<vmem>>, vector<1x1x32xf32>
    %32 = vector.shape_cast %31 : vector<1x1x32xf32> to vector<1x32xf32>
    %c0_22 = arith.constant 0 : index
    %c0_23 = arith.constant 0 : index
    %c0_24 = arith.constant 0 : index
    %33 = vector.load %arg8[%c0_22, %c0_23, %c0_24] : memref<2x1x32xf32, #tpu.memory_space<vmem>>, vector<1x1x32xf32>
    %34 = vector.shape_cast %33 : vector<1x1x32xf32> to vector<1x32xf32>
    %cst_25 = arith.constant dense<0.000000e+00> : vector<12xf32>
    %35 = vector.multi_reduction <add>, %30, %cst_25 [1] : vector<12x32xf32> to vector<12xf32>
    %36 = vector.shape_cast %35 : vector<12xf32> to vector<12x1xf32>
    %cst_26 = arith.constant 3.200000e+01 : f32
    %37 = vector.broadcast %cst_26 : f32 to vector<12x1xf32>
    %38 = arith.divf %36, %37 : vector<12x1xf32>
    %39 = vector.broadcast %38 : vector<12x1xf32> to vector<12x32xf32>
    %40 = arith.subf %30, %39 : vector<12x32xf32>
    %41 = arith.mulf %40, %40 : vector<12x32xf32>
    %cst_27 = arith.constant dense<0.000000e+00> : vector<12xf32>
    %42 = vector.multi_reduction <add>, %41, %cst_27 [1] : vector<12x32xf32> to vector<12xf32>
    %43 = vector.shape_cast %42 : vector<12xf32> to vector<12x1xf32>
    %cst_28 = arith.constant 3.200000e+01 : f32
    %44 = vector.broadcast %cst_28 : f32 to vector<12x1xf32>
    %45 = arith.divf %43, %44 : vector<12x1xf32>
    %46 = vector.broadcast %38 : vector<12x1xf32> to vector<12x32xf32>
    %47 = arith.subf %30, %46 : vector<12x32xf32>
    %cst_29 = arith.constant 9.99999974E-6 : f32
    %48 = vector.broadcast %cst_29 : f32 to vector<12x1xf32>
    %49 = arith.addf %45, %48 : vector<12x1xf32>
    %50 = math.rsqrt %49 : vector<12x1xf32>
    %51 = vector.broadcast %50 : vector<12x1xf32> to vector<12x32xf32>
    %52 = arith.mulf %47, %51 : vector<12x32xf32>
    %53 = vector.broadcast %32 : vector<1x32xf32> to vector<12x32xf32>
    %54 = arith.mulf %52, %53 : vector<12x32xf32>
    %55 = vector.broadcast %34 : vector<1x32xf32> to vector<12x32xf32>
    %56 = arith.addf %54, %55 : vector<12x32xf32>
    %c0_30 = arith.constant 0 : index
    %c0_31 = arith.constant 0 : index
    %c0_32 = arith.constant 0 : index
    %57 = vector.load %arg9[%c0_30, %c0_31, %c0_32] : memref<2x32x96xf32, #tpu.memory_space<vmem>>, vector<1x32x96xf32>
    %58 = vector.shape_cast %57 : vector<1x32x96xf32> to vector<32x96xf32>
    %cst_33 = arith.constant dense<0.000000e+00> : vector<12x96xf32>
    %59 = tpu.matmul %56, %58, %cst_33 {dimension_numbers = #tpu.dot_dimension_numbers<[1], [0], [0], [1], [0, 0, 1, 1], [], []>} : vector<12x32xf32>, vector<32x96xf32>, vector<12x96xf32> -> vector<12x96xf32>
    %60 = vector.extract_strided_slice %59 {offsets = [0, 0], sizes = [12, 32], strides = [1, 1]} : vector<12x96xf32> to vector<12x32xf32>
    %61 = vector.extract_strided_slice %59 {offsets = [0, 32], sizes = [12, 32], strides = [1, 1]} : vector<12x96xf32> to vector<12x32xf32>
    %62 = vector.extract_strided_slice %59 {offsets = [0, 64], sizes = [12, 32], strides = [1, 1]} : vector<12x96xf32> to vector<12x32xf32>
    %63 = arith.mulf %60, %0 : vector<12x32xf32>
    %cst_34 = arith.constant dense<0.000000e+00> : vector<12x32xf32>
    %64 = tpu.matmul %60, %2, %cst_34 {dimension_numbers = #tpu.dot_dimension_numbers<[1], [0], [0], [1], [0, 0, 1, 1], [], []>} : vector<12x32xf32>, vector<32x32xf32>, vector<12x32xf32> -> vector<12x32xf32>
    %65 = arith.mulf %64, %1 : vector<12x32xf32>
    %66 = arith.addf %63, %65 : vector<12x32xf32>
    %67 = arith.mulf %61, %0 : vector<12x32xf32>
    %cst_35 = arith.constant dense<0.000000e+00> : vector<12x32xf32>
    %68 = tpu.matmul %61, %2, %cst_35 {dimension_numbers = #tpu.dot_dimension_numbers<[1], [0], [0], [1], [0, 0, 1, 1], [], []>} : vector<12x32xf32>, vector<32x32xf32>, vector<12x32xf32> -> vector<12x32xf32>
    %69 = arith.mulf %68, %1 : vector<12x32xf32>
    %70 = arith.addf %67, %69 : vector<12x32xf32>
    %c0_36 = arith.constant 0 : index
    %c0_37 = arith.constant 0 : index
    %c0_38 = arith.constant 0 : index
    %71 = vector.load %arg10[%c0_36, %c0_37, %c0_38] : memref<2x32x32xf32, #tpu.memory_space<vmem>>, vector<1x32x32xf32>
    %72 = vector.shape_cast %71 : vector<1x32x32xf32> to vector<32x32xf32>
    %73 = vector.extract_strided_slice %66 {offsets = [0, 0], sizes = [12, 8], strides = [1, 1]} : vector<12x32xf32> to vector<12x8xf32>
    %74 = vector.extract_strided_slice %70 {offsets = [0, 0], sizes = [12, 8], strides = [1, 1]} : vector<12x32xf32> to vector<12x8xf32>
    %75 = vector.extract_strided_slice %62 {offsets = [0, 0], sizes = [12, 8], strides = [1, 1]} : vector<12x32xf32> to vector<12x8xf32>
    "tpu.trace_start"() <{level = 10 : i32, message = "td,sd->ts"}> : () -> ()
    %cst_39 = arith.constant dense<0.000000e+00> : vector<12x12xf32>
    %76 = tpu.matmul %73, %74, %cst_39 {dimension_numbers = #tpu.dot_dimension_numbers<[1], [1], [0], [0], [0, 0, 1, 0], [], []>} : vector<12x8xf32>, vector<12x8xf32>, vector<12x12xf32> -> vector<12x12xf32>
    "tpu.trace_stop"() : () -> ()
    %cst_40 = arith.constant 0.353553385 : f32
    %77 = vector.broadcast %cst_40 : f32 to vector<12x12xf32>
    %78 = arith.mulf %76, %77 : vector<12x12xf32>
    %79 = arith.addf %78, %4 : vector<12x12xf32>
    %cst_41 = arith.constant dense<0xFF800000> : vector<12xf32>
    %80 = vector.multi_reduction <maximumf>, %79, %cst_41 [1] : vector<12x12xf32> to vector<12xf32>
    %81 = vector.shape_cast %80 : vector<12xf32> to vector<12x1xf32>
    %82 = vector.broadcast %81 : vector<12x1xf32> to vector<12x12xf32>
    %83 = arith.subf %79, %82 : vector<12x12xf32>
    %84 = math.exp %83 : vector<12x12xf32>
    %cst_42 = arith.constant dense<0.000000e+00> : vector<12xf32>
    %85 = vector.multi_reduction <add>, %84, %cst_42 [1] : vector<12x12xf32> to vector<12xf32>
    %86 = vector.shape_cast %85 : vector<12xf32> to vector<12x1xf32>
    %87 = vector.broadcast %86 : vector<12x1xf32> to vector<12x12xf32>
    %88 = arith.divf %84, %87 : vector<12x12xf32>
    %cst_43 = arith.constant dense<0.000000e+00> : vector<12x8xf32>
    %89 = tpu.matmul %88, %75, %cst_43 {dimension_numbers = #tpu.dot_dimension_numbers<[1], [0], [0], [1], [0, 0, 1, 1], [], []>} : vector<12x12xf32>, vector<12x8xf32>, vector<12x8xf32> -> vector<12x8xf32>
    %90 = vector.extract_strided_slice %72 {offsets = [0, 0], sizes = [8, 32], strides = [1, 1]} : vector<32x32xf32> to vector<8x32xf32>
    %cst_44 = arith.constant dense<0.000000e+00> : vector<12x32xf32>
    %91 = tpu.matmul %89, %90, %cst_44 {dimension_numbers = #tpu.dot_dimension_numbers<[1], [0], [0], [1], [0, 0, 1, 1], [], []>} : vector<12x8xf32>, vector<8x32xf32>, vector<12x32xf32> -> vector<12x32xf32>
    %92 = vector.extract_strided_slice %66 {offsets = [0, 8], sizes = [12, 8], strides = [1, 1]} : vector<12x32xf32> to vector<12x8xf32>
    %93 = vector.extract_strided_slice %70 {offsets = [0, 8], sizes = [12, 8], strides = [1, 1]} : vector<12x32xf32> to vector<12x8xf32>
    %94 = vector.extract_strided_slice %62 {offsets = [0, 8], sizes = [12, 8], strides = [1, 1]} : vector<12x32xf32> to vector<12x8xf32>
    "tpu.trace_start"() <{level = 10 : i32, message = "td,sd->ts"}> : () -> ()
    %cst_45 = arith.constant dense<0.000000e+00> : vector<12x12xf32>
    %95 = tpu.matmul %92, %93, %cst_45 {dimension_numbers = #tpu.dot_dimension_numbers<[1], [1], [0], [0], [0, 0, 1, 0], [], []>} : vector<12x8xf32>, vector<12x8xf32>, vector<12x12xf32> -> vector<12x12xf32>
    "tpu.trace_stop"() : () -> ()
    %cst_46 = arith.constant 0.353553385 : f32
    %96 = vector.broadcast %cst_46 : f32 to vector<12x12xf32>
    %97 = arith.mulf %95, %96 : vector<12x12xf32>
    %98 = arith.addf %97, %4 : vector<12x12xf32>
    %cst_47 = arith.constant dense<0xFF800000> : vector<12xf32>
    %99 = vector.multi_reduction <maximumf>, %98, %cst_47 [1] : vector<12x12xf32> to vector<12xf32>
    %100 = vector.shape_cast %99 : vector<12xf32> to vector<12x1xf32>
    %101 = vector.broadcast %100 : vector<12x1xf32> to vector<12x12xf32>
    %102 = arith.subf %98, %101 : vector<12x12xf32>
    %103 = math.exp %102 : vector<12x12xf32>
    %cst_48 = arith.constant dense<0.000000e+00> : vector<12xf32>
    %104 = vector.multi_reduction <add>, %103, %cst_48 [1] : vector<12x12xf32> to vector<12xf32>
    %105 = vector.shape_cast %104 : vector<12xf32> to vector<12x1xf32>
    %106 = vector.broadcast %105 : vector<12x1xf32> to vector<12x12xf32>
    %107 = arith.divf %103, %106 : vector<12x12xf32>
    %cst_49 = arith.constant dense<0.000000e+00> : vector<12x8xf32>
    %108 = tpu.matmul %107, %94, %cst_49 {dimension_numbers = #tpu.dot_dimension_numbers<[1], [0], [0], [1], [0, 0, 1, 1], [], []>} : vector<12x12xf32>, vector<12x8xf32>, vector<12x8xf32> -> vector<12x8xf32>
    %109 = vector.extract_strided_slice %72 {offsets = [8, 0], sizes = [8, 32], strides = [1, 1]} : vector<32x32xf32> to vector<8x32xf32>
    %cst_50 = arith.constant dense<0.000000e+00> : vector<12x32xf32>
    %110 = tpu.matmul %108, %109, %cst_50 {dimension_numbers = #tpu.dot_dimension_numbers<[1], [0], [0], [1], [0, 0, 1, 1], [], []>} : vector<12x8xf32>, vector<8x32xf32>, vector<12x32xf32> -> vector<12x32xf32>
    %111 = arith.addf %91, %110 : vector<12x32xf32>
    %112 = vector.extract_strided_slice %66 {offsets = [0, 16], sizes = [12, 8], strides = [1, 1]} : vector<12x32xf32> to vector<12x8xf32>
    %113 = vector.extract_strided_slice %70 {offsets = [0, 16], sizes = [12, 8], strides = [1, 1]} : vector<12x32xf32> to vector<12x8xf32>
    %114 = vector.extract_strided_slice %62 {offsets = [0, 16], sizes = [12, 8], strides = [1, 1]} : vector<12x32xf32> to vector<12x8xf32>
    "tpu.trace_start"() <{level = 10 : i32, message = "td,sd->ts"}> : () -> ()
    %cst_51 = arith.constant dense<0.000000e+00> : vector<12x12xf32>
    %115 = tpu.matmul %112, %113, %cst_51 {dimension_numbers = #tpu.dot_dimension_numbers<[1], [1], [0], [0], [0, 0, 1, 0], [], []>} : vector<12x8xf32>, vector<12x8xf32>, vector<12x12xf32> -> vector<12x12xf32>
    "tpu.trace_stop"() : () -> ()
    %cst_52 = arith.constant 0.353553385 : f32
    %116 = vector.broadcast %cst_52 : f32 to vector<12x12xf32>
    %117 = arith.mulf %115, %116 : vector<12x12xf32>
    %118 = arith.addf %117, %4 : vector<12x12xf32>
    %cst_53 = arith.constant dense<0xFF800000> : vector<12xf32>
    %119 = vector.multi_reduction <maximumf>, %118, %cst_53 [1] : vector<12x12xf32> to vector<12xf32>
    %120 = vector.shape_cast %119 : vector<12xf32> to vector<12x1xf32>
    %121 = vector.broadcast %120 : vector<12x1xf32> to vector<12x12xf32>
    %122 = arith.subf %118, %121 : vector<12x12xf32>
    %123 = math.exp %122 : vector<12x12xf32>
    %cst_54 = arith.constant dense<0.000000e+00> : vector<12xf32>
    %124 = vector.multi_reduction <add>, %123, %cst_54 [1] : vector<12x12xf32> to vector<12xf32>
    %125 = vector.shape_cast %124 : vector<12xf32> to vector<12x1xf32>
    %126 = vector.broadcast %125 : vector<12x1xf32> to vector<12x12xf32>
    %127 = arith.divf %123, %126 : vector<12x12xf32>
    %cst_55 = arith.constant dense<0.000000e+00> : vector<12x8xf32>
    %128 = tpu.matmul %127, %114, %cst_55 {dimension_numbers = #tpu.dot_dimension_numbers<[1], [0], [0], [1], [0, 0, 1, 1], [], []>} : vector<12x12xf32>, vector<12x8xf32>, vector<12x8xf32> -> vector<12x8xf32>
    %129 = vector.extract_strided_slice %72 {offsets = [16, 0], sizes = [8, 32], strides = [1, 1]} : vector<32x32xf32> to vector<8x32xf32>
    %cst_56 = arith.constant dense<0.000000e+00> : vector<12x32xf32>
    %130 = tpu.matmul %128, %129, %cst_56 {dimension_numbers = #tpu.dot_dimension_numbers<[1], [0], [0], [1], [0, 0, 1, 1], [], []>} : vector<12x8xf32>, vector<8x32xf32>, vector<12x32xf32> -> vector<12x32xf32>
    %131 = arith.addf %111, %130 : vector<12x32xf32>
    %132 = vector.extract_strided_slice %66 {offsets = [0, 24], sizes = [12, 8], strides = [1, 1]} : vector<12x32xf32> to vector<12x8xf32>
    %133 = vector.extract_strided_slice %70 {offsets = [0, 24], sizes = [12, 8], strides = [1, 1]} : vector<12x32xf32> to vector<12x8xf32>
    %134 = vector.extract_strided_slice %62 {offsets = [0, 24], sizes = [12, 8], strides = [1, 1]} : vector<12x32xf32> to vector<12x8xf32>
    "tpu.trace_start"() <{level = 10 : i32, message = "td,sd->ts"}> : () -> ()
    %cst_57 = arith.constant dense<0.000000e+00> : vector<12x12xf32>
    %135 = tpu.matmul %132, %133, %cst_57 {dimension_numbers = #tpu.dot_dimension_numbers<[1], [1], [0], [0], [0, 0, 1, 0], [], []>} : vector<12x8xf32>, vector<12x8xf32>, vector<12x12xf32> -> vector<12x12xf32>
    "tpu.trace_stop"() : () -> ()
    %cst_58 = arith.constant 0.353553385 : f32
    %136 = vector.broadcast %cst_58 : f32 to vector<12x12xf32>
    %137 = arith.mulf %135, %136 : vector<12x12xf32>
    %138 = arith.addf %137, %4 : vector<12x12xf32>
    %cst_59 = arith.constant dense<0xFF800000> : vector<12xf32>
    %139 = vector.multi_reduction <maximumf>, %138, %cst_59 [1] : vector<12x12xf32> to vector<12xf32>
    %140 = vector.shape_cast %139 : vector<12xf32> to vector<12x1xf32>
    %141 = vector.broadcast %140 : vector<12x1xf32> to vector<12x12xf32>
    %142 = arith.subf %138, %141 : vector<12x12xf32>
    %143 = math.exp %142 : vector<12x12xf32>
    %cst_60 = arith.constant dense<0.000000e+00> : vector<12xf32>
    %144 = vector.multi_reduction <add>, %143, %cst_60 [1] : vector<12x12xf32> to vector<12xf32>
    %145 = vector.shape_cast %144 : vector<12xf32> to vector<12x1xf32>
    %146 = vector.broadcast %145 : vector<12x1xf32> to vector<12x12xf32>
    %147 = arith.divf %143, %146 : vector<12x12xf32>
    %cst_61 = arith.constant dense<0.000000e+00> : vector<12x8xf32>
    %148 = tpu.matmul %147, %134, %cst_61 {dimension_numbers = #tpu.dot_dimension_numbers<[1], [0], [0], [1], [0, 0, 1, 1], [], []>} : vector<12x12xf32>, vector<12x8xf32>, vector<12x8xf32> -> vector<12x8xf32>
    %149 = vector.extract_strided_slice %72 {offsets = [24, 0], sizes = [8, 32], strides = [1, 1]} : vector<32x32xf32> to vector<8x32xf32>
    %cst_62 = arith.constant dense<0.000000e+00> : vector<12x32xf32>
    %150 = tpu.matmul %148, %149, %cst_62 {dimension_numbers = #tpu.dot_dimension_numbers<[1], [0], [0], [1], [0, 0, 1, 1], [], []>} : vector<12x8xf32>, vector<8x32xf32>, vector<12x32xf32> -> vector<12x32xf32>
    %151 = arith.addf %131, %150 : vector<12x32xf32>
    %c0_63 = arith.constant 0 : index
    %c0_64 = arith.constant 0 : index
    %c0_65 = arith.constant 0 : index
    %152 = vector.load %arg11[%c0_63, %c0_64, %c0_65] : memref<2x32x128xf32, #tpu.memory_space<vmem>>, vector<1x32x128xf32>
    %153 = vector.shape_cast %152 : vector<1x32x128xf32> to vector<32x128xf32>
    %cst_66 = arith.constant dense<0.000000e+00> : vector<12x128xf32>
    %154 = tpu.matmul %56, %153, %cst_66 {dimension_numbers = #tpu.dot_dimension_numbers<[1], [0], [0], [1], [0, 0, 1, 1], [], []>} : vector<12x32xf32>, vector<32x128xf32>, vector<12x128xf32> -> vector<12x128xf32>
    %c0_67 = arith.constant 0 : index
    %c0_68 = arith.constant 0 : index
    %c0_69 = arith.constant 0 : index
    %155 = vector.load %arg12[%c0_67, %c0_68, %c0_69] : memref<2x1x128xf32, #tpu.memory_space<vmem>>, vector<1x1x128xf32>
    %156 = vector.shape_cast %155 : vector<1x1x128xf32> to vector<1x128xf32>
    %157 = vector.broadcast %156 : vector<1x128xf32> to vector<12x128xf32>
    %158 = arith.addf %154, %157 : vector<12x128xf32>
    %cst_70 = arith.constant 5.000000e-01 : f32
    %159 = vector.broadcast %cst_70 : f32 to vector<12x128xf32>
    %160 = arith.mulf %159, %158 : vector<12x128xf32>
    %cst_71 = arith.constant 4.471500e-02 : f32
    %161 = vector.broadcast %cst_71 : f32 to vector<12x128xf32>
    %162 = arith.mulf %161, %158 : vector<12x128xf32>
    %163 = arith.mulf %162, %158 : vector<12x128xf32>
    %164 = arith.mulf %163, %158 : vector<12x128xf32>
    %165 = arith.addf %158, %164 : vector<12x128xf32>
    %cst_72 = arith.constant 0.797884583 : f32
    %166 = vector.broadcast %cst_72 : f32 to vector<12x128xf32>
    %167 = arith.mulf %166, %165 : vector<12x128xf32>
    %168 = math.tanh %167 : vector<12x128xf32>
    %cst_73 = arith.constant 1.000000e+00 : f32
    %169 = vector.broadcast %cst_73 : f32 to vector<12x128xf32>
    %170 = arith.addf %169, %168 : vector<12x128xf32>
    %171 = arith.mulf %160, %170 : vector<12x128xf32>
    %c0_74 = arith.constant 0 : index
    %c0_75 = arith.constant 0 : index
    %c0_76 = arith.constant 0 : index
    %172 = vector.load %arg13[%c0_74, %c0_75, %c0_76] : memref<2x128x32xf32, #tpu.memory_space<vmem>>, vector<1x128x32xf32>
    %173 = vector.shape_cast %172 : vector<1x128x32xf32> to vector<128x32xf32>
    %cst_77 = arith.constant dense<0.000000e+00> : vector<12x32xf32>
    %174 = tpu.matmul %171, %173, %cst_77 {dimension_numbers = #tpu.dot_dimension_numbers<[1], [0], [0], [1], [0, 0, 1, 1], [], []>} : vector<12x128xf32>, vector<128x32xf32>, vector<12x32xf32> -> vector<12x32xf32>
    %c0_78 = arith.constant 0 : index
    %c0_79 = arith.constant 0 : index
    %c0_80 = arith.constant 0 : index
    %175 = vector.load %arg14[%c0_78, %c0_79, %c0_80] : memref<2x1x32xf32, #tpu.memory_space<vmem>>, vector<1x1x32xf32>
    %176 = vector.shape_cast %175 : vector<1x1x32xf32> to vector<1x32xf32>
    %177 = vector.broadcast %176 : vector<1x32xf32> to vector<12x32xf32>
    %178 = arith.addf %174, %177 : vector<12x32xf32>
    %179 = arith.addf %151, %178 : vector<12x32xf32>
    %180 = arith.addf %179, %30 : vector<12x32xf32>
    %c1 = arith.constant 1 : index
    %c0_81 = arith.constant 0 : index
    %c0_82 = arith.constant 0 : index
    %181 = vector.load %arg7[%c1, %c0_81, %c0_82] : memref<2x1x32xf32, #tpu.memory_space<vmem>>, vector<1x1x32xf32>
    %182 = vector.shape_cast %181 : vector<1x1x32xf32> to vector<1x32xf32>
    %c1_83 = arith.constant 1 : index
    %c0_84 = arith.constant 0 : index
    %c0_85 = arith.constant 0 : index
    %183 = vector.load %arg8[%c1_83, %c0_84, %c0_85] : memref<2x1x32xf32, #tpu.memory_space<vmem>>, vector<1x1x32xf32>
    %184 = vector.shape_cast %183 : vector<1x1x32xf32> to vector<1x32xf32>
    %cst_86 = arith.constant dense<0.000000e+00> : vector<12xf32>
    %185 = vector.multi_reduction <add>, %180, %cst_86 [1] : vector<12x32xf32> to vector<12xf32>
    %186 = vector.shape_cast %185 : vector<12xf32> to vector<12x1xf32>
    %cst_87 = arith.constant 3.200000e+01 : f32
    %187 = vector.broadcast %cst_87 : f32 to vector<12x1xf32>
    %188 = arith.divf %186, %187 : vector<12x1xf32>
    %189 = vector.broadcast %188 : vector<12x1xf32> to vector<12x32xf32>
    %190 = arith.subf %180, %189 : vector<12x32xf32>
    %191 = arith.mulf %190, %190 : vector<12x32xf32>
    %cst_88 = arith.constant dense<0.000000e+00> : vector<12xf32>
    %192 = vector.multi_reduction <add>, %191, %cst_88 [1] : vector<12x32xf32> to vector<12xf32>
    %193 = vector.shape_cast %192 : vector<12xf32> to vector<12x1xf32>
    %cst_89 = arith.constant 3.200000e+01 : f32
    %194 = vector.broadcast %cst_89 : f32 to vector<12x1xf32>
    %195 = arith.divf %193, %194 : vector<12x1xf32>
    %196 = vector.broadcast %188 : vector<12x1xf32> to vector<12x32xf32>
    %197 = arith.subf %180, %196 : vector<12x32xf32>
    %cst_90 = arith.constant 9.99999974E-6 : f32
    %198 = vector.broadcast %cst_90 : f32 to vector<12x1xf32>
    %199 = arith.addf %195, %198 : vector<12x1xf32>
    %200 = math.rsqrt %199 : vector<12x1xf32>
    %201 = vector.broadcast %200 : vector<12x1xf32> to vector<12x32xf32>
    %202 = arith.mulf %197, %201 : vector<12x32xf32>
    %203 = vector.broadcast %182 : vector<1x32xf32> to vector<12x32xf32>
    %204 = arith.mulf %202, %203 : vector<12x32xf32>
    %205 = vector.broadcast %184 : vector<1x32xf32> to vector<12x32xf32>
    %206 = arith.addf %204, %205 : vector<12x32xf32>
    %c1_91 = arith.constant 1 : index
    %c0_92 = arith.constant 0 : index
    %c0_93 = arith.constant 0 : index
    %207 = vector.load %arg9[%c1_91, %c0_92, %c0_93] : memref<2x32x96xf32, #tpu.memory_space<vmem>>, vector<1x32x96xf32>
    %208 = vector.shape_cast %207 : vector<1x32x96xf32> to vector<32x96xf32>
    %cst_94 = arith.constant dense<0.000000e+00> : vector<12x96xf32>
    %209 = tpu.matmul %206, %208, %cst_94 {dimension_numbers = #tpu.dot_dimension_numbers<[1], [0], [0], [1], [0, 0, 1, 1], [], []>} : vector<12x32xf32>, vector<32x96xf32>, vector<12x96xf32> -> vector<12x96xf32>
    %210 = vector.extract_strided_slice %209 {offsets = [0, 0], sizes = [12, 32], strides = [1, 1]} : vector<12x96xf32> to vector<12x32xf32>
    %211 = vector.extract_strided_slice %209 {offsets = [0, 32], sizes = [12, 32], strides = [1, 1]} : vector<12x96xf32> to vector<12x32xf32>
    %212 = vector.extract_strided_slice %209 {offsets = [0, 64], sizes = [12, 32], strides = [1, 1]} : vector<12x96xf32> to vector<12x32xf32>
    %213 = arith.mulf %210, %0 : vector<12x32xf32>
    %cst_95 = arith.constant dense<0.000000e+00> : vector<12x32xf32>
    %214 = tpu.matmul %210, %2, %cst_95 {dimension_numbers = #tpu.dot_dimension_numbers<[1], [0], [0], [1], [0, 0, 1, 1], [], []>} : vector<12x32xf32>, vector<32x32xf32>, vector<12x32xf32> -> vector<12x32xf32>
    %215 = arith.mulf %214, %1 : vector<12x32xf32>
    %216 = arith.addf %213, %215 : vector<12x32xf32>
    %217 = arith.mulf %211, %0 : vector<12x32xf32>
    %cst_96 = arith.constant dense<0.000000e+00> : vector<12x32xf32>
    %218 = tpu.matmul %211, %2, %cst_96 {dimension_numbers = #tpu.dot_dimension_numbers<[1], [0], [0], [1], [0, 0, 1, 1], [], []>} : vector<12x32xf32>, vector<32x32xf32>, vector<12x32xf32> -> vector<12x32xf32>
    %219 = arith.mulf %218, %1 : vector<12x32xf32>
    %220 = arith.addf %217, %219 : vector<12x32xf32>
    %c1_97 = arith.constant 1 : index
    %c0_98 = arith.constant 0 : index
    %c0_99 = arith.constant 0 : index
    %221 = vector.load %arg10[%c1_97, %c0_98, %c0_99] : memref<2x32x32xf32, #tpu.memory_space<vmem>>, vector<1x32x32xf32>
    %222 = vector.shape_cast %221 : vector<1x32x32xf32> to vector<32x32xf32>
    %223 = vector.extract_strided_slice %216 {offsets = [0, 0], sizes = [12, 8], strides = [1, 1]} : vector<12x32xf32> to vector<12x8xf32>
    %224 = vector.extract_strided_slice %220 {offsets = [0, 0], sizes = [12, 8], strides = [1, 1]} : vector<12x32xf32> to vector<12x8xf32>
    %225 = vector.extract_strided_slice %212 {offsets = [0, 0], sizes = [12, 8], strides = [1, 1]} : vector<12x32xf32> to vector<12x8xf32>
    "tpu.trace_start"() <{level = 10 : i32, message = "td,sd->ts"}> : () -> ()
    %cst_100 = arith.constant dense<0.000000e+00> : vector<12x12xf32>
    %226 = tpu.matmul %223, %224, %cst_100 {dimension_numbers = #tpu.dot_dimension_numbers<[1], [1], [0], [0], [0, 0, 1, 0], [], []>} : vector<12x8xf32>, vector<12x8xf32>, vector<12x12xf32> -> vector<12x12xf32>
    "tpu.trace_stop"() : () -> ()
    %cst_101 = arith.constant 0.353553385 : f32
    %227 = vector.broadcast %cst_101 : f32 to vector<12x12xf32>
    %228 = arith.mulf %226, %227 : vector<12x12xf32>
    %229 = arith.addf %228, %4 : vector<12x12xf32>
    %cst_102 = arith.constant dense<0xFF800000> : vector<12xf32>
    %230 = vector.multi_reduction <maximumf>, %229, %cst_102 [1] : vector<12x12xf32> to vector<12xf32>
    %231 = vector.shape_cast %230 : vector<12xf32> to vector<12x1xf32>
    %232 = vector.broadcast %231 : vector<12x1xf32> to vector<12x12xf32>
    %233 = arith.subf %229, %232 : vector<12x12xf32>
    %234 = math.exp %233 : vector<12x12xf32>
    %cst_103 = arith.constant dense<0.000000e+00> : vector<12xf32>
    %235 = vector.multi_reduction <add>, %234, %cst_103 [1] : vector<12x12xf32> to vector<12xf32>
    %236 = vector.shape_cast %235 : vector<12xf32> to vector<12x1xf32>
    %237 = vector.broadcast %236 : vector<12x1xf32> to vector<12x12xf32>
    %238 = arith.divf %234, %237 : vector<12x12xf32>
    %cst_104 = arith.constant dense<0.000000e+00> : vector<12x8xf32>
    %239 = tpu.matmul %238, %225, %cst_104 {dimension_numbers = #tpu.dot_dimension_numbers<[1], [0], [0], [1], [0, 0, 1, 1], [], []>} : vector<12x12xf32>, vector<12x8xf32>, vector<12x8xf32> -> vector<12x8xf32>
    %240 = vector.extract_strided_slice %222 {offsets = [0, 0], sizes = [8, 32], strides = [1, 1]} : vector<32x32xf32> to vector<8x32xf32>
    %cst_105 = arith.constant dense<0.000000e+00> : vector<12x32xf32>
    %241 = tpu.matmul %239, %240, %cst_105 {dimension_numbers = #tpu.dot_dimension_numbers<[1], [0], [0], [1], [0, 0, 1, 1], [], []>} : vector<12x8xf32>, vector<8x32xf32>, vector<12x32xf32> -> vector<12x32xf32>
    %242 = vector.extract_strided_slice %216 {offsets = [0, 8], sizes = [12, 8], strides = [1, 1]} : vector<12x32xf32> to vector<12x8xf32>
    %243 = vector.extract_strided_slice %220 {offsets = [0, 8], sizes = [12, 8], strides = [1, 1]} : vector<12x32xf32> to vector<12x8xf32>
    %244 = vector.extract_strided_slice %212 {offsets = [0, 8], sizes = [12, 8], strides = [1, 1]} : vector<12x32xf32> to vector<12x8xf32>
    "tpu.trace_start"() <{level = 10 : i32, message = "td,sd->ts"}> : () -> ()
    %cst_106 = arith.constant dense<0.000000e+00> : vector<12x12xf32>
    %245 = tpu.matmul %242, %243, %cst_106 {dimension_numbers = #tpu.dot_dimension_numbers<[1], [1], [0], [0], [0, 0, 1, 0], [], []>} : vector<12x8xf32>, vector<12x8xf32>, vector<12x12xf32> -> vector<12x12xf32>
    "tpu.trace_stop"() : () -> ()
    %cst_107 = arith.constant 0.353553385 : f32
    %246 = vector.broadcast %cst_107 : f32 to vector<12x12xf32>
    %247 = arith.mulf %245, %246 : vector<12x12xf32>
    %248 = arith.addf %247, %4 : vector<12x12xf32>
    %cst_108 = arith.constant dense<0xFF800000> : vector<12xf32>
    %249 = vector.multi_reduction <maximumf>, %248, %cst_108 [1] : vector<12x12xf32> to vector<12xf32>
    %250 = vector.shape_cast %249 : vector<12xf32> to vector<12x1xf32>
    %251 = vector.broadcast %250 : vector<12x1xf32> to vector<12x12xf32>
    %252 = arith.subf %248, %251 : vector<12x12xf32>
    %253 = math.exp %252 : vector<12x12xf32>
    %cst_109 = arith.constant dense<0.000000e+00> : vector<12xf32>
    %254 = vector.multi_reduction <add>, %253, %cst_109 [1] : vector<12x12xf32> to vector<12xf32>
    %255 = vector.shape_cast %254 : vector<12xf32> to vector<12x1xf32>
    %256 = vector.broadcast %255 : vector<12x1xf32> to vector<12x12xf32>
    %257 = arith.divf %253, %256 : vector<12x12xf32>
    %cst_110 = arith.constant dense<0.000000e+00> : vector<12x8xf32>
    %258 = tpu.matmul %257, %244, %cst_110 {dimension_numbers = #tpu.dot_dimension_numbers<[1], [0], [0], [1], [0, 0, 1, 1], [], []>} : vector<12x12xf32>, vector<12x8xf32>, vector<12x8xf32> -> vector<12x8xf32>
    %259 = vector.extract_strided_slice %222 {offsets = [8, 0], sizes = [8, 32], strides = [1, 1]} : vector<32x32xf32> to vector<8x32xf32>
    %cst_111 = arith.constant dense<0.000000e+00> : vector<12x32xf32>
    %260 = tpu.matmul %258, %259, %cst_111 {dimension_numbers = #tpu.dot_dimension_numbers<[1], [0], [0], [1], [0, 0, 1, 1], [], []>} : vector<12x8xf32>, vector<8x32xf32>, vector<12x32xf32> -> vector<12x32xf32>
    %261 = arith.addf %241, %260 : vector<12x32xf32>
    %262 = vector.extract_strided_slice %216 {offsets = [0, 16], sizes = [12, 8], strides = [1, 1]} : vector<12x32xf32> to vector<12x8xf32>
    %263 = vector.extract_strided_slice %220 {offsets = [0, 16], sizes = [12, 8], strides = [1, 1]} : vector<12x32xf32> to vector<12x8xf32>
    %264 = vector.extract_strided_slice %212 {offsets = [0, 16], sizes = [12, 8], strides = [1, 1]} : vector<12x32xf32> to vector<12x8xf32>
    "tpu.trace_start"() <{level = 10 : i32, message = "td,sd->ts"}> : () -> ()
    %cst_112 = arith.constant dense<0.000000e+00> : vector<12x12xf32>
    %265 = tpu.matmul %262, %263, %cst_112 {dimension_numbers = #tpu.dot_dimension_numbers<[1], [1], [0], [0], [0, 0, 1, 0], [], []>} : vector<12x8xf32>, vector<12x8xf32>, vector<12x12xf32> -> vector<12x12xf32>
    "tpu.trace_stop"() : () -> ()
    %cst_113 = arith.constant 0.353553385 : f32
    %266 = vector.broadcast %cst_113 : f32 to vector<12x12xf32>
    %267 = arith.mulf %265, %266 : vector<12x12xf32>
    %268 = arith.addf %267, %4 : vector<12x12xf32>
    %cst_114 = arith.constant dense<0xFF800000> : vector<12xf32>
    %269 = vector.multi_reduction <maximumf>, %268, %cst_114 [1] : vector<12x12xf32> to vector<12xf32>
    %270 = vector.shape_cast %269 : vector<12xf32> to vector<12x1xf32>
    %271 = vector.broadcast %270 : vector<12x1xf32> to vector<12x12xf32>
    %272 = arith.subf %268, %271 : vector<12x12xf32>
    %273 = math.exp %272 : vector<12x12xf32>
    %cst_115 = arith.constant dense<0.000000e+00> : vector<12xf32>
    %274 = vector.multi_reduction <add>, %273, %cst_115 [1] : vector<12x12xf32> to vector<12xf32>
    %275 = vector.shape_cast %274 : vector<12xf32> to vector<12x1xf32>
    %276 = vector.broadcast %275 : vector<12x1xf32> to vector<12x12xf32>
    %277 = arith.divf %273, %276 : vector<12x12xf32>
    %cst_116 = arith.constant dense<0.000000e+00> : vector<12x8xf32>
    %278 = tpu.matmul %277, %264, %cst_116 {dimension_numbers = #tpu.dot_dimension_numbers<[1], [0], [0], [1], [0, 0, 1, 1], [], []>} : vector<12x12xf32>, vector<12x8xf32>, vector<12x8xf32> -> vector<12x8xf32>
    %279 = vector.extract_strided_slice %222 {offsets = [16, 0], sizes = [8, 32], strides = [1, 1]} : vector<32x32xf32> to vector<8x32xf32>
    %cst_117 = arith.constant dense<0.000000e+00> : vector<12x32xf32>
    %280 = tpu.matmul %278, %279, %cst_117 {dimension_numbers = #tpu.dot_dimension_numbers<[1], [0], [0], [1], [0, 0, 1, 1], [], []>} : vector<12x8xf32>, vector<8x32xf32>, vector<12x32xf32> -> vector<12x32xf32>
    %281 = arith.addf %261, %280 : vector<12x32xf32>
    %282 = vector.extract_strided_slice %216 {offsets = [0, 24], sizes = [12, 8], strides = [1, 1]} : vector<12x32xf32> to vector<12x8xf32>
    %283 = vector.extract_strided_slice %220 {offsets = [0, 24], sizes = [12, 8], strides = [1, 1]} : vector<12x32xf32> to vector<12x8xf32>
    %284 = vector.extract_strided_slice %212 {offsets = [0, 24], sizes = [12, 8], strides = [1, 1]} : vector<12x32xf32> to vector<12x8xf32>
    "tpu.trace_start"() <{level = 10 : i32, message = "td,sd->ts"}> : () -> ()
    %cst_118 = arith.constant dense<0.000000e+00> : vector<12x12xf32>
    %285 = tpu.matmul %282, %283, %cst_118 {dimension_numbers = #tpu.dot_dimension_numbers<[1], [1], [0], [0], [0, 0, 1, 0], [], []>} : vector<12x8xf32>, vector<12x8xf32>, vector<12x12xf32> -> vector<12x12xf32>
    "tpu.trace_stop"() : () -> ()
    %cst_119 = arith.constant 0.353553385 : f32
    %286 = vector.broadcast %cst_119 : f32 to vector<12x12xf32>
    %287 = arith.mulf %285, %286 : vector<12x12xf32>
    %288 = arith.addf %287, %4 : vector<12x12xf32>
    %cst_120 = arith.constant dense<0xFF800000> : vector<12xf32>
    %289 = vector.multi_reduction <maximumf>, %288, %cst_120 [1] : vector<12x12xf32> to vector<12xf32>
    %290 = vector.shape_cast %289 : vector<12xf32> to vector<12x1xf32>
    %291 = vector.broadcast %290 : vector<12x1xf32> to vector<12x12xf32>
    %292 = arith.subf %288, %291 : vector<12x12xf32>
    %293 = math.exp %292 : vector<12x12xf32>
    %cst_121 = arith.constant dense<0.000000e+00> : vector<12xf32>
    %294 = vector.multi_reduction <add>, %293, %cst_121 [1] : vector<12x12xf32> to vector<12xf32>
    %295 = vector.shape_cast %294 : vector<12xf32> to vector<12x1xf32>
    %296 = vector.broadcast %295 : vector<12x1xf32> to vector<12x12xf32>
    %297 = arith.divf %293, %296 : vector<12x12xf32>
    %cst_122 = arith.constant dense<0.000000e+00> : vector<12x8xf32>
    %298 = tpu.matmul %297, %284, %cst_122 {dimension_numbers = #tpu.dot_dimension_numbers<[1], [0], [0], [1], [0, 0, 1, 1], [], []>} : vector<12x12xf32>, vector<12x8xf32>, vector<12x8xf32> -> vector<12x8xf32>
    %299 = vector.extract_strided_slice %222 {offsets = [24, 0], sizes = [8, 32], strides = [1, 1]} : vector<32x32xf32> to vector<8x32xf32>
    %cst_123 = arith.constant dense<0.000000e+00> : vector<12x32xf32>
    %300 = tpu.matmul %298, %299, %cst_123 {dimension_numbers = #tpu.dot_dimension_numbers<[1], [0], [0], [1], [0, 0, 1, 1], [], []>} : vector<12x8xf32>, vector<8x32xf32>, vector<12x32xf32> -> vector<12x32xf32>
    %301 = arith.addf %281, %300 : vector<12x32xf32>
    %c1_124 = arith.constant 1 : index
    %c0_125 = arith.constant 0 : index
    %c0_126 = arith.constant 0 : index
    %302 = vector.load %arg11[%c1_124, %c0_125, %c0_126] : memref<2x32x128xf32, #tpu.memory_space<vmem>>, vector<1x32x128xf32>
    %303 = vector.shape_cast %302 : vector<1x32x128xf32> to vector<32x128xf32>
    %cst_127 = arith.constant dense<0.000000e+00> : vector<12x128xf32>
    %304 = tpu.matmul %206, %303, %cst_127 {dimension_numbers = #tpu.dot_dimension_numbers<[1], [0], [0], [1], [0, 0, 1, 1], [], []>} : vector<12x32xf32>, vector<32x128xf32>, vector<12x128xf32> -> vector<12x128xf32>
    %c1_128 = arith.constant 1 : index
    %c0_129 = arith.constant 0 : index
    %c0_130 = arith.constant 0 : index
    %305 = vector.load %arg12[%c1_128, %c0_129, %c0_130] : memref<2x1x128xf32, #tpu.memory_space<vmem>>, vector<1x1x128xf32>
    %306 = vector.shape_cast %305 : vector<1x1x128xf32> to vector<1x128xf32>
    %307 = vector.broadcast %306 : vector<1x128xf32> to vector<12x128xf32>
    %308 = arith.addf %304, %307 : vector<12x128xf32>
    %cst_131 = arith.constant 5.000000e-01 : f32
    %309 = vector.broadcast %cst_131 : f32 to vector<12x128xf32>
    %310 = arith.mulf %309, %308 : vector<12x128xf32>
    %cst_132 = arith.constant 4.471500e-02 : f32
    %311 = vector.broadcast %cst_132 : f32 to vector<12x128xf32>
    %312 = arith.mulf %311, %308 : vector<12x128xf32>
    %313 = arith.mulf %312, %308 : vector<12x128xf32>
    %314 = arith.mulf %313, %308 : vector<12x128xf32>
    %315 = arith.addf %308, %314 : vector<12x128xf32>
    %cst_133 = arith.constant 0.797884583 : f32
    %316 = vector.broadcast %cst_133 : f32 to vector<12x128xf32>
    %317 = arith.mulf %316, %315 : vector<12x128xf32>
    %318 = math.tanh %317 : vector<12x128xf32>
    %cst_134 = arith.constant 1.000000e+00 : f32
    %319 = vector.broadcast %cst_134 : f32 to vector<12x128xf32>
    %320 = arith.addf %319, %318 : vector<12x128xf32>
    %321 = arith.mulf %310, %320 : vector<12x128xf32>
    %c1_135 = arith.constant 1 : index
    %c0_136 = arith.constant 0 : index
    %c0_137 = arith.constant 0 : index
    %322 = vector.load %arg13[%c1_135, %c0_136, %c0_137] : memref<2x128x32xf32, #tpu.memory_space<vmem>>, vector<1x128x32xf32>
    %323 = vector.shape_cast %322 : vector<1x128x32xf32> to vector<128x32xf32>
    %cst_138 = arith.constant dense<0.000000e+00> : vector<12x32xf32>
    %324 = tpu.matmul %321, %323, %cst_138 {dimension_numbers = #tpu.dot_dimension_numbers<[1], [0], [0], [1], [0, 0, 1, 1], [], []>} : vector<12x128xf32>, vector<128x32xf32>, vector<12x32xf32> -> vector<12x32xf32>
    %c1_139 = arith.constant 1 : index
    %c0_140 = arith.constant 0 : index
    %c0_141 = arith.constant 0 : index
    %325 = vector.load %arg14[%c1_139, %c0_140, %c0_141] : memref<2x1x32xf32, #tpu.memory_space<vmem>>, vector<1x1x32xf32>
    %326 = vector.shape_cast %325 : vector<1x1x32xf32> to vector<1x32xf32>
    %327 = vector.broadcast %326 : vector<1x32xf32> to vector<12x32xf32>
    %328 = arith.addf %324, %327 : vector<12x32xf32>
    %329 = arith.addf %301, %328 : vector<12x32xf32>
    %330 = arith.addf %329, %180 : vector<12x32xf32>
    %331 = vector.extract_strided_slice %330 {offsets = [8, 0], sizes = [4, 32], strides = [1, 1]} : vector<12x32xf32> to vector<4x32xf32>
    %c0_142 = arith.constant 0 : index
    %c0_143 = arith.constant 0 : index
    %332 = vector.load %arg15[%c0_142, %c0_143] : memref<1x32xf32, #tpu.memory_space<vmem>>, vector<1x32xf32>
    %c0_144 = arith.constant 0 : index
    %c0_145 = arith.constant 0 : index
    %333 = vector.load %arg16[%c0_144, %c0_145] : memref<1x32xf32, #tpu.memory_space<vmem>>, vector<1x32xf32>
    %cst_146 = arith.constant dense<0.000000e+00> : vector<4xf32>
    %334 = vector.multi_reduction <add>, %331, %cst_146 [1] : vector<4x32xf32> to vector<4xf32>
    %335 = vector.shape_cast %334 : vector<4xf32> to vector<4x1xf32>
    %cst_147 = arith.constant 3.200000e+01 : f32
    %336 = vector.broadcast %cst_147 : f32 to vector<4x1xf32>
    %337 = arith.divf %335, %336 : vector<4x1xf32>
    %338 = vector.broadcast %337 : vector<4x1xf32> to vector<4x32xf32>
    %339 = arith.subf %331, %338 : vector<4x32xf32>
    %340 = arith.mulf %339, %339 : vector<4x32xf32>
    %cst_148 = arith.constant dense<0.000000e+00> : vector<4xf32>
    %341 = vector.multi_reduction <add>, %340, %cst_148 [1] : vector<4x32xf32> to vector<4xf32>
    %342 = vector.shape_cast %341 : vector<4xf32> to vector<4x1xf32>
    %cst_149 = arith.constant 3.200000e+01 : f32
    %343 = vector.broadcast %cst_149 : f32 to vector<4x1xf32>
    %344 = arith.divf %342, %343 : vector<4x1xf32>
    %345 = vector.broadcast %337 : vector<4x1xf32> to vector<4x32xf32>
    %346 = arith.subf %331, %345 : vector<4x32xf32>
    %cst_150 = arith.constant 9.99999974E-6 : f32
    %347 = vector.broadcast %cst_150 : f32 to vector<4x1xf32>
    %348 = arith.addf %344, %347 : vector<4x1xf32>
    %349 = math.rsqrt %348 : vector<4x1xf32>
    %350 = vector.broadcast %349 : vector<4x1xf32> to vector<4x32xf32>
    %351 = arith.mulf %346, %350 : vector<4x32xf32>
    %352 = vector.broadcast %332 : vector<1x32xf32> to vector<4x32xf32>
    %353 = arith.mulf %351, %352 : vector<4x32xf32>
    %354 = vector.broadcast %333 : vector<1x32xf32> to vector<4x32xf32>
    %355 = arith.addf %353, %354 : vector<4x32xf32>
    %c0_151 = arith.constant 0 : index
    %c0_152 = arith.constant 0 : index
    %356 = vector.load %arg17[%c0_151, %c0_152] : memref<32x8xf32, #tpu.memory_space<vmem>>, vector<32x8xf32>
    %cst_153 = arith.constant dense<0.000000e+00> : vector<4x8xf32>
    %357 = tpu.matmul %355, %356, %cst_153 {dimension_numbers = #tpu.dot_dimension_numbers<[1], [0], [0], [1], [0, 0, 1, 1], [], []>} : vector<4x32xf32>, vector<32x8xf32>, vector<4x8xf32> -> vector<4x8xf32>
    %c0_154 = arith.constant 0 : index
    %c0_155 = arith.constant 0 : index
    %358 = vector.load %arg18[%c0_154, %c0_155] : memref<1x8xf32, #tpu.memory_space<vmem>>, vector<1x8xf32>
    %359 = vector.broadcast %358 : vector<1x8xf32> to vector<4x8xf32>
    %360 = arith.addf %357, %359 : vector<4x8xf32>
    %c0_156 = arith.constant 0 : index
    %c0_157 = arith.constant 0 : index
    %c0_158 = arith.constant 0 : index
    %361 = vector.load %arg19[%c0_156, %c0_157, %c0_158] : memref<2x4x8xf32, #tpu.memory_space<vmem>>, vector<1x4x8xf32>
    %362 = vector.shape_cast %361 : vector<1x4x8xf32> to vector<4x8xf32>
    %363 = vector.shape_cast %360 : vector<4x8xf32> to vector<1x4x8xf32>
    tpu.vector_store %arg19[%c0_156, %c0_157, %c0_158], %363 {strides = array<i32>} : memref<2x4x8xf32, #tpu.memory_space<vmem>>, vector<1x4x8xf32>,
    %c1_159 = arith.constant 1 : index
    %c0_160 = arith.constant 0 : index
    %c0_161 = arith.constant 0 : index
    %364 = vector.load %arg1[%c1_159, %c0_160, %c0_161] : memref<2x12x12xf32, #tpu.memory_space<vmem>>, vector<1x12x12xf32>
    %365 = vector.shape_cast %364 : vector<1x12x12xf32> to vector<12x12xf32>
    %c1_162 = arith.constant 1 : index
    %c0_163 = arith.constant 0 : index
    %c0_164 = arith.constant 0 : index
    %366 = vector.load %arg0[%c1_162, %c0_163, %c0_164] : memref<2x12x32xf32, #tpu.memory_space<vmem>>, vector<1x12x32xf32>
    %367 = vector.shape_cast %366 : vector<1x12x32xf32> to vector<12x32xf32>
    %c0_165 = arith.constant 0 : index
    %c0_166 = arith.constant 0 : index
    %368 = vector.load %arg5[%c0_165, %c0_166] : memref<1x32xf32, #tpu.memory_space<vmem>>, vector<1x32xf32>
    %c0_167 = arith.constant 0 : index
    %c0_168 = arith.constant 0 : index
    %369 = vector.load %arg6[%c0_167, %c0_168] : memref<1x32xf32, #tpu.memory_space<vmem>>, vector<1x32xf32>
    %cst_169 = arith.constant dense<0.000000e+00> : vector<12xf32>
    %370 = vector.multi_reduction <add>, %367, %cst_169 [1] : vector<12x32xf32> to vector<12xf32>
    %371 = vector.shape_cast %370 : vector<12xf32> to vector<12x1xf32>
    %cst_170 = arith.constant 3.200000e+01 : f32
    %372 = vector.broadcast %cst_170 : f32 to vector<12x1xf32>
    %373 = arith.divf %371, %372 : vector<12x1xf32>
    %374 = vector.broadcast %373 : vector<12x1xf32> to vector<12x32xf32>
    %375 = arith.subf %367, %374 : vector<12x32xf32>
    %376 = arith.mulf %375, %375 : vector<12x32xf32>
    %cst_171 = arith.constant dense<0.000000e+00> : vector<12xf32>
    %377 = vector.multi_reduction <add>, %376, %cst_171 [1] : vector<12x32xf32> to vector<12xf32>
    %378 = vector.shape_cast %377 : vector<12xf32> to vector<12x1xf32>
    %cst_172 = arith.constant 3.200000e+01 : f32
    %379 = vector.broadcast %cst_172 : f32 to vector<12x1xf32>
    %380 = arith.divf %378, %379 : vector<12x1xf32>
    %381 = vector.broadcast %373 : vector<12x1xf32> to vector<12x32xf32>
    %382 = arith.subf %367, %381 : vector<12x32xf32>
    %cst_173 = arith.constant 9.99999974E-6 : f32
    %383 = vector.broadcast %cst_173 : f32 to vector<12x1xf32>
    %384 = arith.addf %380, %383 : vector<12x1xf32>
    %385 = math.rsqrt %384 : vector<12x1xf32>
    %386 = vector.broadcast %385 : vector<12x1xf32> to vector<12x32xf32>
    %387 = arith.mulf %382, %386 : vector<12x32xf32>
    %388 = vector.broadcast %368 : vector<1x32xf32> to vector<12x32xf32>
    %389 = arith.mulf %387, %388 : vector<12x32xf32>
    %390 = vector.broadcast %369 : vector<1x32xf32> to vector<12x32xf32>
    %391 = arith.addf %389, %390 : vector<12x32xf32>
    %c0_174 = arith.constant 0 : index
    %c0_175 = arith.constant 0 : index
    %c0_176 = arith.constant 0 : index
    %392 = vector.load %arg7[%c0_174, %c0_175, %c0_176] : memref<2x1x32xf32, #tpu.memory_space<vmem>>, vector<1x1x32xf32>
    %393 = vector.shape_cast %392 : vector<1x1x32xf32> to vector<1x32xf32>
    %c0_177 = arith.constant 0 : index
    %c0_178 = arith.constant 0 : index
    %c0_179 = arith.constant 0 : index
    %394 = vector.load %arg8[%c0_177, %c0_178, %c0_179] : memref<2x1x32xf32, #tpu.memory_space<vmem>>, vector<1x1x32xf32>
    %395 = vector.shape_cast %394 : vector<1x1x32xf32> to vector<1x32xf32>
    %cst_180 = arith.constant dense<0.000000e+00> : vector<12xf32>
    %396 = vector.multi_reduction <add>, %391, %cst_180 [1] : vector<12x32xf32> to vector<12xf32>
    %397 = vector.shape_cast %396 : vector<12xf32> to vector<12x1xf32>
    %cst_181 = arith.constant 3.200000e+01 : f32
    %398 = vector.broadcast %cst_181 : f32 to vector<12x1xf32>
    %399 = arith.divf %397, %398 : vector<12x1xf32>
    %400 = vector.broadcast %399 : vector<12x1xf32> to vector<12x32xf32>
    %401 = arith.subf %391, %400 : vector<12x32xf32>
    %402 = arith.mulf %401, %401 : vector<12x32xf32>
    %cst_182 = arith.constant dense<0.000000e+00> : vector<12xf32>
    %403 = vector.multi_reduction <add>, %402, %cst_182 [1] : vector<12x32xf32> to vector<12xf32>
    %404 = vector.shape_cast %403 : vector<12xf32> to vector<12x1xf32>
    %cst_183 = arith.constant 3.200000e+01 : f32
    %405 = vector.broadcast %cst_183 : f32 to vector<12x1xf32>
    %406 = arith.divf %404, %405 : vector<12x1xf32>
    %407 = vector.broadcast %399 : vector<12x1xf32> to vector<12x32xf32>
    %408 = arith.subf %391, %407 : vector<12x32xf32>
    %cst_184 = arith.constant 9.99999974E-6 : f32
    %409 = vector.broadcast %cst_184 : f32 to vector<12x1xf32>
    %410 = arith.addf %406, %409 : vector<12x1xf32>
    %411 = math.rsqrt %410 : vector<12x1xf32>
    %412 = vector.broadcast %411 : vector<12x1xf32> to vector<12x32xf32>
    %413 = arith.mulf %408, %412 : vector<12x32xf32>
    %414 = vector.broadcast %393 : vector<1x32xf32> to vector<12x32xf32>
    %415 = arith.mulf %413, %414 : vector<12x32xf32>
    %416 = vector.broadcast %395 : vector<1x32xf32> to vector<12x32xf32>
    %417 = arith.addf %415, %416 : vector<12x32xf32>
    %c0_185 = arith.constant 0 : index
    %c0_186 = arith.constant 0 : index
    %c0_187 = arith.constant 0 : index
    %418 = vector.load %arg9[%c0_185, %c0_186, %c0_187] : memref<2x32x96xf32, #tpu.memory_space<vmem>>, vector<1x32x96xf32>
    %419 = vector.shape_cast %418 : vector<1x32x96xf32> to vector<32x96xf32>
    %cst_188 = arith.constant dense<0.000000e+00> : vector<12x96xf32>
    %420 = tpu.matmul %417, %419, %cst_188 {dimension_numbers = #tpu.dot_dimension_numbers<[1], [0], [0], [1], [0, 0, 1, 1], [], []>} : vector<12x32xf32>, vector<32x96xf32>, vector<12x96xf32> -> vector<12x96xf32>
    %421 = vector.extract_strided_slice %420 {offsets = [0, 0], sizes = [12, 32], strides = [1, 1]} : vector<12x96xf32> to vector<12x32xf32>
    %422 = vector.extract_strided_slice %420 {offsets = [0, 32], sizes = [12, 32], strides = [1, 1]} : vector<12x96xf32> to vector<12x32xf32>
    %423 = vector.extract_strided_slice %420 {offsets = [0, 64], sizes = [12, 32], strides = [1, 1]} : vector<12x96xf32> to vector<12x32xf32>
    %424 = arith.mulf %421, %0 : vector<12x32xf32>
    %cst_189 = arith.constant dense<0.000000e+00> : vector<12x32xf32>
    %425 = tpu.matmul %421, %2, %cst_189 {dimension_numbers = #tpu.dot_dimension_numbers<[1], [0], [0], [1], [0, 0, 1, 1], [], []>} : vector<12x32xf32>, vector<32x32xf32>, vector<12x32xf32> -> vector<12x32xf32>
    %426 = arith.mulf %425, %1 : vector<12x32xf32>
    %427 = arith.addf %424, %426 : vector<12x32xf32>
    %428 = arith.mulf %422, %0 : vector<12x32xf32>
    %cst_190 = arith.constant dense<0.000000e+00> : vector<12x32xf32>
    %429 = tpu.matmul %422, %2, %cst_190 {dimension_numbers = #tpu.dot_dimension_numbers<[1], [0], [0], [1], [0, 0, 1, 1], [], []>} : vector<12x32xf32>, vector<32x32xf32>, vector<12x32xf32> -> vector<12x32xf32>
    %430 = arith.mulf %429, %1 : vector<12x32xf32>
    %431 = arith.addf %428, %430 : vector<12x32xf32>
    %c0_191 = arith.constant 0 : index
    %c0_192 = arith.constant 0 : index
    %c0_193 = arith.constant 0 : index
    %432 = vector.load %arg10[%c0_191, %c0_192, %c0_193] : memref<2x32x32xf32, #tpu.memory_space<vmem>>, vector<1x32x32xf32>
    %433 = vector.shape_cast %432 : vector<1x32x32xf32> to vector<32x32xf32>
    %434 = vector.extract_strided_slice %427 {offsets = [0, 0], sizes = [12, 8], strides = [1, 1]} : vector<12x32xf32> to vector<12x8xf32>
    %435 = vector.extract_strided_slice %431 {offsets = [0, 0], sizes = [12, 8], strides = [1, 1]} : vector<12x32xf32> to vector<12x8xf32>
    %436 = vector.extract_strided_slice %423 {offsets = [0, 0], sizes = [12, 8], strides = [1, 1]} : vector<12x32xf32> to vector<12x8xf32>
    "tpu.trace_start"() <{level = 10 : i32, message = "td,sd->ts"}> : () -> ()
    %cst_194 = arith.constant dense<0.000000e+00> : vector<12x12xf32>
    %437 = tpu.matmul %434, %435, %cst_194 {dimension_numbers = #tpu.dot_dimension_numbers<[1], [1], [0], [0], [0, 0, 1, 0], [], []>} : vector<12x8xf32>, vector<12x8xf32>, vector<12x12xf32> -> vector<12x12xf32>
    "tpu.trace_stop"() : () -> ()
    %cst_195 = arith.constant 0.353553385 : f32
    %438 = vector.broadcast %cst_195 : f32 to vector<12x12xf32>
    %439 = arith.mulf %437, %438 : vector<12x12xf32>
    %440 = arith.addf %439, %365 : vector<12x12xf32>
    %cst_196 = arith.constant dense<0xFF800000> : vector<12xf32>
    %441 = vector.multi_reduction <maximumf>, %440, %cst_196 [1] : vector<12x12xf32> to vector<12xf32>
    %442 = vector.shape_cast %441 : vector<12xf32> to vector<12x1xf32>
    %443 = vector.broadcast %442 : vector<12x1xf32> to vector<12x12xf32>
    %444 = arith.subf %440, %443 : vector<12x12xf32>
    %445 = math.exp %444 : vector<12x12xf32>
    %cst_197 = arith.constant dense<0.000000e+00> : vector<12xf32>
    %446 = vector.multi_reduction <add>, %445, %cst_197 [1] : vector<12x12xf32> to vector<12xf32>
    %447 = vector.shape_cast %446 : vector<12xf32> to vector<12x1xf32>
    %448 = vector.broadcast %447 : vector<12x1xf32> to vector<12x12xf32>
    %449 = arith.divf %445, %448 : vector<12x12xf32>
    %cst_198 = arith.constant dense<0.000000e+00> : vector<12x8xf32>
    %450 = tpu.matmul %449, %436, %cst_198 {dimension_numbers = #tpu.dot_dimension_numbers<[1], [0], [0], [1], [0, 0, 1, 1], [], []>} : vector<12x12xf32>, vector<12x8xf32>, vector<12x8xf32> -> vector<12x8xf32>
    %451 = vector.extract_strided_slice %433 {offsets = [0, 0], sizes = [8, 32], strides = [1, 1]} : vector<32x32xf32> to vector<8x32xf32>
    %cst_199 = arith.constant dense<0.000000e+00> : vector<12x32xf32>
    %452 = tpu.matmul %450, %451, %cst_199 {dimension_numbers = #tpu.dot_dimension_numbers<[1], [0], [0], [1], [0, 0, 1, 1], [], []>} : vector<12x8xf32>, vector<8x32xf32>, vector<12x32xf32> -> vector<12x32xf32>
    %453 = vector.extract_strided_slice %427 {offsets = [0, 8], sizes = [12, 8], strides = [1, 1]} : vector<12x32xf32> to vector<12x8xf32>
    %454 = vector.extract_strided_slice %431 {offsets = [0, 8], sizes = [12, 8], strides = [1, 1]} : vector<12x32xf32> to vector<12x8xf32>
    %455 = vector.extract_strided_slice %423 {offsets = [0, 8], sizes = [12, 8], strides = [1, 1]} : vector<12x32xf32> to vector<12x8xf32>
    "tpu.trace_start"() <{level = 10 : i32, message = "td,sd->ts"}> : () -> ()
    %cst_200 = arith.constant dense<0.000000e+00> : vector<12x12xf32>
    %456 = tpu.matmul %453, %454, %cst_200 {dimension_numbers = #tpu.dot_dimension_numbers<[1], [1], [0], [0], [0, 0, 1, 0], [], []>} : vector<12x8xf32>, vector<12x8xf32>, vector<12x12xf32> -> vector<12x12xf32>
    "tpu.trace_stop"() : () -> ()
    %cst_201 = arith.constant 0.353553385 : f32
    %457 = vector.broadcast %cst_201 : f32 to vector<12x12xf32>
    %458 = arith.mulf %456, %457 : vector<12x12xf32>
    %459 = arith.addf %458, %365 : vector<12x12xf32>
    %cst_202 = arith.constant dense<0xFF800000> : vector<12xf32>
    %460 = vector.multi_reduction <maximumf>, %459, %cst_202 [1] : vector<12x12xf32> to vector<12xf32>
    %461 = vector.shape_cast %460 : vector<12xf32> to vector<12x1xf32>
    %462 = vector.broadcast %461 : vector<12x1xf32> to vector<12x12xf32>
    %463 = arith.subf %459, %462 : vector<12x12xf32>
    %464 = math.exp %463 : vector<12x12xf32>
    %cst_203 = arith.constant dense<0.000000e+00> : vector<12xf32>
    %465 = vector.multi_reduction <add>, %464, %cst_203 [1] : vector<12x12xf32> to vector<12xf32>
    %466 = vector.shape_cast %465 : vector<12xf32> to vector<12x1xf32>
    %467 = vector.broadcast %466 : vector<12x1xf32> to vector<12x12xf32>
    %468 = arith.divf %464, %467 : vector<12x12xf32>
    %cst_204 = arith.constant dense<0.000000e+00> : vector<12x8xf32>
    %469 = tpu.matmul %468, %455, %cst_204 {dimension_numbers = #tpu.dot_dimension_numbers<[1], [0], [0], [1], [0, 0, 1, 1], [], []>} : vector<12x12xf32>, vector<12x8xf32>, vector<12x8xf32> -> vector<12x8xf32>
    %470 = vector.extract_strided_slice %433 {offsets = [8, 0], sizes = [8, 32], strides = [1, 1]} : vector<32x32xf32> to vector<8x32xf32>
    %cst_205 = arith.constant dense<0.000000e+00> : vector<12x32xf32>
    %471 = tpu.matmul %469, %470, %cst_205 {dimension_numbers = #tpu.dot_dimension_numbers<[1], [0], [0], [1], [0, 0, 1, 1], [], []>} : vector<12x8xf32>, vector<8x32xf32>, vector<12x32xf32> -> vector<12x32xf32>
    %472 = arith.addf %452, %471 : vector<12x32xf32>
    %473 = vector.extract_strided_slice %427 {offsets = [0, 16], sizes = [12, 8], strides = [1, 1]} : vector<12x32xf32> to vector<12x8xf32>
    %474 = vector.extract_strided_slice %431 {offsets = [0, 16], sizes = [12, 8], strides = [1, 1]} : vector<12x32xf32> to vector<12x8xf32>
    %475 = vector.extract_strided_slice %423 {offsets = [0, 16], sizes = [12, 8], strides = [1, 1]} : vector<12x32xf32> to vector<12x8xf32>
    "tpu.trace_start"() <{level = 10 : i32, message = "td,sd->ts"}> : () -> ()
    %cst_206 = arith.constant dense<0.000000e+00> : vector<12x12xf32>
    %476 = tpu.matmul %473, %474, %cst_206 {dimension_numbers = #tpu.dot_dimension_numbers<[1], [1], [0], [0], [0, 0, 1, 0], [], []>} : vector<12x8xf32>, vector<12x8xf32>, vector<12x12xf32> -> vector<12x12xf32>
    "tpu.trace_stop"() : () -> ()
    %cst_207 = arith.constant 0.353553385 : f32
    %477 = vector.broadcast %cst_207 : f32 to vector<12x12xf32>
    %478 = arith.mulf %476, %477 : vector<12x12xf32>
    %479 = arith.addf %478, %365 : vector<12x12xf32>
    %cst_208 = arith.constant dense<0xFF800000> : vector<12xf32>
    %480 = vector.multi_reduction <maximumf>, %479, %cst_208 [1] : vector<12x12xf32> to vector<12xf32>
    %481 = vector.shape_cast %480 : vector<12xf32> to vector<12x1xf32>
    %482 = vector.broadcast %481 : vector<12x1xf32> to vector<12x12xf32>
    %483 = arith.subf %479, %482 : vector<12x12xf32>
    %484 = math.exp %483 : vector<12x12xf32>
    %cst_209 = arith.constant dense<0.000000e+00> : vector<12xf32>
    %485 = vector.multi_reduction <add>, %484, %cst_209 [1] : vector<12x12xf32> to vector<12xf32>
    %486 = vector.shape_cast %485 : vector<12xf32> to vector<12x1xf32>
    %487 = vector.broadcast %486 : vector<12x1xf32> to vector<12x12xf32>
    %488 = arith.divf %484, %487 : vector<12x12xf32>
    %cst_210 = arith.constant dense<0.000000e+00> : vector<12x8xf32>
    %489 = tpu.matmul %488, %475, %cst_210 {dimension_numbers = #tpu.dot_dimension_numbers<[1], [0], [0], [1], [0, 0, 1, 1], [], []>} : vector<12x12xf32>, vector<12x8xf32>, vector<12x8xf32> -> vector<12x8xf32>
    %490 = vector.extract_strided_slice %433 {offsets = [16, 0], sizes = [8, 32], strides = [1, 1]} : vector<32x32xf32> to vector<8x32xf32>
    %cst_211 = arith.constant dense<0.000000e+00> : vector<12x32xf32>
    %491 = tpu.matmul %489, %490, %cst_211 {dimension_numbers = #tpu.dot_dimension_numbers<[1], [0], [0], [1], [0, 0, 1, 1], [], []>} : vector<12x8xf32>, vector<8x32xf32>, vector<12x32xf32> -> vector<12x32xf32>
    %492 = arith.addf %472, %491 : vector<12x32xf32>
    %493 = vector.extract_strided_slice %427 {offsets = [0, 24], sizes = [12, 8], strides = [1, 1]} : vector<12x32xf32> to vector<12x8xf32>
    %494 = vector.extract_strided_slice %431 {offsets = [0, 24], sizes = [12, 8], strides = [1, 1]} : vector<12x32xf32> to vector<12x8xf32>
    %495 = vector.extract_strided_slice %423 {offsets = [0, 24], sizes = [12, 8], strides = [1, 1]} : vector<12x32xf32> to vector<12x8xf32>
    "tpu.trace_start"() <{level = 10 : i32, message = "td,sd->ts"}> : () -> ()
    %cst_212 = arith.constant dense<0.000000e+00> : vector<12x12xf32>
    %496 = tpu.matmul %493, %494, %cst_212 {dimension_numbers = #tpu.dot_dimension_numbers<[1], [1], [0], [0], [0, 0, 1, 0], [], []>} : vector<12x8xf32>, vector<12x8xf32>, vector<12x12xf32> -> vector<12x12xf32>
    "tpu.trace_stop"() : () -> ()
    %cst_213 = arith.constant 0.353553385 : f32
    %497 = vector.broadcast %cst_213 : f32 to vector<12x12xf32>
    %498 = arith.mulf %496, %497 : vector<12x12xf32>
    %499 = arith.addf %498, %365 : vector<12x12xf32>
    %cst_214 = arith.constant dense<0xFF800000> : vector<12xf32>
    %500 = vector.multi_reduction <maximumf>, %499, %cst_214 [1] : vector<12x12xf32> to vector<12xf32>
    %501 = vector.shape_cast %500 : vector<12xf32> to vector<12x1xf32>
    %502 = vector.broadcast %501 : vector<12x1xf32> to vector<12x12xf32>
    %503 = arith.subf %499, %502 : vector<12x12xf32>
    %504 = math.exp %503 : vector<12x12xf32>
    %cst_215 = arith.constant dense<0.000000e+00> : vector<12xf32>
    %505 = vector.multi_reduction <add>, %504, %cst_215 [1] : vector<12x12xf32> to vector<12xf32>
    %506 = vector.shape_cast %505 : vector<12xf32> to vector<12x1xf32>
    %507 = vector.broadcast %506 : vector<12x1xf32> to vector<12x12xf32>
    %508 = arith.divf %504, %507 : vector<12x12xf32>
    %cst_216 = arith.constant dense<0.000000e+00> : vector<12x8xf32>
    %509 = tpu.matmul %508, %495, %cst_216 {dimension_numbers = #tpu.dot_dimension_numbers<[1], [0], [0], [1], [0, 0, 1, 1], [], []>} : vector<12x12xf32>, vector<12x8xf32>, vector<12x8xf32> -> vector<12x8xf32>
    %510 = vector.extract_strided_slice %433 {offsets = [24, 0], sizes = [8, 32], strides = [1, 1]} : vector<32x32xf32> to vector<8x32xf32>
    %cst_217 = arith.constant dense<0.000000e+00> : vector<12x32xf32>
    %511 = tpu.matmul %509, %510, %cst_217 {dimension_numbers = #tpu.dot_dimension_numbers<[1], [0], [0], [1], [0, 0, 1, 1], [], []>} : vector<12x8xf32>, vector<8x32xf32>, vector<12x32xf32> -> vector<12x32xf32>
    %512 = arith.addf %492, %511 : vector<12x32xf32>
    %c0_218 = arith.constant 0 : index
    %c0_219 = arith.constant 0 : index
    %c0_220 = arith.constant 0 : index
    %513 = vector.load %arg11[%c0_218, %c0_219, %c0_220] : memref<2x32x128xf32, #tpu.memory_space<vmem>>, vector<1x32x128xf32>
    %514 = vector.shape_cast %513 : vector<1x32x128xf32> to vector<32x128xf32>
    %cst_221 = arith.constant dense<0.000000e+00> : vector<12x128xf32>
    %515 = tpu.matmul %417, %514, %cst_221 {dimension_numbers = #tpu.dot_dimension_numbers<[1], [0], [0], [1], [0, 0, 1, 1], [], []>} : vector<12x32xf32>, vector<32x128xf32>, vector<12x128xf32> -> vector<12x128xf32>
    %c0_222 = arith.constant 0 : index
    %c0_223 = arith.constant 0 : index
    %c0_224 = arith.constant 0 : index
    %516 = vector.load %arg12[%c0_222, %c0_223, %c0_224] : memref<2x1x128xf32, #tpu.memory_space<vmem>>, vector<1x1x128xf32>
    %517 = vector.shape_cast %516 : vector<1x1x128xf32> to vector<1x128xf32>
    %518 = vector.broadcast %517 : vector<1x128xf32> to vector<12x128xf32>
    %519 = arith.addf %515, %518 : vector<12x128xf32>
    %cst_225 = arith.constant 5.000000e-01 : f32
    %520 = vector.broadcast %cst_225 : f32 to vector<12x128xf32>
    %521 = arith.mulf %520, %519 : vector<12x128xf32>
    %cst_226 = arith.constant 4.471500e-02 : f32
    %522 = vector.broadcast %cst_226 : f32 to vector<12x128xf32>
    %523 = arith.mulf %522, %519 : vector<12x128xf32>
    %524 = arith.mulf %523, %519 : vector<12x128xf32>
    %525 = arith.mulf %524, %519 : vector<12x128xf32>
    %526 = arith.addf %519, %525 : vector<12x128xf32>
    %cst_227 = arith.constant 0.797884583 : f32
    %527 = vector.broadcast %cst_227 : f32 to vector<12x128xf32>
    %528 = arith.mulf %527, %526 : vector<12x128xf32>
    %529 = math.tanh %528 : vector<12x128xf32>
    %cst_228 = arith.constant 1.000000e+00 : f32
    %530 = vector.broadcast %cst_228 : f32 to vector<12x128xf32>
    %531 = arith.addf %530, %529 : vector<12x128xf32>
    %532 = arith.mulf %521, %531 : vector<12x128xf32>
    %c0_229 = arith.constant 0 : index
    %c0_230 = arith.constant 0 : index
    %c0_231 = arith.constant 0 : index
    %533 = vector.load %arg13[%c0_229, %c0_230, %c0_231] : memref<2x128x32xf32, #tpu.memory_space<vmem>>, vector<1x128x32xf32>
    %534 = vector.shape_cast %533 : vector<1x128x32xf32> to vector<128x32xf32>
    %cst_232 = arith.constant dense<0.000000e+00> : vector<12x32xf32>
    %535 = tpu.matmul %532, %534, %cst_232 {dimension_numbers = #tpu.dot_dimension_numbers<[1], [0], [0], [1], [0, 0, 1, 1], [], []>} : vector<12x128xf32>, vector<128x32xf32>, vector<12x32xf32> -> vector<12x32xf32>
    %c0_233 = arith.constant 0 : index
    %c0_234 = arith.constant 0 : index
    %c0_235 = arith.constant 0 : index
    %536 = vector.load %arg14[%c0_233, %c0_234, %c0_235] : memref<2x1x32xf32, #tpu.memory_space<vmem>>, vector<1x1x32xf32>
    %537 = vector.shape_cast %536 : vector<1x1x32xf32> to vector<1x32xf32>
    %538 = vector.broadcast %537 : vector<1x32xf32> to vector<12x32xf32>
    %539 = arith.addf %535, %538 : vector<12x32xf32>
    %540 = arith.addf %512, %539 : vector<12x32xf32>
    %541 = arith.addf %540, %391 : vector<12x32xf32>
    %c1_236 = arith.constant 1 : index
    %c0_237 = arith.constant 0 : index
    %c0_238 = arith.constant 0 : index
    %542 = vector.load %arg7[%c1_236, %c0_237, %c0_238] : memref<2x1x32xf32, #tpu.memory_space<vmem>>, vector<1x1x32xf32>
    %543 = vector.shape_cast %542 : vector<1x1x32xf32> to vector<1x32xf32>
    %c1_239 = arith.constant 1 : index
    %c0_240 = arith.constant 0 : index
    %c0_241 = arith.constant 0 : index
    %544 = vector.load %arg8[%c1_239, %c0_240, %c0_241] : memref<2x1x32xf32, #tpu.memory_space<vmem>>, vector<1x1x32xf32>
    %545 = vector.shape_cast %544 : vector<1x1x32xf32> to vector<1x32xf32>
    %cst_242 = arith.constant dense<0.000000e+00> : vector<12xf32>
    %546 = vector.multi_reduction <add>, %541, %cst_242 [1] : vector<12x32xf32> to vector<12xf32>
    %547 = vector.shape_cast %546 : vector<12xf32> to vector<12x1xf32>
    %cst_243 = arith.constant 3.200000e+01 : f32
    %548 = vector.broadcast %cst_243 : f32 to vector<12x1xf32>
    %549 = arith.divf %547, %548 : vector<12x1xf32>
    %550 = vector.broadcast %549 : vector<12x1xf32> to vector<12x32xf32>
    %551 = arith.subf %541, %550 : vector<12x32xf32>
    %552 = arith.mulf %551, %551 : vector<12x32xf32>
    %cst_244 = arith.constant dense<0.000000e+00> : vector<12xf32>
    %553 = vector.multi_reduction <add>, %552, %cst_244 [1] : vector<12x32xf32> to vector<12xf32>
    %554 = vector.shape_cast %553 : vector<12xf32> to vector<12x1xf32>
    %cst_245 = arith.constant 3.200000e+01 : f32
    %555 = vector.broadcast %cst_245 : f32 to vector<12x1xf32>
    %556 = arith.divf %554, %555 : vector<12x1xf32>
    %557 = vector.broadcast %549 : vector<12x1xf32> to vector<12x32xf32>
    %558 = arith.subf %541, %557 : vector<12x32xf32>
    %cst_246 = arith.constant 9.99999974E-6 : f32
    %559 = vector.broadcast %cst_246 : f32 to vector<12x1xf32>
    %560 = arith.addf %556, %559 : vector<12x1xf32>
    %561 = math.rsqrt %560 : vector<12x1xf32>
    %562 = vector.broadcast %561 : vector<12x1xf32> to vector<12x32xf32>
    %563 = arith.mulf %558, %562 : vector<12x32xf32>
    %564 = vector.broadcast %543 : vector<1x32xf32> to vector<12x32xf32>
    %565 = arith.mulf %563, %564 : vector<12x32xf32>
    %566 = vector.broadcast %545 : vector<1x32xf32> to vector<12x32xf32>
    %567 = arith.addf %565, %566 : vector<12x32xf32>
    %c1_247 = arith.constant 1 : index
    %c0_248 = arith.constant 0 : index
    %c0_249 = arith.constant 0 : index
    %568 = vector.load %arg9[%c1_247, %c0_248, %c0_249] : memref<2x32x96xf32, #tpu.memory_space<vmem>>, vector<1x32x96xf32>
    %569 = vector.shape_cast %568 : vector<1x32x96xf32> to vector<32x96xf32>
    %cst_250 = arith.constant dense<0.000000e+00> : vector<12x96xf32>
    %570 = tpu.matmul %567, %569, %cst_250 {dimension_numbers = #tpu.dot_dimension_numbers<[1], [0], [0], [1], [0, 0, 1, 1], [], []>} : vector<12x32xf32>, vector<32x96xf32>, vector<12x96xf32> -> vector<12x96xf32>
    %571 = vector.extract_strided_slice %570 {offsets = [0, 0], sizes = [12, 32], strides = [1, 1]} : vector<12x96xf32> to vector<12x32xf32>
    %572 = vector.extract_strided_slice %570 {offsets = [0, 32], sizes = [12, 32], strides = [1, 1]} : vector<12x96xf32> to vector<12x32xf32>
    %573 = vector.extract_strided_slice %570 {offsets = [0, 64], sizes = [12, 32], strides = [1, 1]} : vector<12x96xf32> to vector<12x32xf32>
    %574 = arith.mulf %571, %0 : vector<12x32xf32>
    %cst_251 = arith.constant dense<0.000000e+00> : vector<12x32xf32>
    %575 = tpu.matmul %571, %2, %cst_251 {dimension_numbers = #tpu.dot_dimension_numbers<[1], [0], [0], [1], [0, 0, 1, 1], [], []>} : vector<12x32xf32>, vector<32x32xf32>, vector<12x32xf32> -> vector<12x32xf32>
    %576 = arith.mulf %575, %1 : vector<12x32xf32>
    %577 = arith.addf %574, %576 : vector<12x32xf32>
    %578 = arith.mulf %572, %0 : vector<12x32xf32>
    %cst_252 = arith.constant dense<0.000000e+00> : vector<12x32xf32>
    %579 = tpu.matmul %572, %2, %cst_252 {dimension_numbers = #tpu.dot_dimension_numbers<[1], [0], [0], [1], [0, 0, 1, 1], [], []>} : vector<12x32xf32>, vector<32x32xf32>, vector<12x32xf32> -> vector<12x32xf32>
    %580 = arith.mulf %579, %1 : vector<12x32xf32>
    %581 = arith.addf %578, %580 : vector<12x32xf32>
    %c1_253 = arith.constant 1 : index
    %c0_254 = arith.constant 0 : index
    %c0_255 = arith.constant 0 : index
    %582 = vector.load %arg10[%c1_253, %c0_254, %c0_255] : memref<2x32x32xf32, #tpu.memory_space<vmem>>, vector<1x32x32xf32>
    %583 = vector.shape_cast %582 : vector<1x32x32xf32> to vector<32x32xf32>
    %584 = vector.extract_strided_slice %577 {offsets = [0, 0], sizes = [12, 8], strides = [1, 1]} : vector<12x32xf32> to vector<12x8xf32>
    %585 = vector.extract_strided_slice %581 {offsets = [0, 0], sizes = [12, 8], strides = [1, 1]} : vector<12x32xf32> to vector<12x8xf32>
    %586 = vector.extract_strided_slice %573 {offsets = [0, 0], sizes = [12, 8], strides = [1, 1]} : vector<12x32xf32> to vector<12x8xf32>
    "tpu.trace_start"() <{level = 10 : i32, message = "td,sd->ts"}> : () -> ()
    %cst_256 = arith.constant dense<0.000000e+00> : vector<12x12xf32>
    %587 = tpu.matmul %584, %585, %cst_256 {dimension_numbers = #tpu.dot_dimension_numbers<[1], [1], [0], [0], [0, 0, 1, 0], [], []>} : vector<12x8xf32>, vector<12x8xf32>, vector<12x12xf32> -> vector<12x12xf32>
    "tpu.trace_stop"() : () -> ()
    %cst_257 = arith.constant 0.353553385 : f32
    %588 = vector.broadcast %cst_257 : f32 to vector<12x12xf32>
    %589 = arith.mulf %587, %588 : vector<12x12xf32>
    %590 = arith.addf %589, %365 : vector<12x12xf32>
    %cst_258 = arith.constant dense<0xFF800000> : vector<12xf32>
    %591 = vector.multi_reduction <maximumf>, %590, %cst_258 [1] : vector<12x12xf32> to vector<12xf32>
    %592 = vector.shape_cast %591 : vector<12xf32> to vector<12x1xf32>
    %593 = vector.broadcast %592 : vector<12x1xf32> to vector<12x12xf32>
    %594 = arith.subf %590, %593 : vector<12x12xf32>
    %595 = math.exp %594 : vector<12x12xf32>
    %cst_259 = arith.constant dense<0.000000e+00> : vector<12xf32>
    %596 = vector.multi_reduction <add>, %595, %cst_259 [1] : vector<12x12xf32> to vector<12xf32>
    %597 = vector.shape_cast %596 : vector<12xf32> to vector<12x1xf32>
    %598 = vector.broadcast %597 : vector<12x1xf32> to vector<12x12xf32>
    %599 = arith.divf %595, %598 : vector<12x12xf32>
    %cst_260 = arith.constant dense<0.000000e+00> : vector<12x8xf32>
    %600 = tpu.matmul %599, %586, %cst_260 {dimension_numbers = #tpu.dot_dimension_numbers<[1], [0], [0], [1], [0, 0, 1, 1], [], []>} : vector<12x12xf32>, vector<12x8xf32>, vector<12x8xf32> -> vector<12x8xf32>
    %601 = vector.extract_strided_slice %583 {offsets = [0, 0], sizes = [8, 32], strides = [1, 1]} : vector<32x32xf32> to vector<8x32xf32>
    %cst_261 = arith.constant dense<0.000000e+00> : vector<12x32xf32>
    %602 = tpu.matmul %600, %601, %cst_261 {dimension_numbers = #tpu.dot_dimension_numbers<[1], [0], [0], [1], [0, 0, 1, 1], [], []>} : vector<12x8xf32>, vector<8x32xf32>, vector<12x32xf32> -> vector<12x32xf32>
    %603 = vector.extract_strided_slice %577 {offsets = [0, 8], sizes = [12, 8], strides = [1, 1]} : vector<12x32xf32> to vector<12x8xf32>
    %604 = vector.extract_strided_slice %581 {offsets = [0, 8], sizes = [12, 8], strides = [1, 1]} : vector<12x32xf32> to vector<12x8xf32>
    %605 = vector.extract_strided_slice %573 {offsets = [0, 8], sizes = [12, 8], strides = [1, 1]} : vector<12x32xf32> to vector<12x8xf32>
    "tpu.trace_start"() <{level = 10 : i32, message = "td,sd->ts"}> : () -> ()
    %cst_262 = arith.constant dense<0.000000e+00> : vector<12x12xf32>
    %606 = tpu.matmul %603, %604, %cst_262 {dimension_numbers = #tpu.dot_dimension_numbers<[1], [1], [0], [0], [0, 0, 1, 0], [], []>} : vector<12x8xf32>, vector<12x8xf32>, vector<12x12xf32> -> vector<12x12xf32>
    "tpu.trace_stop"() : () -> ()
    %cst_263 = arith.constant 0.353553385 : f32
    %607 = vector.broadcast %cst_263 : f32 to vector<12x12xf32>
    %608 = arith.mulf %606, %607 : vector<12x12xf32>
    %609 = arith.addf %608, %365 : vector<12x12xf32>
    %cst_264 = arith.constant dense<0xFF800000> : vector<12xf32>
    %610 = vector.multi_reduction <maximumf>, %609, %cst_264 [1] : vector<12x12xf32> to vector<12xf32>
    %611 = vector.shape_cast %610 : vector<12xf32> to vector<12x1xf32>
    %612 = vector.broadcast %611 : vector<12x1xf32> to vector<12x12xf32>
    %613 = arith.subf %609, %612 : vector<12x12xf32>
    %614 = math.exp %613 : vector<12x12xf32>
    %cst_265 = arith.constant dense<0.000000e+00> : vector<12xf32>
    %615 = vector.multi_reduction <add>, %614, %cst_265 [1] : vector<12x12xf32> to vector<12xf32>
    %616 = vector.shape_cast %615 : vector<12xf32> to vector<12x1xf32>
    %617 = vector.broadcast %616 : vector<12x1xf32> to vector<12x12xf32>
    %618 = arith.divf %614, %617 : vector<12x12xf32>
    %cst_266 = arith.constant dense<0.000000e+00> : vector<12x8xf32>
    %619 = tpu.matmul %618, %605, %cst_266 {dimension_numbers = #tpu.dot_dimension_numbers<[1], [0], [0], [1], [0, 0, 1, 1], [], []>} : vector<12x12xf32>, vector<12x8xf32>, vector<12x8xf32> -> vector<12x8xf32>
    %620 = vector.extract_strided_slice %583 {offsets = [8, 0], sizes = [8, 32], strides = [1, 1]} : vector<32x32xf32> to vector<8x32xf32>
    %cst_267 = arith.constant dense<0.000000e+00> : vector<12x32xf32>
    %621 = tpu.matmul %619, %620, %cst_267 {dimension_numbers = #tpu.dot_dimension_numbers<[1], [0], [0], [1], [0, 0, 1, 1], [], []>} : vector<12x8xf32>, vector<8x32xf32>, vector<12x32xf32> -> vector<12x32xf32>
    %622 = arith.addf %602, %621 : vector<12x32xf32>
    %623 = vector.extract_strided_slice %577 {offsets = [0, 16], sizes = [12, 8], strides = [1, 1]} : vector<12x32xf32> to vector<12x8xf32>
    %624 = vector.extract_strided_slice %581 {offsets = [0, 16], sizes = [12, 8], strides = [1, 1]} : vector<12x32xf32> to vector<12x8xf32>
    %625 = vector.extract_strided_slice %573 {offsets = [0, 16], sizes = [12, 8], strides = [1, 1]} : vector<12x32xf32> to vector<12x8xf32>
    "tpu.trace_start"() <{level = 10 : i32, message = "td,sd->ts"}> : () -> ()
    %cst_268 = arith.constant dense<0.000000e+00> : vector<12x12xf32>
    %626 = tpu.matmul %623, %624, %cst_268 {dimension_numbers = #tpu.dot_dimension_numbers<[1], [1], [0], [0], [0, 0, 1, 0], [], []>} : vector<12x8xf32>, vector<12x8xf32>, vector<12x12xf32> -> vector<12x12xf32>
    "tpu.trace_stop"() : () -> ()
    %cst_269 = arith.constant 0.353553385 : f32
    %627 = vector.broadcast %cst_269 : f32 to vector<12x12xf32>
    %628 = arith.mulf %626, %627 : vector<12x12xf32>
    %629 = arith.addf %628, %365 : vector<12x12xf32>
    %cst_270 = arith.constant dense<0xFF800000> : vector<12xf32>
    %630 = vector.multi_reduction <maximumf>, %629, %cst_270 [1] : vector<12x12xf32> to vector<12xf32>
    %631 = vector.shape_cast %630 : vector<12xf32> to vector<12x1xf32>
    %632 = vector.broadcast %631 : vector<12x1xf32> to vector<12x12xf32>
    %633 = arith.subf %629, %632 : vector<12x12xf32>
    %634 = math.exp %633 : vector<12x12xf32>
    %cst_271 = arith.constant dense<0.000000e+00> : vector<12xf32>
    %635 = vector.multi_reduction <add>, %634, %cst_271 [1] : vector<12x12xf32> to vector<12xf32>
    %636 = vector.shape_cast %635 : vector<12xf32> to vector<12x1xf32>
    %637 = vector.broadcast %636 : vector<12x1xf32> to vector<12x12xf32>
    %638 = arith.divf %634, %637 : vector<12x12xf32>
    %cst_272 = arith.constant dense<0.000000e+00> : vector<12x8xf32>
    %639 = tpu.matmul %638, %625, %cst_272 {dimension_numbers = #tpu.dot_dimension_numbers<[1], [0], [0], [1], [0, 0, 1, 1], [], []>} : vector<12x12xf32>, vector<12x8xf32>, vector<12x8xf32> -> vector<12x8xf32>
    %640 = vector.extract_strided_slice %583 {offsets = [16, 0], sizes = [8, 32], strides = [1, 1]} : vector<32x32xf32> to vector<8x32xf32>
    %cst_273 = arith.constant dense<0.000000e+00> : vector<12x32xf32>
    %641 = tpu.matmul %639, %640, %cst_273 {dimension_numbers = #tpu.dot_dimension_numbers<[1], [0], [0], [1], [0, 0, 1, 1], [], []>} : vector<12x8xf32>, vector<8x32xf32>, vector<12x32xf32> -> vector<12x32xf32>
    %642 = arith.addf %622, %641 : vector<12x32xf32>
    %643 = vector.extract_strided_slice %577 {offsets = [0, 24], sizes = [12, 8], strides = [1, 1]} : vector<12x32xf32> to vector<12x8xf32>
    %644 = vector.extract_strided_slice %581 {offsets = [0, 24], sizes = [12, 8], strides = [1, 1]} : vector<12x32xf32> to vector<12x8xf32>
    %645 = vector.extract_strided_slice %573 {offsets = [0, 24], sizes = [12, 8], strides = [1, 1]} : vector<12x32xf32> to vector<12x8xf32>
    "tpu.trace_start"() <{level = 10 : i32, message = "td,sd->ts"}> : () -> ()
    %cst_274 = arith.constant dense<0.000000e+00> : vector<12x12xf32>
    %646 = tpu.matmul %643, %644, %cst_274 {dimension_numbers = #tpu.dot_dimension_numbers<[1], [1], [0], [0], [0, 0, 1, 0], [], []>} : vector<12x8xf32>, vector<12x8xf32>, vector<12x12xf32> -> vector<12x12xf32>
    "tpu.trace_stop"() : () -> ()
    %cst_275 = arith.constant 0.353553385 : f32
    %647 = vector.broadcast %cst_275 : f32 to vector<12x12xf32>
    %648 = arith.mulf %646, %647 : vector<12x12xf32>
    %649 = arith.addf %648, %365 : vector<12x12xf32>
    %cst_276 = arith.constant dense<0xFF800000> : vector<12xf32>
    %650 = vector.multi_reduction <maximumf>, %649, %cst_276 [1] : vector<12x12xf32> to vector<12xf32>
    %651 = vector.shape_cast %650 : vector<12xf32> to vector<12x1xf32>
    %652 = vector.broadcast %651 : vector<12x1xf32> to vector<12x12xf32>
    %653 = arith.subf %649, %652 : vector<12x12xf32>
    %654 = math.exp %653 : vector<12x12xf32>
    %cst_277 = arith.constant dense<0.000000e+00> : vector<12xf32>
    %655 = vector.multi_reduction <add>, %654, %cst_277 [1] : vector<12x12xf32> to vector<12xf32>
    %656 = vector.shape_cast %655 : vector<12xf32> to vector<12x1xf32>
    %657 = vector.broadcast %656 : vector<12x1xf32> to vector<12x12xf32>
    %658 = arith.divf %654, %657 : vector<12x12xf32>
    %cst_278 = arith.constant dense<0.000000e+00> : vector<12x8xf32>
    %659 = tpu.matmul %658, %645, %cst_278 {dimension_numbers = #tpu.dot_dimension_numbers<[1], [0], [0], [1], [0, 0, 1, 1], [], []>} : vector<12x12xf32>, vector<12x8xf32>, vector<12x8xf32> -> vector<12x8xf32>
    %660 = vector.extract_strided_slice %583 {offsets = [24, 0], sizes = [8, 32], strides = [1, 1]} : vector<32x32xf32> to vector<8x32xf32>
    %cst_279 = arith.constant dense<0.000000e+00> : vector<12x32xf32>
    %661 = tpu.matmul %659, %660, %cst_279 {dimension_numbers = #tpu.dot_dimension_numbers<[1], [0], [0], [1], [0, 0, 1, 1], [], []>} : vector<12x8xf32>, vector<8x32xf32>, vector<12x32xf32> -> vector<12x32xf32>
    %662 = arith.addf %642, %661 : vector<12x32xf32>
    %c1_280 = arith.constant 1 : index
    %c0_281 = arith.constant 0 : index
    %c0_282 = arith.constant 0 : index
    %663 = vector.load %arg11[%c1_280, %c0_281, %c0_282] : memref<2x32x128xf32, #tpu.memory_space<vmem>>, vector<1x32x128xf32>
    %664 = vector.shape_cast %663 : vector<1x32x128xf32> to vector<32x128xf32>
    %cst_283 = arith.constant dense<0.000000e+00> : vector<12x128xf32>
    %665 = tpu.matmul %567, %664, %cst_283 {dimension_numbers = #tpu.dot_dimension_numbers<[1], [0], [0], [1], [0, 0, 1, 1], [], []>} : vector<12x32xf32>, vector<32x128xf32>, vector<12x128xf32> -> vector<12x128xf32>
    %c1_284 = arith.constant 1 : index
    %c0_285 = arith.constant 0 : index
    %c0_286 = arith.constant 0 : index
    %666 = vector.load %arg12[%c1_284, %c0_285, %c0_286] : memref<2x1x128xf32, #tpu.memory_space<vmem>>, vector<1x1x128xf32>
    %667 = vector.shape_cast %666 : vector<1x1x128xf32> to vector<1x128xf32>
    %668 = vector.broadcast %667 : vector<1x128xf32> to vector<12x128xf32>
    %669 = arith.addf %665, %668 : vector<12x128xf32>
    %cst_287 = arith.constant 5.000000e-01 : f32
    %670 = vector.broadcast %cst_287 : f32 to vector<12x128xf32>
    %671 = arith.mulf %670, %669 : vector<12x128xf32>
    %cst_288 = arith.constant 4.471500e-02 : f32
    %672 = vector.broadcast %cst_288 : f32 to vector<12x128xf32>
    %673 = arith.mulf %672, %669 : vector<12x128xf32>
    %674 = arith.mulf %673, %669 : vector<12x128xf32>
    %675 = arith.mulf %674, %669 : vector<12x128xf32>
    %676 = arith.addf %669, %675 : vector<12x128xf32>
    %cst_289 = arith.constant 0.797884583 : f32
    %677 = vector.broadcast %cst_289 : f32 to vector<12x128xf32>
    %678 = arith.mulf %677, %676 : vector<12x128xf32>
    %679 = math.tanh %678 : vector<12x128xf32>
    %cst_290 = arith.constant 1.000000e+00 : f32
    %680 = vector.broadcast %cst_290 : f32 to vector<12x128xf32>
    %681 = arith.addf %680, %679 : vector<12x128xf32>
    %682 = arith.mulf %671, %681 : vector<12x128xf32>
    %c1_291 = arith.constant 1 : index
    %c0_292 = arith.constant 0 : index
    %c0_293 = arith.constant 0 : index
    %683 = vector.load %arg13[%c1_291, %c0_292, %c0_293] : memref<2x128x32xf32, #tpu.memory_space<vmem>>, vector<1x128x32xf32>
    %684 = vector.shape_cast %683 : vector<1x128x32xf32> to vector<128x32xf32>
    %cst_294 = arith.constant dense<0.000000e+00> : vector<12x32xf32>
    %685 = tpu.matmul %682, %684, %cst_294 {dimension_numbers = #tpu.dot_dimension_numbers<[1], [0], [0], [1], [0, 0, 1, 1], [], []>} : vector<12x128xf32>, vector<128x32xf32>, vector<12x32xf32> -> vector<12x32xf32>
    %c1_295 = arith.constant 1 : index
    %c0_296 = arith.constant 0 : index
    %c0_297 = arith.constant 0 : index
    %686 = vector.load %arg14[%c1_295, %c0_296, %c0_297] : memref<2x1x32xf32, #tpu.memory_space<vmem>>, vector<1x1x32xf32>
    %687 = vector.shape_cast %686 : vector<1x1x32xf32> to vector<1x32xf32>
    %688 = vector.broadcast %687 : vector<1x32xf32> to vector<12x32xf32>
    %689 = arith.addf %685, %688 : vector<12x32xf32>
    %690 = arith.addf %662, %689 : vector<12x32xf32>
    %691 = arith.addf %690, %541 : vector<12x32xf32>
    %692 = vector.extract_strided_slice %691 {offsets = [8, 0], sizes = [4, 32], strides = [1, 1]} : vector<12x32xf32> to vector<4x32xf32>
    %c0_298 = arith.constant 0 : index
    %c0_299 = arith.constant 0 : index
    %693 = vector.load %arg15[%c0_298, %c0_299] : memref<1x32xf32, #tpu.memory_space<vmem>>, vector<1x32xf32>
    %c0_300 = arith.constant 0 : index
    %c0_301 = arith.constant 0 : index
    %694 = vector.load %arg16[%c0_300, %c0_301] : memref<1x32xf32, #tpu.memory_space<vmem>>, vector<1x32xf32>
    %cst_302 = arith.constant dense<0.000000e+00> : vector<4xf32>
    %695 = vector.multi_reduction <add>, %692, %cst_302 [1] : vector<4x32xf32> to vector<4xf32>
    %696 = vector.shape_cast %695 : vector<4xf32> to vector<4x1xf32>
    %cst_303 = arith.constant 3.200000e+01 : f32
    %697 = vector.broadcast %cst_303 : f32 to vector<4x1xf32>
    %698 = arith.divf %696, %697 : vector<4x1xf32>
    %699 = vector.broadcast %698 : vector<4x1xf32> to vector<4x32xf32>
    %700 = arith.subf %692, %699 : vector<4x32xf32>
    %701 = arith.mulf %700, %700 : vector<4x32xf32>
    %cst_304 = arith.constant dense<0.000000e+00> : vector<4xf32>
    %702 = vector.multi_reduction <add>, %701, %cst_304 [1] : vector<4x32xf32> to vector<4xf32>
    %703 = vector.shape_cast %702 : vector<4xf32> to vector<4x1xf32>
    %cst_305 = arith.constant 3.200000e+01 : f32
    %704 = vector.broadcast %cst_305 : f32 to vector<4x1xf32>
    %705 = arith.divf %703, %704 : vector<4x1xf32>
    %706 = vector.broadcast %698 : vector<4x1xf32> to vector<4x32xf32>
    %707 = arith.subf %692, %706 : vector<4x32xf32>
    %cst_306 = arith.constant 9.99999974E-6 : f32
    %708 = vector.broadcast %cst_306 : f32 to vector<4x1xf32>
    %709 = arith.addf %705, %708 : vector<4x1xf32>
    %710 = math.rsqrt %709 : vector<4x1xf32>
    %711 = vector.broadcast %710 : vector<4x1xf32> to vector<4x32xf32>
    %712 = arith.mulf %707, %711 : vector<4x32xf32>
    %713 = vector.broadcast %693 : vector<1x32xf32> to vector<4x32xf32>
    %714 = arith.mulf %712, %713 : vector<4x32xf32>
    %715 = vector.broadcast %694 : vector<1x32xf32> to vector<4x32xf32>
    %716 = arith.addf %714, %715 : vector<4x32xf32>
    %c0_307 = arith.constant 0 : index
    %c0_308 = arith.constant 0 : index
    %717 = vector.load %arg17[%c0_307, %c0_308] : memref<32x8xf32, #tpu.memory_space<vmem>>, vector<32x8xf32>
    %cst_309 = arith.constant dense<0.000000e+00> : vector<4x8xf32>
    %718 = tpu.matmul %716, %717, %cst_309 {dimension_numbers = #tpu.dot_dimension_numbers<[1], [0], [0], [1], [0, 0, 1, 1], [], []>} : vector<4x32xf32>, vector<32x8xf32>, vector<4x8xf32> -> vector<4x8xf32>
    %c0_310 = arith.constant 0 : index
    %c0_311 = arith.constant 0 : index
    %719 = vector.load %arg18[%c0_310, %c0_311] : memref<1x8xf32, #tpu.memory_space<vmem>>, vector<1x8xf32>
    %720 = vector.broadcast %719 : vector<1x8xf32> to vector<4x8xf32>
    %721 = arith.addf %718, %720 : vector<4x8xf32>
    %c1_312 = arith.constant 1 : index
    %c0_313 = arith.constant 0 : index
    %c0_314 = arith.constant 0 : index
    %722 = vector.load %arg19[%c1_312, %c0_313, %c0_314] : memref<2x4x8xf32, #tpu.memory_space<vmem>>, vector<1x4x8xf32>
    %723 = vector.shape_cast %722 : vector<1x4x8xf32> to vector<4x8xf32>
    %724 = vector.shape_cast %721 : vector<4x8xf32> to vector<1x4x8xf32>
    tpu.vector_store %arg19[%c1_312, %c0_313, %c0_314], %724 {strides = array<i32>} : memref<2x4x8xf32, #tpu.memory_space<vmem>>, vector<1x4x8xf32>,
    return
  }
}

</mosaic_0001>

<bundles_post_ra>
// kernel: tpu_custom_call.1
= control target key start
LH: loop header
LB: loop body
LE: loop exit
PB: predicated region body
PF: predicated region fallthrough
CT: control target
= control target key end

     0   :  { %s10648_s0 = inlined_call_operand.vmem [shape: f32[2,12,32], index: 0, kind: input, shape index: {}]   ;;  %s10649_s1 = inlined_call_operand.vmem [shape: f32[2,12,12], index: 1, kind: input, shape index: {}]   ;;  %s10650_s2 = inlined_call_operand.vmem [shape: f32[12,32], index: 2, kind: input, shape index: {}]   ;;  %s10651_s3 = inlined_call_operand.vmem [shape: f32[12,32], index: 3, kind: input, shape index: {}]   ;;  %s10652_s4 = inlined_call_operand.vmem [shape: f32[32,32], index: 4, kind: input, shape index: {}]   ;;  %s10653_s5 = inlined_call_operand.vmem [shape: f32[1,32], index: 5, kind: input, shape index: {}]   ;;  %s10654_s6 = inlined_call_operand.vmem [shape: f32[1,32], index: 6, kind: input, shape index: {}]   ;;  %s10655_s7 = inlined_call_operand.vmem [shape: f32[2,1,32], index: 7, kind: input, shape index: {}]   ;;  %s10656_s8 = inlined_call_operand.vmem [shape: f32[2,1,32], index: 8, kind: input, shape index: {}]   ;;  %s10657_s9 = inlined_call_operand.vmem [shape: f32[2,32,96], index: 9, kind: input, shape index: {}]   ;;  %s10658_s10 = inlined_call_operand.vmem [shape: f32[2,32,32], index: 10, kind: input, shape index: {}]   ;;  %s10659_s11 = inlined_call_operand.vmem [shape: f32[2,32,128], index: 11, kind: input, shape index: {}]   ;;  %s10660_s12 = inlined_call_operand.vmem [shape: f32[2,1,128], index: 12, kind: input, shape index: {}]   ;;  %s10661_s13 = inlined_call_operand.vmem [shape: f32[2,128,32], index: 13, kind: input, shape index: {}]   ;;  %s10662_s14 = inlined_call_operand.vmem [shape: f32[2,1,32], index: 14, kind: input, shape index: {}]   ;;  %s10663_s15 = inlined_call_operand.vmem [shape: f32[1,32], index: 15, kind: input, shape index: {}]   ;;  %s10664_s16 = inlined_call_operand.vmem [shape: f32[1,32], index: 16, kind: input, shape index: {}]   ;;  %s10665_s17 = inlined_call_operand.vmem [shape: f32[32,8], index: 17, kind: input, shape index: {}]   ;;  %s10666_s18 = inlined_call_operand.vmem [shape: f32[1,8], index: 18, kind: input, shape index: {}]   ;;  %s10667_s19 = inlined_call_operand.hbm [shape: f32[2,4,8], index: 19, kind: output, shape index: {}]  }
   0x1   :  { %10699 = sst [smem:[#allocation5_spill]] %s10648_s0 }
   0x2   :  { %10700 = sst [smem:[#allocation6_spill]] %s10649_s1 }
   0x3   :  { %10701 = sst [smem:[#allocation7_spill]] %s10650_s2 }
   0x4   :  { %10702 = sst [smem:[#allocation8_spill]] %s10651_s3 }
   0x5   :  { %10703 = sst [smem:[#allocation9_spill]] %s10664_s16 }
   0x6   :  { %10704 = sst [smem:[#allocation10_spill]] %s10666_s18 }
   0x7   :  { %10705 = sst [smem:[#allocation11_spill]] %s10667_s19 }
   0x8   :  { %s10706_s20 = sld [smem:[#allocation5_spill]]  ;;  %vm77_vm0 = vcmask 261120   ;;  %vm81_vm1 = vcmask 257024  }
   0xe   :  { %v73_v0 = vld [vmem:[%s10706_s20] sm:$0xff]  ;;  %v74_v1 = vld [vmem:[%s10706_s20 + $0x8] sm:$0xf] }
   0xf   :  { %v78_v2 = vsel %vm77_vm0, %v73_v0, 0.0 }
  0x10   :  { %24 = vsyncpa [#allocation3], 0  ;;  %79 = vadd.xlane.f32.xlu0 %v78_v2  ;;  %v82_v3 = vsel %vm81_vm1, %v74_v1, 0.0  ;;  %v7104_v21 = vld [vmem:[%s10653_s5] ss:$0 sm:$0xff]  ;;  %v167_v43 = vld [vmem:[%s10657_s9 + $0x8] sm:$0xff] }
  0x11   :  { %v7105_v23 = vld [vmem:[%s10654_s6] ss:$0 sm:$0xff]  ;;  %v168_v44 = vld [vmem:[%s10657_s9 + $0x10] sm:$0xff]  ;;  %v169_v46 = vld [vmem:[%s10657_s9 + $0x18] sm:$0xff]  ;;  %s10707_s21 = sld [smem:[#allocation7_spill]]  ;;  %s10692_s1 = smov 32  }
  0x12   :  { %v166_v42 = vld [vmem:[%s10657_s9] sm:$0xff]  ;;  %v8376_v47 = vpack.c.bf16 %v169_v46, %v168_v44  ;;  %v68_v49 = vld [vmem:[%s10652_s4 + $0x8] sm:$0xff]  ;;  %v70_v2 = vld [vmem:[%s10652_s4 + $0x18] sm:$0xff]  ;;  %s10708_s25 = sld [smem:[#allocation8_spill]]  ;;  %vm453_vm2 = vcmask 64512   ;;  %s10690_s27 = smov 88  }
  0x13   :  { %v8372_v45 = vpack.c.bf16 %v167_v43, %v166_v42  ;;  %v67_v48 = vld [vmem:[%s10652_s4] sm:$0xff]  ;;  %s10688_s28 = smov 120   ;;  %s10676_s29 = smov 112   ;;  %vm9500_vm3 = vmpackc.low %vm453_vm2, %vm453_vm2  ;;  %vm547_vm4 = vcmask 93184   ;;  %vm543_vm5 = vcmask 97280   ;;  %vm578_vm6 = vcmask 1043456  }
  0x14   :  { %83 = vadd.xlane.f32.xlu0 %v82_v3  ;;  %v9398_v50 = vpack.c.bf16 %v68_v49, %v67_v48  ;;  %v7106_v58 = vld [vmem:[%s10655_s7] ss:$0 sm:$0xff]  ;;  %s10682_s0 = smov 80   ;;  %s10711_s2 = sld [smem:[#allocation6_spill]]  ;;  %vm9244_vm7 = vmmov 1   ;;  %vm9248_vm9 = vmmov 0  }
  0x15   :  { %8373 = vmatprep.subr.bf16.mxu0 %v8372_v45  ;;  %v7107_v60 = vld [vmem:[%s10656_s8] ss:$0 sm:$0xff]  ;;  %s10684_s3 = smov 64   ;;  %s10672_s26 = smov 72   ;;  %vm9571_vm8 = vmpackc.low %vm578_vm6, %vm9244_vm7  ;;  %vm3588_vm10 = vcmask 60416  }
  0x16   :  { %8375 = vmatpush3.bf16.msra.mxu0 %v8372_v45  ;;  %s10674_s30 = smov 104   ;;  %s10686_s22 = smov 56  }
  0x17   :  { %8377 = vmatprep.subr.bf16.mxu0 %v8376_v47  ;;  %s10678_s23 = smov 40   ;;  %s10714_s24 = smov 56  }
  0x1a   :  { %8379 = vmatpush3.bf16.msra.mxu0 %v8376_v47 }
  0x1b   :  { %8381 = vmatprep.subr.bf16.mxu0 %v9398_v50 }
  0x9d   :  { %v80_v4 = vpop.xlane.xlu0 %79 }
  0x9e   :  { %v86_v5 = vmul.f32 0.03125, %v80_v4 }
  0xa0   :  { %v88_v6 = vsub.f32 %v73_v0, %v86_v5 }
  0xa1   :  { %v84_v7 = vpop.xlane.xlu0 %83 }
  0xa2   :  { %v87_v8 = vmul.f32 0.03125, %v84_v7  ;;  %v90_v9 = vmul.f32 %v88_v6, %v88_v6 }
  0xa4   :  { %v89_v10 = vsub.f32 %v74_v1, %v87_v8  ;;  %v92_v11 = vsel %vm77_vm0, %v90_v9, 0.0  ;;  %v69_v1 = vld [vmem:[%s10652_s4 + $0x10] sm:$0xff]  ;;  %s10694_s4 = smov 96   ;;  %v9436_v9 = vld [vmem:[%s10707_s21] sm:$0xff] }
  0xa5   :  { %93 = vadd.xlane.f32.xlu1 %v92_v11  ;;  %v9419_v5 = vpack.c.bf16 %v70_v2, %v69_v1 }
  0xa6   :  { %v91_v12 = vmul.f32 %v89_v10, %v89_v10 }
  0xa8   :  { %v95_v13 = vsel %vm81_vm1, %v91_v12, 0.0 }
  0xa9   :  { %96 = vadd.xlane.f32.xlu1 %v95_v13  ;;  %v9455_v13 = vld [vmem:[%s10708_s25 + $0x8] sm:$0xf] }
 0x132   :  { %v94_v14 = vpop.xlane.xlu1 %93 }
 0x133   :  { %v98_v15 = vmul.f32 0.03125, %v94_v14  ;;  %v9460_v14 = vld [vmem:[%s10708_s25] sm:$0xff] }
 0x135   :  { %v100_v16 = vadd.f32 1e-05, %v98_v15 }
 0x136   :  { %v97_v17 = vpop.xlane.xlu1 %96 }
 0x137   :  { %9030 = vrsqrt.f32 %v100_v16  ;;  %v99_v18 = vmul.f32 0.03125, %v97_v17 }
 0x139   :  { %v101_v19 = vadd.f32 1e-05, %v99_v18 }
 0x13b   :  { %9032 = vrsqrt.f32 %v101_v19 }
 0x141   :  { %v9031_v20 = vpop.eup %9030 }
 0x142   :  { %v104_v22 = vmul.f32 %v9031_v20, %v88_v6 }
 0x144   :  { %v112_v24 = vmul.f32 %v7104_v21, %v104_v22 }
 0x145   :  { %v9033_v25 = vpop.eup %9032 }
 0x146   :  { %v9368_v26 = vadd.f32 %v7105_v23, %v112_v24  ;;  %v105_v27 = vmul.f32 %v9033_v25, %v89_v10  ;;  %v9445_v10 = vld [vmem:[%s10707_s21 + $0x8] sm:$0xf] }
 0x148   :  { %v124_v28 = vsel %vm77_vm0, %v9368_v26, 0.0  ;;  %v113_v29 = vmul.f32 %v7104_v21, %v105_v27 }
 0x149   :  { %125 = vadd.xlane.f32.xlu0 %v124_v28 }
 0x14a   :  { %v9372_v30 = vadd.f32 %v7105_v23, %v113_v29 }
 0x14c   :  { %v127_v31 = vsel %vm81_vm1, %v9372_v30, 0.0 }
 0x14d   :  { %128 = vadd.xlane.f32.xlu1 %v127_v31 }
 0x1d6   :  { %v126_v32 = vpop.xlane.xlu0 %125 }
 0x1d7   :  { %v130_v33 = vmul.f32 0.03125, %v126_v32 }
 0x1d9   :  { %v132_v34 = vsub.f32 %v9368_v26, %v130_v33 }
 0x1da   :  { %v129_v35 = vpop.xlane.xlu1 %128 }
 0x1db   :  { %v131_v36 = vmul.f32 0.03125, %v129_v35  ;;  %v134_v37 = vmul.f32 %v132_v34, %v132_v34 }
 0x1dd   :  { %v133_v38 = vsub.f32 %v9372_v30, %v131_v36  ;;  %v136_v39 = vsel %vm77_vm0, %v134_v37, 0.0 }
 0x1de   :  { %137 = vadd.xlane.f32.xlu0 %v136_v39 }
 0x1df   :  { %v135_v40 = vmul.f32 %v133_v38, %v133_v38 }
 0x1e1   :  { %v139_v41 = vsel %vm81_vm1, %v135_v40, 0.0 }
 0x1e2   :  { %140 = vadd.xlane.f32.xlu1 %v139_v41 }
 0x26b   :  { %v138_v51 = vpop.xlane.xlu0 %137 }
 0x26c   :  { %v142_v52 = vmul.f32 0.03125, %v138_v51 }
 0x26e   :  { %v144_v53 = vadd.f32 1e-05, %v142_v52 }
 0x26f   :  { %v141_v54 = vpop.xlane.xlu1 %140 }
 0x270   :  { %9034 = vrsqrt.f32 %v144_v53  ;;  %v143_v55 = vmul.f32 0.03125, %v141_v54 }
 0x272   :  { %v145_v56 = vadd.f32 1e-05, %v143_v55 }
 0x274   :  { %9036 = vrsqrt.f32 %v145_v56 }
 0x27a   :  { %v9035_v57 = vpop.eup %9034 }
 0x27b   :  { %v148_v59 = vmul.f32 %v9035_v57, %v132_v34  ;;  %v9525_v57 = vld [vmem:[%s10711_s2 + $0x8] sm:$0xf] }
 0x27d   :  { %v156_v61 = vmul.f32 %v7106_v58, %v148_v59 }
 0x27e   :  { %v9037_v62 = vpop.eup %9036 }
 0x27f   :  { %v149_v63 = vmul.f32 %v9037_v62, %v133_v38  ;;  %v9407_v0 = vadd.f32 %v7107_v60, %v156_v61 }
 0x281   :  { %v157_v3 = vmul.f32 %v7106_v58, %v149_v63  ;;  %7738 = vmatprep.mubr.msk.f32.mxu0 %vm77_vm0, %v9407_v0 }
 0x283   :  { %v9417_v4 = vadd.f32 %v7107_v60, %v157_v3  ;;  %v9530_v60 = vld [vmem:[%s10711_s2] sm:$0xff] }
 0x285   :  { %7739 = vmatmul.mubr.msk.f32.vlgmr.msra.gmra.mrb[0].mxu0 %vm77_vm0, %v9417_v4 }
 0x286   :  { %8383 = vmatpush3.bf16.msra.mxu0 %v9398_v50 }
 0x287   :  { %8385 = vmatprep.subr.bf16.mxu0 %v9419_v5 }
 0x28a   :  { %8387 = vmatpush3.bf16.msra.mxu0 %v9419_v5 }
 0x28b   :  { %8389 = vmatprep.subr.bf16.mxu0 %v9398_v50 }
 0x358   :  { %v7740_v6 = vpop.f32.mrb[0].mxu0 }
 0x359   :  { %350 = vrot.lane.b32.xlu1 %v7740_v6, %s10694_s4  ;;  %v242_v7 = vpop.f32.mrb[1].mxu0  ;;  %v252_v16 = vmul.f32 %v7740_v6, %v9445_v10 }
 0x35a   :  { %348 = vrot.lane.b32.xlu0 %v242_v7, %s10694_s4  ;;  %7749 = vmatprep.mubr.msk.f32.mxu0 %vm77_vm0, %v242_v7  ;;  %v9430_v8 = vpack.i.bf16 %v7740_v6, %v242_v7  ;;  %v251_v19 = vmul.f32 %v242_v7, %v9436_v9 }
 0x35b   :  { %7750 = vmatmul.mubr.msk.f32.vlgmr.msra.gmra.mrb[2].mxu0 %vm77_vm0, %v7740_v6 }
 0x35c   :  { %8391 = vmatpush3.bf16.msra.mxu0 %v9398_v50 }
 0x35d   :  { %340 = vrot.lane.b32.xlu1 %v9436_v9, %s10692_s1  ;;  %8393 = vmatprep.subr.bf16.mxu0 %v9419_v5 }
 0x360   :  { %8395 = vmatpush3.bf16.msra.mxu0 %v9419_v5 }
 0x361   :  { %342 = vrot.lane.b32.xlu1 %v9445_v10, %s10692_s1 }
 0x3cb   :  { %v351_v12 = vpop.permute.xlu1 %350 }
 0x3cc   :  { %v349_v11 = vpop.permute.xlu0 %348 }
 0x3cd   :  { %7760 = vmatprep.mubr.msk.f32.mxu0 %vm77_vm0, %v349_v11 }
 0x3ce   :  { %7761 = vmatmul.mubr.msk.f32.vlgmr.msra.gmra.mrb[4].mxu0 %vm77_vm0, %v351_v12 }
 0x3cf   :  { %v9476_v28 = vpop.permute.xlu1 %340 }
 0x3d0   :  { %v346_v33 = vmul.f32 %v9476_v28, %v242_v7 }
 0x3d3   :  { %v9478_v29 = vpop.permute.xlu1 %342 }
 0x3d4   :  { %v347_v31 = vmul.f32 %v7740_v6, %v9478_v29 }
 0x42e   :  { %v7751_v15 = vpop.f32.mrb[2].mxu0 }
 0x42f   :  { %v335_v17 = vmul.f32 %v7751_v15, %v9455_v13  ;;  %v325_v18 = vpop.f32.mrb[3].mxu0 }
 0x430   :  { %v334_v20 = vmul.f32 %v325_v18, %v9460_v14 }
 0x431   :  { %v9466_v21 = vadd.f32 %v335_v17, %v252_v16 }
 0x432   :  { %v9468_v22 = vadd.f32 %v334_v20, %v251_v19 }
 0x434   :  { %7767 = vmatprep.mubr.msk.f32.mxu1 %vm453_vm2, %v9468_v22 }
 0x4a1   :  { %v7762_v23 = vpop.f32.mrb[4].mxu0 }
 0x4a2   :  { %v432_v24 = vmul.f32 %v7762_v23, %v9455_v13  ;;  %v422_v25 = vpop.f32.mrb[5].mxu0 }
 0x4a3   :  { %v431_v27 = vmul.f32 %v422_v25, %v9460_v14 }
 0x4a4   :  { %437 = vrot.lane.b32.xlu1 %v432_v24, %s10692_s1 }
 0x4a5   :  { %435 = vrot.lane.b32.xlu0 %v431_v27, %s10692_s1 }
 0x516   :  { %v438_v32 = vpop.permute.xlu1 %437 }
 0x517   :  { %v442_v34 = vadd.f32 %v438_v32, %v347_v31  ;;  %v436_v35 = vpop.permute.xlu0 %435 }
 0x518   :  { %v441_v36 = vadd.f32 %v436_v35, %v346_v33 }
 0x51a   :  { %v9482_v37 = vpack.i.bf16 %v442_v34, %v441_v36 }
 0x51c   :  { %8876 = vrot.lane.b32.xlu1 %v9482_v37, %s10690_s27  ;;  %8871 = vrot.lane.b32.xlu0 %v9482_v37, %s10694_s4 }
 0x520   :  { %658 = vrot.lane.b32.xlu1 %v9466_v21, %s10688_s28  ;;  %656 = vrot.lane.b32.xlu0 %v9468_v22, %s10688_s28 }
 0x524   :  { %1023 = vrot.lane.b32.xlu1 %v9468_v22, %s10676_s29  ;;  %8881 = vrot.lane.b32.xlu0 %v9482_v37, %s10682_s0  ;;  %s10719_s0 = smov 72  }
 0x528   :  { %1025 = vrot.lane.b32.xlu0 %v9466_v21, %s10676_s29  ;;  %s10680_s29 = smov 48  }
 0x58e   :  { %v8877_v38 = vpop.permute.xlu1 %8876  ;;  %v8872_v39 = vpop.permute.xlu0 %8871 }
 0x58f   :  { %v8879_v40 = vunpack.i.h.bf16 %v8877_v38  ;;  %v8878_v41 = vunpack.i.l.bf16 %v8877_v38  ;;  %v8874_v42 = vunpack.i.h.bf16 %v8872_v39  ;;  %v8873_v43 = vunpack.i.l.bf16 %v8872_v39 }
 0x591   :  { %v8396_v45 = vpack.c.bf16 %v8874_v42, %v8873_v43  ;;  %v8408_v47 = vpack.c.bf16 %v8879_v40, %v8878_v41 }
 0x592   :  { %v657_v46 = vpop.permute.xlu0 %656  ;;  %v659_v53 = vpop.permute.xlu1 %658 }
 0x593   :  { %8398 = vmatprep.subr.msk.bf16.mxu1 %vm9500_vm3, %v8396_v45 }
 0x594   :  { %8401 = vmatpush3.bf16.xpose.msk.msra.mxu1 %vm9500_vm3, %v8396_v45 }
 0x595   :  { %8410 = vmatprep.subr.msk.bf16.mxu1 %vm9500_vm3, %v8408_v47 }
 0x596   :  { %v8882_v48 = vpop.permute.xlu0 %8881  ;;  %v1024_v54 = vpop.permute.xlu1 %1023 }
 0x597   :  { %v8884_v49 = vunpack.i.h.bf16 %v8882_v48  ;;  %v8883_v51 = vunpack.i.l.bf16 %v8882_v48 }
 0x599   :  { %v8420_v52 = vpack.c.bf16 %v8884_v49, %v8883_v51 }
 0x59a   :  { %v1026_v55 = vpop.permute.xlu0 %1025 }
 0x59b   :  { %7768 = vmatmul.mubr.msk.f32.vlgmr.msra.gmra.mrb[0].mxu1 %vm453_vm2, %v9466_v21 }
 0x59c   :  { %8413 = vmatpush3.bf16.xpose.msk.msra.mxu1 %vm9500_vm3, %v8408_v47  ;;  %7781 = vmatprep.mubr.msk.f32.mxu1 %vm453_vm2, %v657_v46 }
 0x59d   :  { %8422 = vmatprep.subr.msk.bf16.mxu1 %vm9500_vm3, %v8420_v52 }
 0x5a3   :  { %7782 = vmatmul.mubr.msk.f32.vlgmr.msra.gmra.mrb[2].mxu1 %vm453_vm2, %v659_v53 }
 0x5a4   :  { %8425 = vmatpush3.bf16.xpose.msk.msra.mxu1 %vm9500_vm3, %v8420_v52  ;;  %7805 = vmatprep.mubr.msk.f32.mxu1 %vm453_vm2, %v1024_v54 }
 0x5ab   :  { %7806 = vmatmul.mubr.msk.f32.vlgmr.msra.gmra.mrb[4].mxu1 %vm453_vm2, %v1026_v55 }
 0x66e   :  { %v7769_v56 = vpop.f32.mrb[0].mxu1 }
 0x66f   :  { %v540_v58 = vmul.f32 0.35355338, %v7769_v56  ;;  %v530_v59 = vpop.f32.mrb[1].mxu1 }
 0x670   :  { %v539_v61 = vmul.f32 0.35355338, %v530_v59 }
 0x671   :  { %v542_v62 = vadd.f32 %v540_v58, %v9525_v57 }
 0x672   :  { %v541_v63 = vadd.f32 %v539_v61, %v9530_v60 }
 0x673   :  { %v548_v1 = vsel %vm547_vm4, %v542_v62, -inf }
 0x674   :  { %549 = vmax.xlane.f32.xlu0 %v548_v1  ;;  %v544_v2 = vsel %vm543_vm5, %v541_v63, -inf }
 0x675   :  { %545 = vmax.xlane.f32.xlu1 %v544_v2 }
 0x676   :  { %v7783_v3 = vpop.f32.mrb[2].mxu1 }
 0x677   :  { %v738_v6 = vpop.f32.mrb[3].mxu1  ;;  %v748_v7 = vmul.f32 0.35355338, %v7783_v3 }
 0x678   :  { %v747_v11 = vmul.f32 0.35355338, %v738_v6 }
 0x679   :  { %v750_v16 = vadd.f32 %v748_v7, %v9525_v57 }
 0x67a   :  { %v749_v12 = vadd.f32 %v747_v11, %v9530_v60 }
 0x67b   :  { %v754_v19 = vsel %vm547_vm4, %v750_v16, -inf }
 0x67c   :  { %v751_v15 = vsel %vm543_vm5, %v749_v12, -inf }
 0x67d   :  { %752 = vmax.xlane.f32.xlu0 %v751_v15 }
 0x67e   :  { %v7807_v17 = vpop.f32.mrb[4].mxu1 }
 0x67f   :  { %v1105_v18 = vpop.f32.mrb[5].mxu1  ;;  %v1115_v51 = vmul.f32 0.35355338, %v7807_v17  ;;  %v1600_v17 = vld [vmem:[%s10659_s11 + $0x8] sm:$0xff] }
 0x680   :  { %v1114_v48 = vmul.f32 0.35355338, %v1105_v18 }
 0x681   :  { %755 = vmax.xlane.f32.xlu0 %v754_v19 }
 0x682   :  { %v9561_v49 = vadd.f32 %v1114_v48, %v9530_v60  ;;  %v443_v48 = vld [vmem:[%s10658_s10] sm:$0xff] }
 0x684   :  { %v1118_v52 = vsel %vm543_vm5, %v9561_v49, -inf }
 0x701   :  { %v550_v20 = vpop.xlane.xlu0 %549 }
 0x702   :  { %v552_v23 = vsub.f32 %v542_v62, %v550_v20  ;;  %v546_v24 = vpop.xlane.xlu1 %545 }
 0x703   :  { %v551_v25 = vsub.f32 %v541_v63, %v546_v24  ;;  %v7355_v63 = vld [vmem:[%s10661_s13 + $0x88] sm:$0xff] }
 0x704   :  { %v555_v27 = vmul.f32 1.442695, %v552_v23 }
 0x705   :  { %v553_v31 = vmul.f32 1.442695, %v551_v25 }
 0x706   :  { %9038 = vpow2.f32 %v555_v27 }
 0x707   :  { %9040 = vpow2.f32 %v553_v31 }
 0x70a   :  { %v753_v32 = vpop.xlane.xlu0 %752 }
 0x70b   :  { %v757_v33 = vsub.f32 %v749_v12, %v753_v32 }
 0x70d   :  { %v759_v34 = vmul.f32 1.442695, %v757_v33  ;;  %v1601_v33 = vld [vmem:[%s10659_s11 + $0x10] sm:$0xff] }
 0x70e   :  { %v756_v35 = vpop.xlane.xlu0 %755 }
 0x70f   :  { %9042 = vpow2.f32 %v759_v34  ;;  %v758_v36 = vsub.f32 %v750_v16, %v756_v35  ;;  %v1599_v16 = vld [vmem:[%s10659_s11] sm:$0xff]  ;;  %v1602_v34 = vld [vmem:[%s10659_s11 + $0x18] sm:$0xff] }
 0x710   :  { %v9540_v38 = vpop.eup %9038  ;;  %v8444_v27 = vpack.c.bf16 %v1600_v17, %v1599_v16  ;;  %v8448_v35 = vpack.c.bf16 %v1602_v34, %v1601_v33 }
 0x711   :  { %v9041_v39 = vpop.eup %9040  ;;  %v761_v40 = vmul.f32 1.442695, %v758_v36  ;;  %v560_v41 = vsel %vm547_vm4, %v9540_v38, 0.0 }
 0x712   :  { %561 = vadd.xlane.f32.xlu0 %v560_v41  ;;  %v557_v42 = vsel %vm543_vm5, %v9041_v39, 0.0 }
 0x713   :  { %9044 = vpow2.f32 %v761_v40  ;;  %558 = vadd.xlane.f32.xlu1 %v557_v42 }
 0x719   :  { %v9043_v43 = vpop.eup %9042 }
 0x71a   :  { %v763_v45 = vsel %vm543_vm5, %v9043_v43, 0.0 }
 0x71b   :  { %764 = vadd.xlane.f32.xlu1 %v763_v45 }
 0x71d   :  { %v9546_v46 = vpop.eup %9044 }
 0x71e   :  { %v766_v47 = vsel %vm547_vm4, %v9546_v46, 0.0 }
 0x71f   :  { %767 = vadd.xlane.f32.xlu0 %v766_v47 }
 0x72c   :  { %8886 = vrot.lane.b32.xlu1 %v9430_v8, %s10684_s3  ;;  %s10716_s3 = smov 80  }
 0x730   :  { %8896 = vrot.lane.b32.xlu1 %v9482_v37, %s10672_s26  ;;  %v9566_v37 = vadd.f32 %v1115_v51, %v9525_v57  ;;  %s10715_s26 = smov 64  }
 0x734   :  { %1311 = vrot.lane.b32.xlu1 %v9468_v22, %s10674_s30  ;;  %v1121_v22 = vsel %vm547_vm4, %v9566_v37, -inf }
 0x735   :  { %8891 = vrot.lane.b32.xlu0 %v9430_v8, %s10686_s22  ;;  %s10717_s22 = smov 112  }
 0x738   :  { %1313 = vrot.lane.b32.xlu1 %v9466_v21, %s10674_s30  ;;  %s10721_s30 = smov 40  }
 0x754   :  { %1119 = vmax.xlane.f32.xlu0 %v1118_v52 }
 0x75c   :  { %1122 = vmax.xlane.f32.xlu1 %v1121_v22 }
 0x79f   :  { %v562_v54 = vpop.xlane.xlu0 %561 }
 0x7a0   :  { %v559_v53 = vpop.xlane.xlu1 %558 }
 0x7a1   :  { %9046 = vrcp.f32 %v559_v53 }
 0x7a2   :  { %9048 = vrcp.f32 %v562_v54 }
 0x7a8   :  { %v765_v21 = vpop.xlane.xlu1 %764 }
 0x7a9   :  { %9050 = vrcp.f32 %v765_v21 }
 0x7ab   :  { %v9047_v55 = vpop.eup %9046 }
 0x7ac   :  { %v768_v56 = vpop.xlane.xlu0 %767  ;;  %v8887_v58 = vpop.permute.xlu1 %8886  ;;  %v564_v59 = vmul.f32 %v9047_v55, %v9041_v39 }
 0x7ad   :  { %9052 = vrcp.f32 %v768_v56  ;;  %v8889_v61 = vunpack.i.h.bf16 %v8887_v58  ;;  %v8888_v62 = vunpack.i.l.bf16 %v8887_v58  ;;  %v9049_v2 = vpop.eup %9048 }
 0x7ae   :  { %7774 = vmatprep.mubr.msk.f32.mxu0 %vm543_vm5, %v564_v59  ;;  %v566_v23 = vmul.f32 %v9049_v2, %v9540_v38 }
 0x7af   :  { %v8402_v1 = vpack.c.bf16 %v8889_v61, %v8888_v62 }
 0x7b0   :  { %v8892_v3 = vpop.permute.xlu0 %8891  ;;  %v8897_v6 = vpop.permute.xlu1 %8896 }
 0x7b1   :  { %v8894_v7 = vunpack.i.h.bf16 %v8892_v3  ;;  %v8893_v11 = vunpack.i.l.bf16 %v8892_v3  ;;  %v8899_v12 = vunpack.i.h.bf16 %v8897_v6  ;;  %v8898_v15 = vunpack.i.l.bf16 %v8897_v6  ;;  %8404 = vmatprep.subr.msk.bf16.mxu0 %vm9571_vm8, %v8402_v1 }
 0x7b2   :  { %8407 = vmatpush3.bf16.msk.msra.mxu0 %vm9571_vm8, %v8402_v1 }
 0x7b3   :  { %v9051_v18 = vpop.eup %9050  ;;  %v8414_v19 = vpack.c.bf16 %v8894_v7, %v8893_v11  ;;  %v8432_v20 = vpack.c.bf16 %v8899_v12, %v8898_v15 }
 0x7b4   :  { %v1312_v24 = vpop.permute.xlu1 %1311  ;;  %v770_v25 = vmul.f32 %v9051_v18, %v9043_v43  ;;  %v445_v18 = vld [vmem:[%s10658_s10 + $0x10] sm:$0xff] }
 0x7b5   :  { %7775 = vmatmul.mubr.msk.f32.vlgmr.msra.gmra.mrb[6].mxu0 %vm543_vm5, %v566_v23  ;;  %8416 = vmatprep.subr.msk.bf16.mxu0 %vm9571_vm8, %v8414_v19 }
 0x7b6   :  { %8434 = vmatprep.subr.msk.bf16.mxu1 %vm9500_vm3, %v8432_v20  ;;  %7824 = vmatprep.mubr.msk.f32.mxu1 %vm453_vm2, %v1312_v24 }
 0x7b7   :  { %v9053_v31 = vpop.eup %9052  ;;  %8419 = vmatpush3.bf16.msk.msra.mxu0 %vm9571_vm8, %v8414_v19  ;;  %7788 = vmatprep.mubr.msk.f32.mxu0 %vm543_vm5, %v770_v25 }
 0x7b8   :  { %8437 = vmatpush3.bf16.xpose.msk.msra.mxu1 %vm9500_vm3, %v8432_v20  ;;  %v772_v32 = vmul.f32 %v9053_v31, %v9546_v46  ;;  %v1314_v36 = vpop.permute.xlu1 %1313 }
 0x7b9   :  { %8445 = vmatprep.subr.bf16.mxu1 %v8444_v27 }
 0x7ba   :  { %7789 = vmatmul.mubr.msk.f32.vlgmr.msra.gmra.mrb[8].mxu0 %vm543_vm5, %v772_v32 }
 0x7bf   :  { %7825 = vmatmul.mubr.msk.f32.vlgmr.msra.gmra.mrb[6].mxu1 %vm453_vm2, %v1314_v36 }
 0x7c0   :  { %8447 = vmatpush3.bf16.msra.mxu1 %v8444_v27  ;;  %7847 = vmatprep.mubr.msk.f32.mxu1 %vm77_vm0, %v9407_v0 }
 0x7c1   :  { %8449 = vmatprep.subr.bf16.mxu1 %v8448_v35 }
 0x7c4   :  { %8451 = vmatpush3.bf16.msra.mxu1 %v8448_v35 }
 0x7c7   :  { %7848 = vmatmul.mubr.msk.f32.vlgmr.msra.gmra.mrb[8].mxu1 %vm77_vm0, %v9417_v4  ;;  %v444_v4 = vld [vmem:[%s10658_s10 + $0x8] sm:$0xff] }
 0x7c8   :  { %7791 = vmatprep.subr.mxu0 %v444_v4 }
 0x7c9   :  { %7792 = vmatpush3.msra.mxu0 %v444_v4  ;;  %v1703_v4 = vld [vmem:[%s10661_s13] sm:$0xff] }
 0x7ca   :  { %7796 = vmatprep.subr.mxu0 %v443_v48 }
 0x7e1   :  { %v1120_v38 = vpop.xlane.xlu0 %1119 }
 0x7e2   :  { %v1124_v39 = vsub.f32 %v9561_v49, %v1120_v38 }
 0x7e4   :  { %v1126_v42 = vmul.f32 1.442695, %v1124_v39 }
 0x7e9   :  { %v1123_v40 = vpop.xlane.xlu1 %1122 }
 0x7ea   :  { %v1125_v41 = vsub.f32 %v9566_v37, %v1123_v40 }
 0x7ec   :  { %v1128_v43 = vmul.f32 1.442695, %v1125_v41 }
 0x7ee   :  { %9054 = vpow2.f32 %v1128_v43 }
 0x7ef   :  { %9056 = vpow2.f32 %v1126_v42 }
 0x7f8   :  { %v9055_v45 = vpop.eup %9054 }
 0x7f9   :  { %v1133_v46 = vsel %vm547_vm4, %v9055_v45, 0.0  ;;  %v9057_v47 = vpop.eup %9056 }
 0x7fa   :  { %1134 = vadd.xlane.f32.xlu0 %v1133_v46  ;;  %v1130_v0 = vsel %vm543_vm5, %v9057_v47, 0.0 }
 0x7fe   :  { %1131 = vadd.xlane.f32.xlu0 %v1130_v0 }
 0x814   :  { %8901 = vrot.lane.b32.xlu0 %v9430_v8, %s10680_s29  ;;  %s10718_s29 = smov 104  }
 0x887   :  { %v1135_v49 = vpop.xlane.xlu0 %1134 }
 0x888   :  { %v7776_v51 = vpop.f32.mrb[6].mxu0 }
 0x889   :  { %v647_v52 = vpop.f32.mrb[7].mxu0 }
 0x88b   :  { %v1132_v37 = vpop.xlane.xlu0 %1131 }
 0x88c   :  { %9058 = vrcp.f32 %v1132_v37 }
 0x88d   :  { %9060 = vrcp.f32 %v1135_v49  ;;  %v7790_v22 = vpop.f32.mrb[8].mxu0 }
 0x88e   :  { %v852_v53 = vpop.f32.mrb[9].mxu0 }
 0x88f   :  { %v8902_v54 = vpop.permute.xlu0 %8901  ;;  %7793 = vmatprep.mubr.msk.f32.mxu0 %vm453_vm2, %v852_v53 }
 0x890   :  { %v8904_v21 = vunpack.i.h.bf16 %v8902_v54  ;;  %v8903_v55 = vunpack.i.l.bf16 %v8902_v54  ;;  %7794 = vmatmul.mubr.msk.f32.vlgmr.msra.gmra.mrb[10].mxu0 %vm453_vm2, %v7790_v22 }
 0x891   :  { %7798 = vmatprep.mubr.msk.f32.mxu0 %vm453_vm2, %v647_v52  ;;  %7797 = vmatpush3.msra.mxu0 %v443_v48  ;;  %v1704_v48 = vld [vmem:[%s10661_s13 + $0x8] sm:$0xff] }
 0x892   :  { %v8426_v56 = vpack.c.bf16 %v8904_v21, %v8903_v55  ;;  %v7826_v58 = vpop.f32.mrb[6].mxu1  ;;  %v8452_v49 = vpack.c.bf16 %v1704_v48, %v1703_v4 }
 0x893   :  { %v1393_v59 = vpop.f32.mrb[7].mxu1  ;;  %v1403_v61 = vmul.f32 0.35355338, %v7826_v58 }
 0x894   :  { %v1402_v62 = vmul.f32 0.35355338, %v1393_v59  ;;  %8428 = vmatprep.subr.msk.bf16.mxu0 %vm9571_vm8, %v8426_v56 }
 0x895   :  { %v1405_v11 = vadd.f32 %v1403_v61, %v9525_v57  ;;  %v1705_v61 = vld [vmem:[%s10661_s13 + $0x10] sm:$0xff] }
 0x896   :  { %v9059_v1 = vpop.eup %9058  ;;  %v1404_v2 = vadd.f32 %v1402_v62, %v9530_v60  ;;  %v1706_v62 = vld [vmem:[%s10661_s13 + $0x18] sm:$0xff] }
 0x897   :  { %v9061_v3 = vpop.eup %9060  ;;  %v1137_v6 = vmul.f32 %v9059_v1, %v9057_v47  ;;  %v1409_v17 = vsel %vm547_vm4, %v1405_v11, -inf }
 0x898   :  { %v1406_v7 = vsel %vm543_vm5, %v1404_v2, -inf  ;;  %7799 = vmatmul.mubr.msk.f32.vlgmr.msra.gmra.mrb[10].mxu0 %vm453_vm2, %v7776_v51  ;;  %v1139_v15 = vmul.f32 %v9061_v3, %v9055_v45  ;;  %v446_v45 = vld [vmem:[%s10658_s10 + $0x18] sm:$0xff]  ;;  %v7150_v51 = vld [vmem:[%s10660_s12] ss:$0 sm:$0xff] }
 0x899   :  { %1407 = vmax.xlane.f32.xlu1 %v1406_v7  ;;  %8431 = vmatpush3.bf16.msk.msra.mxu0 %vm9571_vm8, %v8426_v56  ;;  %v8456_v7 = vpack.c.bf16 %v1706_v62, %v1705_v61  ;;  %v7158_v61 = vld [vmem:[%s10657_s9 + $0x20] sm:$0xff]  ;;  %v7159_v62 = vld [vmem:[%s10657_s9 + $0x28] sm:$0xff] }
 0x89a   :  { %v7849_v12 = vpop.f32.mrb[8].mxu1  ;;  %7812 = vmatprep.mubr.msk.f32.mxu0 %vm543_vm5, %v1137_v6  ;;  %7815 = vmatprep.subr.mxu0 %v445_v18 }
 0x89b   :  { %v1676_v16 = vpop.f32.mrb[9].mxu1  ;;  %v1682_v55 = vadd.f32 %v7849_v12, %v7150_v51  ;;  %v1707_v12 = vld [vmem:[%s10661_s13 + $0x20] sm:$0xff] }
 0x89c   :  { %7813 = vmatmul.mubr.msk.f32.vlgmr.msra.gmra.mrb[12].mxu0 %vm543_vm5, %v1139_v15  ;;  %v1677_v52 = vadd.f32 %v7150_v51, %v1676_v16  ;;  %v1708_v15 = vld [vmem:[%s10661_s13 + $0x28] sm:$0xff] }
 0x89d   :  { %1410 = vmax.xlane.f32.xlu1 %v1409_v17  ;;  %7816 = vmatpush3.msra.mxu0 %v445_v18  ;;  %v1688_v58 = vmul.f32 0.044715, %v1682_v55  ;;  %v8460_v17 = vpack.c.bf16 %v1708_v15, %v1707_v12  ;;  %v1709_v18 = vld [vmem:[%s10661_s13 + $0x30] sm:$0xff] }
 0x89e   :  { %v1687_v37 = vmul.f32 0.044715, %v1677_v52  ;;  %v1685_v3 = vmul.f32 0.5, %v1677_v52 }
 0x89f   :  { %v1690_v1 = vmul.f32 %v1688_v58, %v1682_v55 }
 0x8a0   :  { %v1689_v22 = vmul.f32 %v1687_v37, %v1677_v52 }
 0x8a1   :  { %v1692_v16 = vmul.f32 %v1690_v1, %v1682_v55  ;;  %v7160_v1 = vld [vmem:[%s10657_s9 + $0x30] sm:$0xff] }
 0x8a2   :  { %v1691_v53 = vmul.f32 %v1689_v22, %v1677_v52 }
 0x8a4   :  { %v1693_v54 = vadd.f32 %v1691_v53, %v1677_v52 }
 0x8a6   :  { %v1695_v21 = vmul.f32 0.7978846, %v1693_v54 }
 0x926   :  { %v1408_v19 = vpop.xlane.xlu1 %1407 }
 0x927   :  { %v1412_v20 = vsub.f32 %v1404_v2, %v1408_v19  ;;  %v1710_v19 = vld [vmem:[%s10661_s13 + $0x38] sm:$0xff] }
 0x929   :  { %v1414_v25 = vmul.f32 1.442695, %v1412_v20  ;;  %v1694_v20 = vadd.f32 %v1692_v16, %v1682_v55 }
 0x92a   :  { %v1411_v23 = vpop.xlane.xlu1 %1410 }
 0x92b   :  { %v1413_v24 = vsub.f32 %v1405_v11, %v1411_v23  ;;  %v8464_v23 = vpack.c.bf16 %v1710_v19, %v1709_v18  ;;  %v7156_v19 = vld [vmem:[%s10655_s7 + $0x1] ss:$0 sm:$0xff] }
 0x92d   :  { %v1416_v27 = vmul.f32 1.442695, %v1413_v24  ;;  %v1711_v24 = vld [vmem:[%s10661_s13 + $0x40] sm:$0xff] }
 0x92f   :  { %9062 = vpow2.f32 %v1416_v27  ;;  %v1696_v27 = vmul.f32 0.7978846, %v1694_v20 }
 0x930   :  { %9064 = vpow2.f32 %v1414_v25  ;;  %v1712_v25 = vld [vmem:[%s10661_s13 + $0x48] sm:$0xff] }
 0x939   :  { %v9063_v31 = vpop.eup %9062 }
 0x93a   :  { %v1421_v32 = vsel %vm547_vm4, %v9063_v31, 0.0  ;;  %v9065_v33 = vpop.eup %9064 }
 0x93b   :  { %1422 = vadd.xlane.f32.xlu1 %v1421_v32  ;;  %v1418_v34 = vsel %vm543_vm5, %v9065_v33, 0.0  ;;  %v1713_v32 = vld [vmem:[%s10661_s13 + $0x50] sm:$0xff] }
 0x93f   :  { %1419 = vadd.xlane.f32.xlu1 %v1418_v34 }
 0x950   :  { %8906 = vrot.lane.b32.xlu1 %v9430_v8, %s10678_s23  ;;  %s10720_s23 = smov 48  }
 0x96f   :  { %v7814_v35 = vpop.f32.mrb[12].mxu0 }
 0x970   :  { %v1219_v36 = vpop.f32.mrb[13].mxu0 }
 0x971   :  { %7817 = vmatprep.mubr.msk.f32.mxu0 %vm453_vm2, %v1219_v36  ;;  %v1716_v36 = vld [vmem:[%s10661_s13 + $0x68] sm:$0xff] }
 0x972   :  { %7818 = vmatmul.mubr.msk.f32.vlgmr.msra.gmra.mrb[10].mxu0 %vm453_vm2, %v7814_v35  ;;  %v1715_v35 = vld [vmem:[%s10661_s13 + $0x60] sm:$0xff] }
 0x9c8   :  { %v1423_v38 = vpop.xlane.xlu1 %1422 }
 0x9c9   :  { %9066 = vrcp.f32 %v1423_v38  ;;  %v8476_v38 = vpack.c.bf16 %v1716_v36, %v1715_v35 }
 0x9cc   :  { %v1420_v39 = vpop.xlane.xlu1 %1419 }
 0x9cd   :  { %9068 = vrcp.f32 %v1420_v39  ;;  %v1717_v39 = vld [vmem:[%s10661_s13 + $0x70] sm:$0xff] }
 0x9ce   :  { %9070 = vtanh.f32 %v1695_v21 }
 0x9cf   :  { %9072 = vtanh.f32 %v1696_v27 }
 0x9d0   :  { %v8907_v40 = vpop.permute.xlu1 %8906 }
 0x9d1   :  { %v8909_v41 = vunpack.i.h.bf16 %v8907_v40  ;;  %v8908_v42 = vunpack.i.l.bf16 %v8907_v40  ;;  %v1718_v40 = vld [vmem:[%s10661_s13 + $0x78] sm:$0xff] }
 0x9d3   :  { %v8438_v43 = vpack.c.bf16 %v8909_v41, %v8908_v42  ;;  %v9067_v8 = vpop.eup %9066  ;;  %v8480_v41 = vpack.c.bf16 %v1718_v40, %v1717_v39 }
 0x9d4   :  { %v1427_v0 = vmul.f32 %v9067_v8, %v9063_v31  ;;  %v8468_v31 = vpack.c.bf16 %v1712_v25, %v1711_v24 }
 0x9d5   :  { %8440 = vmatprep.subr.msk.bf16.mxu0 %vm9571_vm8, %v8438_v43 }
 0x9d6   :  { %8443 = vmatpush3.bf16.msk.msra.mxu0 %vm9571_vm8, %v8438_v43 }
 0x9d7   :  { %v9069_v46 = vpop.eup %9068  ;;  %7834 = vmatprep.subr.mxu0 %v446_v45 }
 0x9d8   :  { %v1425_v47 = vmul.f32 %v9069_v46, %v9065_v33  ;;  %v9071_v56 = vpop.eup %9070  ;;  %v1714_v33 = vld [vmem:[%s10661_s13 + $0x58] sm:$0xff]  ;;  %v7153_v46 = vld [vmem:[%s10662_s14] ss:$0 sm:$0xff] }
 0x9d9   :  { %v1699_v59 = vadd.f32 1.0, %v9071_v56  ;;  %v8472_v34 = vpack.c.bf16 %v1714_v33, %v1713_v32  ;;  %v9073_v42 = vpop.eup %9072 }
 0x9da   :  { %7831 = vmatprep.mubr.msk.f32.mxu0 %vm543_vm5, %v1425_v47  ;;  %v1700_v43 = vadd.f32 1.0, %v9073_v42 }
 0x9db   :  { %7832 = vmatmul.mubr.msk.f32.vlgmr.msra.gmra.mrb[14].mxu0 %vm543_vm5, %v1427_v0  ;;  %v1701_v11 = vmul.f32 %v1699_v59, %v1685_v3  ;;  %v7161_v3 = vld [vmem:[%s10657_s9 + $0x38] sm:$0xff] }
 0x9dc   :  { %7835 = vmatpush3.msra.mxu0 %v446_v45  ;;  %v1686_v45 = vmul.f32 0.5, %v1682_v55 }
 0x9dd   :  { %8453 = vmatprep.subr.bf16.mxu0 %v8452_v49 }
 0x9de   :  { %v1702_v8 = vmul.f32 %v1700_v43, %v1686_v45 }
 0xaae   :  { %v7833_v2 = vpop.f32.mrb[14].mxu0 }
 0xaaf   :  { %v1507_v6 = vpop.f32.mrb[15].mxu0 }
 0xab0   :  { %7836 = vmatprep.mubr.msk.f32.mxu0 %vm453_vm2, %v1507_v6  ;;  %v8488_v6 = vpack.c.bf16 %v7161_v3, %v7160_v1 }
 0xab1   :  { %7837 = vmatmul.mubr.msk.f32.vlgmr.msra.gmra.mrb[10].mxu0 %vm453_vm2, %v7833_v2  ;;  %v8484_v2 = vpack.c.bf16 %v7159_v62, %v7158_v61 }
 0xab2   :  { %8455 = vmatpush3.bf16.msra.mxu0 %v8452_v49  ;;  %7882 = vmatprep.mubr.f32.mxu0 %v1701_v11 }
 0xab3   :  { %8457 = vmatprep.subr.bf16.mxu0 %v8456_v7  ;;  %8485 = vmatprep.subr.bf16.mxu1 %v8484_v2 }
 0xab4   :  { %8487 = vmatpush3.bf16.msra.mxu1 %v8484_v2 }
 0xab5   :  { %8489 = vmatprep.subr.bf16.mxu1 %v8488_v6 }
 0xab6   :  { %8459 = vmatpush3.bf16.msra.mxu0 %v8456_v7 }
 0xab7   :  { %8461 = vmatprep.subr.bf16.mxu0 %v8460_v17 }
 0xab8   :  { %8491 = vmatpush3.bf16.msra.mxu1 %v8488_v6 }
 0xab9   :  { %8493 = vmatprep.subr.bf16.mxu1 %v9398_v50 }
 0xaba   :  { %8463 = vmatpush3.bf16.msra.mxu0 %v8460_v17 }
 0xabb   :  { %8465 = vmatprep.subr.bf16.mxu0 %v8464_v23 }
 0xabe   :  { %8467 = vmatpush3.bf16.msra.mxu0 %v8464_v23  ;;  %v7157_v23 = vld [vmem:[%s10656_s8 + $0x1] ss:$0 sm:$0xff] }
 0xabf   :  { %8469 = vmatprep.subr.bf16.mxu0 %v8468_v31 }
 0xac2   :  { %8471 = vmatpush3.bf16.msra.mxu0 %v8468_v31 }
 0xac3   :  { %8473 = vmatprep.subr.bf16.mxu0 %v8472_v34 }
 0xac6   :  { %8475 = vmatpush3.bf16.msra.mxu0 %v8472_v34 }
 0xac7   :  { %8477 = vmatprep.subr.bf16.mxu0 %v8476_v38 }
 0xaca   :  { %8479 = vmatpush3.bf16.msra.mxu0 %v8476_v38 }
 0xacb   :  { %8481 = vmatprep.subr.bf16.mxu0 %v8480_v41 }
 0xace   :  { %8483 = vmatpush3.bf16.msra.mxu0 %v8480_v41 }
 0xad1   :  { %7883 = vmatmul.mubr.f32.vlgmr.msra.gmra.mrb[10].mxu0 %v1702_v8 }
 0xba4   :  { %v7884_v47 = vpop.f32.mrb[10].mxu0 }
 0xba5   :  { %v1798_v0 = vadd.f32 %v7884_v47, %v7153_v46  ;;  %v1792_v4 = vpop.f32.mrb[11].mxu0 }
 0xba6   :  { %v1793_v48 = vadd.f32 %v7153_v46, %v1792_v4 }
 0xba7   :  { %v9711_v49 = vadd.f32 %v1798_v0, %v9372_v30 }
 0xba8   :  { %v1803_v51 = vadd.f32 %v1793_v48, %v9368_v26 }
 0xba9   :  { %v1812_v52 = vsel %vm81_vm1, %v9711_v49, 0.0 }
 0xbaa   :  { %1813 = vadd.xlane.f32.xlu1 %v1812_v52  ;;  %v1809_v37 = vsel %vm77_vm0, %v1803_v51, 0.0 }
 0xbab   :  { %1810 = vadd.xlane.f32.xlu0 %v1809_v37 }
 0xc37   :  { %v1814_v22 = vpop.xlane.xlu1 %1813 }
 0xc38   :  { %v1816_v53 = vmul.f32 0.03125, %v1814_v22  ;;  %v1811_v54 = vpop.xlane.xlu0 %1810 }
 0xc39   :  { %v1815_v21 = vmul.f32 0.03125, %v1811_v54 }
 0xc3a   :  { %v1818_v55 = vsub.f32 %v9711_v49, %v1816_v53 }
 0xc3b   :  { %v1817_v56 = vsub.f32 %v1803_v51, %v1815_v21 }
 0xc3c   :  { %v1820_v59 = vmul.f32 %v1818_v55, %v1818_v55 }
 0xc3d   :  { %v1819_v58 = vmul.f32 %v1817_v56, %v1817_v56 }
 0xc3e   :  { %v1824_v26 = vsel %vm81_vm1, %v1820_v59, 0.0 }
 0xc3f   :  { %v1821_v30 = vsel %vm77_vm0, %v1819_v58, 0.0 }
 0xc40   :  { %1822 = vadd.xlane.f32.xlu0 %v1821_v30 }
 0xc44   :  { %1825 = vadd.xlane.f32.xlu0 %v1824_v26 }
 0xccd   :  { %v1823_v7 = vpop.xlane.xlu0 %1822 }
 0xcce   :  { %v1827_v11 = vmul.f32 0.03125, %v1823_v7 }
 0xcd0   :  { %v1829_v12 = vadd.f32 1e-05, %v1827_v11 }
 0xcd1   :  { %v1826_v15 = vpop.xlane.xlu0 %1825 }
 0xcd2   :  { %9074 = vrsqrt.f32 %v1829_v12  ;;  %v1828_v16 = vmul.f32 0.03125, %v1826_v15 }
 0xcd4   :  { %v1830_v17 = vadd.f32 1e-05, %v1828_v16 }
 0xcd6   :  { %9076 = vrsqrt.f32 %v1830_v17 }
 0xcdc   :  { %v9075_v18 = vpop.eup %9074 }
 0xcdd   :  { %v1833_v20 = vmul.f32 %v9075_v18, %v1817_v56 }
 0xcdf   :  { %v1841_v24 = vmul.f32 %v7156_v19, %v1833_v20 }
 0xce0   :  { %v9077_v25 = vpop.eup %9076 }
 0xce1   :  { %v1834_v27 = vmul.f32 %v9077_v25, %v1818_v55  ;;  %v9739_v31 = vadd.f32 %v7157_v23, %v1841_v24 }
 0xce3   :  { %v1842_v32 = vmul.f32 %v7156_v19, %v1834_v27  ;;  %7893 = vmatprep.mubr.msk.f32.mxu1 %vm77_vm0, %v9739_v31 }
 0xce5   :  { %v9743_v33 = vadd.f32 %v7157_v23, %v1842_v32 }
 0xce7   :  { %7894 = vmatmul.mubr.msk.f32.vlgmr.msra.gmra.mrb[10].mxu1 %vm77_vm0, %v9743_v33 }
 0xce8   :  { %8495 = vmatpush3.bf16.msra.mxu1 %v9398_v50 }
 0xce9   :  { %8497 = vmatprep.subr.bf16.mxu1 %v9419_v5 }
 0xcec   :  { %8499 = vmatpush3.bf16.msra.mxu1 %v9419_v5 }
 0xced   :  { %8501 = vmatprep.subr.bf16.mxu1 %v9398_v50 }
 0xdba   :  { %v7895_v34 = vpop.f32.mrb[10].mxu1 }
 0xdbb   :  { %2028 = vrot.lane.b32.xlu1 %v7895_v34, %s10694_s4  ;;  %v1928_v35 = vpop.f32.mrb[11].mxu1  ;;  %v1938_v41 = vmul.f32 %v7895_v34, %v9445_v10 }
 0xdbc   :  { %2026 = vrot.lane.b32.xlu0 %v1928_v35, %s10694_s4  ;;  %7904 = vmatprep.mubr.msk.f32.mxu1 %vm77_vm0, %v1928_v35  ;;  %v9754_v36 = vpack.i.bf16 %v7895_v34, %v1928_v35  ;;  %v1937_v45 = vmul.f32 %v1928_v35, %v9436_v9  ;;  %v2025_v9 = vmul.f32 %v7895_v34, %v9478_v29 }
 0xdbd   :  { %7905 = vmatmul.mubr.msk.f32.vlgmr.msra.gmra.mrb[12].mxu1 %vm77_vm0, %v7895_v34  ;;  %v2024_v52 = vmul.f32 %v1928_v35, %v9476_v28 }
 0xdbe   :  { %8503 = vmatpush3.bf16.msra.mxu1 %v9398_v50 }
 0xdbf   :  { %8505 = vmatprep.subr.bf16.mxu1 %v9419_v5 }
 0xdc2   :  { %8507 = vmatpush3.bf16.msra.mxu1 %v9419_v5 }
 0xe2d   :  { %v2029_v39 = vpop.permute.xlu1 %2028 }
 0xe2e   :  { %v2027_v38 = vpop.permute.xlu0 %2026 }
 0xe2f   :  { %7915 = vmatprep.mubr.msk.f32.mxu1 %vm77_vm0, %v2027_v38 }
 0xe30   :  { %7916 = vmatmul.mubr.msk.f32.vlgmr.msra.gmra.mrb[14].mxu1 %vm77_vm0, %v2029_v39 }
 0xe90   :  { %v7906_v40 = vpop.f32.mrb[12].mxu1 }
 0xe91   :  { %v2021_v42 = vmul.f32 %v7906_v40, %v9455_v13  ;;  %v2011_v43 = vpop.f32.mrb[13].mxu1 }
 0xe92   :  { %v2020_v8 = vmul.f32 %v2011_v43, %v9460_v14 }
 0xe93   :  { %v9766_v46 = vadd.f32 %v2021_v42, %v1938_v41 }
 0xe94   :  { %v9768_v47 = vadd.f32 %v2020_v8, %v1937_v45 }
 0xe96   :  { %7922 = vmatprep.mubr.msk.f32.mxu1 %vm453_vm2, %v9768_v47 }
 0xf03   :  { %v7917_v0 = vpop.f32.mrb[14].mxu1 }
 0xf04   :  { %v2110_v4 = vmul.f32 %v7917_v0, %v9455_v13  ;;  %v2100_v48 = vpop.f32.mrb[15].mxu1 }
 0xf05   :  { %v2109_v10 = vmul.f32 %v2100_v48, %v9460_v14 }
 0xf06   :  { %2115 = vrot.lane.b32.xlu1 %v2110_v4, %s10692_s1 }
 0xf07   :  { %2113 = vrot.lane.b32.xlu0 %v2109_v10, %s10692_s1  ;;  %s10726_s1 = smov 48  }
 0xf78   :  { %v2116_v51 = vpop.permute.xlu1 %2115 }
 0xf79   :  { %v2120_v37 = vadd.f32 %v2116_v51, %v2025_v9  ;;  %v2114_v22 = vpop.permute.xlu0 %2113 }
 0xf7a   :  { %v2119_v53 = vadd.f32 %v2114_v22, %v2024_v52 }
 0xf7c   :  { %v9778_v54 = vpack.i.bf16 %v2120_v37, %v2119_v53 }
 0xf7e   :  { %8916 = vrot.lane.b32.xlu1 %v9778_v54, %s10690_s27  ;;  %8911 = vrot.lane.b32.xlu0 %v9778_v54, %s10694_s4  ;;  %s10722_s4 = smov 96  }
 0xf82   :  { %2333 = vrot.lane.b32.xlu1 %v9766_v46, %s10688_s28  ;;  %2331 = vrot.lane.b32.xlu0 %v9768_v47, %s10688_s28  ;;  %s10725_s28 = smov 120  }
 0xff0   :  { %v8917_v13 = vpop.permute.xlu1 %8916  ;;  %v8912_v14 = vpop.permute.xlu0 %8911 }
 0xff1   :  { %v8919_v21 = vunpack.i.h.bf16 %v8917_v13  ;;  %v8918_v55 = vunpack.i.l.bf16 %v8917_v13  ;;  %v8914_v56 = vunpack.i.h.bf16 %v8912_v14  ;;  %v8913_v58 = vunpack.i.l.bf16 %v8912_v14 }
 0xff3   :  { %v8508_v30 = vpack.c.bf16 %v8914_v56, %v8913_v58  ;;  %v8520_v59 = vpack.c.bf16 %v8919_v21, %v8918_v55 }
 0xff4   :  { %v2332_v26 = vpop.permute.xlu0 %2331  ;;  %v2334_v61 = vpop.permute.xlu1 %2333 }
 0xff5   :  { %8510 = vmatprep.subr.msk.bf16.mxu1 %vm9500_vm3, %v8508_v30 }
 0xff6   :  { %8513 = vmatpush3.bf16.xpose.msk.msra.mxu1 %vm9500_vm3, %v8508_v30 }
 0xff7   :  { %8522 = vmatprep.subr.msk.bf16.mxu1 %vm9500_vm3, %v8520_v59 }
 0xffd   :  { %7923 = vmatmul.mubr.msk.f32.vlgmr.msra.gmra.mrb[16].mxu1 %vm453_vm2, %v9766_v46 }
 0xffe   :  { %8525 = vmatpush3.bf16.xpose.msk.msra.mxu1 %vm9500_vm3, %v8520_v59  ;;  %7936 = vmatprep.mubr.msk.f32.mxu1 %vm453_vm2, %v2332_v26 }
0x1005   :  { %7937 = vmatmul.mubr.msk.f32.vlgmr.msra.gmra.mrb[18].mxu1 %vm453_vm2, %v2334_v61 }
0x10d0   :  { %v7924_v62 = vpop.f32.mrb[16].mxu1 }
0x10d1   :  { %v2218_v1 = vmul.f32 0.35355338, %v7924_v62  ;;  %v2208_v2 = vpop.f32.mrb[17].mxu1 }
0x10d2   :  { %v2217_v3 = vmul.f32 0.35355338, %v2208_v2 }
0x10d3   :  { %v2220_v6 = vadd.f32 %v2218_v1, %v9525_v57  ;;  %v7169_v1 = vld [vmem:[%s10658_s10 + $0x28] sm:$0xff] }
0x10d4   :  { %v2219_v7 = vadd.f32 %v2217_v3, %v9530_v60 }
0x10d5   :  { %v2224_v11 = vsel %vm547_vm4, %v2220_v6, -inf }
0x10d6   :  { %2225 = vmax.xlane.f32.xlu1 %v2224_v11  ;;  %v2221_v12 = vsel %vm543_vm5, %v2219_v7, -inf }
0x10d7   :  { %2222 = vmax.xlane.f32.xlu0 %v2221_v12  ;;  %v7168_v12 = vld [vmem:[%s10658_s10 + $0x20] sm:$0xff] }
0x10d8   :  { %v7938_v15 = vpop.f32.mrb[18].mxu1  ;;  %7951 = vmatprep.subr.mxu1 %v7168_v12 }
0x10d9   :  { %v2413_v16 = vpop.f32.mrb[19].mxu1  ;;  %v2423_v17 = vmul.f32 0.35355338, %v7938_v15  ;;  %7952 = vmatpush3.msra.mxu1 %v7168_v12 }
0x10da   :  { %v2422_v18 = vmul.f32 0.35355338, %v2413_v16 }
0x10db   :  { %v2425_v23 = vadd.f32 %v2423_v17, %v9525_v57 }
0x10dc   :  { %v2424_v19 = vadd.f32 %v2422_v18, %v9530_v60 }
0x10dd   :  { %v2429_v24 = vsel %vm547_vm4, %v2425_v23, -inf }
0x10de   :  { %v2426_v20 = vsel %vm543_vm5, %v2424_v19, -inf }
0x10df   :  { %2427 = vmax.xlane.f32.xlu0 %v2426_v20 }
0x10e3   :  { %2430 = vmax.xlane.f32.xlu0 %v2429_v24 }
0x1163   :  { %v2226_v25 = vpop.xlane.xlu1 %2225 }
0x1164   :  { %v2228_v27 = vsub.f32 %v2220_v6, %v2226_v25  ;;  %v2223_v32 = vpop.xlane.xlu0 %2222 }
0x1165   :  { %v2227_v34 = vsub.f32 %v2219_v7, %v2223_v32  ;;  %v7208_v32 = vld [vmem:[%s10659_s11 + $0x20] sm:$0xff] }
0x1166   :  { %v2231_v35 = vmul.f32 1.442695, %v2228_v27 }
0x1167   :  { %v2229_v38 = vmul.f32 1.442695, %v2227_v34  ;;  %v7209_v34 = vld [vmem:[%s10659_s11 + $0x28] sm:$0xff] }
0x1168   :  { %9078 = vpow2.f32 %v2231_v35  ;;  %v8556_v35 = vpack.c.bf16 %v7209_v34, %v7208_v32 }
0x1169   :  { %9080 = vpow2.f32 %v2229_v38 }
0x116c   :  { %v2428_v39 = vpop.xlane.xlu0 %2427 }
0x116d   :  { %v2432_v40 = vsub.f32 %v2424_v19, %v2428_v39  ;;  %v7210_v39 = vld [vmem:[%s10659_s11 + $0x30] sm:$0xff] }
0x116f   :  { %v2434_v41 = vmul.f32 1.442695, %v2432_v40  ;;  %v7211_v40 = vld [vmem:[%s10659_s11 + $0x38] sm:$0xff] }
0x1170   :  { %v2431_v60 = vpop.xlane.xlu0 %2430 }
0x1171   :  { %9082 = vpow2.f32 %v2434_v41  ;;  %v2433_v42 = vsub.f32 %v2425_v23, %v2431_v60  ;;  %v8560_v41 = vpack.c.bf16 %v7211_v40, %v7210_v39 }
0x1172   :  { %v9079_v43 = vpop.eup %9078 }
0x1173   :  { %v9081_v57 = vpop.eup %9080  ;;  %v2436_v45 = vmul.f32 1.442695, %v2433_v42  ;;  %v2236_v8 = vsel %vm547_vm4, %v9079_v43, 0.0 }
0x1174   :  { %2237 = vadd.xlane.f32.xlu1 %v2236_v8  ;;  %v2233_v0 = vsel %vm543_vm5, %v9081_v57, 0.0 }
0x1175   :  { %9084 = vpow2.f32 %v2436_v45  ;;  %2234 = vadd.xlane.f32.xlu0 %v2233_v0 }
0x117b   :  { %v9083_v4 = vpop.eup %9082 }
0x117c   :  { %v2438_v48 = vsel %vm543_vm5, %v9083_v4, 0.0 }
0x117d   :  { %2439 = vadd.xlane.f32.xlu0 %v2438_v48 }
0x117f   :  { %v9085_v10 = vpop.eup %9084 }
0x1180   :  { %v2441_v9 = vsel %vm547_vm4, %v9085_v10, 0.0 }
0x1181   :  { %2442 = vadd.xlane.f32.xlu1 %v2441_v9  ;;  %v9202_v9 = vld [vmem:[%s10711_s2 + $0x8] sm:$0xf] }
0x1192   :  { %8926 = vrot.lane.b32.xlu1 %v9754_v36, %s10714_s24 }
0x1193   :  { %8921 = vrot.lane.b32.xlu0 %v9754_v36, %s10715_s26 }
0x1196   :  { %8931 = vrot.lane.b32.xlu1 %v9778_v54, %s10716_s3 }
0x1197   :  { %2698 = vrot.lane.b32.xlu0 %v9766_v46, %s10717_s22 }
0x119a   :  { %2696 = vrot.lane.b32.xlu1 %v9768_v47, %s10717_s22 }
0x119b   :  { %2982 = vrot.lane.b32.xlu0 %v9768_v47, %s10718_s29 }
0x119e   :  { %8936 = vrot.lane.b32.xlu1 %v9778_v54, %s10719_s0 }
0x11a2   :  { %2984 = vrot.lane.b32.xlu1 %v9766_v46, %s10718_s29 }
0x1201   :  { %v2238_v52 = vpop.xlane.xlu1 %2237 }
0x1202   :  { %v2235_v51 = vpop.xlane.xlu0 %2234 }
0x1203   :  { %9086 = vrcp.f32 %v2235_v51  ;;  %v9203_v51 = vld [vmem:[%s10711_s2] sm:$0xff] }
0x1204   :  { %9088 = vrcp.f32 %v2238_v52 }
0x120a   :  { %v2440_v37 = vpop.xlane.xlu0 %2439 }
0x120b   :  { %9090 = vrcp.f32 %v2440_v37 }
0x120d   :  { %v9087_v22 = vpop.eup %9086 }
0x120e   :  { %v2443_v53 = vpop.xlane.xlu1 %2442  ;;  %v8922_v13 = vpop.permute.xlu0 %8921  ;;  %v2240_v14 = vmul.f32 %v9087_v22, %v9081_v57 }
0x120f   :  { %9092 = vrcp.f32 %v2443_v53  ;;  %v8924_v21 = vunpack.i.h.bf16 %v8922_v13  ;;  %v8923_v55 = vunpack.i.l.bf16 %v8922_v13  ;;  %v9089_v54 = vpop.eup %9088 }
0x1210   :  { %7929 = vmatprep.mubr.msk.f32.mxu0 %vm543_vm5, %v2240_v14  ;;  %v2242_v26 = vmul.f32 %v9089_v54, %v9079_v43 }
0x1211   :  { %v8514_v47 = vpack.c.bf16 %v8924_v21, %v8923_v55 }
0x1212   :  { %v8927_v56 = vpop.permute.xlu1 %8926  ;;  %v2699_v27 = vpop.permute.xlu0 %2698 }
0x1213   :  { %v8929_v58 = vunpack.i.h.bf16 %v8927_v56  ;;  %v8928_v46 = vunpack.i.l.bf16 %v8927_v56  ;;  %8516 = vmatprep.subr.msk.bf16.mxu0 %vm9571_vm8, %v8514_v47 }
0x1214   :  { %8519 = vmatpush3.bf16.msk.msra.mxu0 %vm9571_vm8, %v8514_v47 }
0x1215   :  { %v9091_v30 = vpop.eup %9090  ;;  %v8526_v59 = vpack.c.bf16 %v8929_v58, %v8928_v46 }
0x1216   :  { %v8932_v61 = vpop.permute.xlu1 %8931  ;;  %v2445_v62 = vmul.f32 %v9091_v30, %v9083_v4  ;;  %v2983_v38 = vpop.permute.xlu0 %2982 }
0x1217   :  { %7930 = vmatmul.mubr.msk.f32.vlgmr.msra.gmra.mrb[16].mxu0 %vm543_vm5, %v2242_v26  ;;  %8528 = vmatprep.subr.msk.bf16.mxu0 %vm9571_vm8, %v8526_v59  ;;  %v8934_v2 = vunpack.i.h.bf16 %v8932_v61  ;;  %v8933_v3 = vunpack.i.l.bf16 %v8932_v61 }
0x1218   :  { %8531 = vmatpush3.bf16.msk.msra.mxu0 %vm9571_vm8, %v8526_v59  ;;  %7943 = vmatprep.mubr.msk.f32.mxu0 %vm543_vm5, %v2445_v62 }
0x1219   :  { %v9093_v6 = vpop.eup %9092  ;;  %7946 = vmatprep.subr.mxu0 %v7169_v1  ;;  %v8532_v11 = vpack.c.bf16 %v8934_v2, %v8933_v3 }
0x121a   :  { %v2447_v7 = vmul.f32 %v9093_v6, %v9085_v10  ;;  %v2697_v15 = vpop.permute.xlu1 %2696 }
0x121c   :  { %7944 = vmatmul.mubr.msk.f32.vlgmr.msra.gmra.mrb[18].mxu0 %vm543_vm5, %v2447_v7 }
0x121d   :  { %7947 = vmatpush3.msra.mxu0 %v7169_v1 }
0x121e   :  { %8534 = vmatprep.subr.msk.bf16.mxu0 %vm9500_vm3, %v8532_v11  ;;  %v8937_v17 = vpop.permute.xlu1 %8936 }
0x121f   :  { %v8939_v19 = vunpack.i.h.bf16 %v8937_v17  ;;  %v8938_v20 = vunpack.i.l.bf16 %v8937_v17 }
0x1221   :  { %v8544_v25 = vpack.c.bf16 %v8939_v19, %v8938_v20 }
0x1222   :  { %v2985_v60 = vpop.permute.xlu1 %2984 }
0x12ea   :  { %v7931_v16 = vpop.f32.mrb[16].mxu0 }
0x12eb   :  { %v2322_v18 = vpop.f32.mrb[17].mxu0 }
0x12ec   :  { %7953 = vmatprep.mubr.msk.f32.mxu1 %vm453_vm2, %v2322_v18 }
0x12ed   :  { %7954 = vmatmul.mubr.msk.f32.vlgmr.msra.gmra.mrb[20].mxu1 %vm453_vm2, %v7931_v16 }
0x12ef   :  { %v7945_v23 = vpop.f32.mrb[18].mxu0 }
0x12f0   :  { %v2527_v24 = vpop.f32.mrb[19].mxu0 }
0x12f1   :  { %7948 = vmatprep.mubr.msk.f32.mxu0 %vm453_vm2, %v2527_v24 }
0x12f2   :  { %7949 = vmatmul.mubr.msk.f32.vlgmr.msra.gmra.mrb[20].mxu0 %vm453_vm2, %v7945_v23 }
0x12f3   :  { %8537 = vmatpush3.bf16.xpose.msk.msra.mxu0 %vm9500_vm3, %v8532_v11  ;;  %7960 = vmatprep.mubr.msk.f32.mxu0 %vm453_vm2, %v2697_v15 }
0x12f4   :  { %8546 = vmatprep.subr.msk.bf16.mxu0 %vm9500_vm3, %v8544_v25 }
0x12fa   :  { %7961 = vmatmul.mubr.msk.f32.vlgmr.msra.gmra.mrb[22].mxu0 %vm453_vm2, %v2699_v27 }
0x12fb   :  { %8549 = vmatpush3.bf16.xpose.msk.msra.mxu0 %vm9500_vm3, %v8544_v25  ;;  %7979 = vmatprep.mubr.msk.f32.mxu0 %vm453_vm2, %v2983_v38  ;;  %v7170_v38 = vld [vmem:[%s10658_s10 + $0x30] sm:$0xff] }
0x12fc   :  { %8557 = vmatprep.subr.bf16.mxu0 %v8556_v35 }
0x1302   :  { %7980 = vmatmul.mubr.msk.f32.vlgmr.msra.gmra.mrb[24].mxu0 %vm453_vm2, %v2985_v60 }
0x1303   :  { %8559 = vmatpush3.bf16.msra.mxu0 %v8556_v35  ;;  %8002 = vmatprep.mubr.msk.f32.mxu0 %vm77_vm0, %v9739_v31 }
0x1304   :  { %8561 = vmatprep.subr.bf16.mxu0 %v8560_v41 }
0x1307   :  { %8563 = vmatpush3.bf16.msra.mxu0 %v8560_v41 }
0x130a   :  { %8003 = vmatmul.mubr.msk.f32.vlgmr.msra.gmra.mrb[26].mxu0 %vm77_vm0, %v9743_v33 }
0x13c0   :  { %v7955_v42 = vpop.f32.mrb[20].mxu1 }
0x13c1   :  { %v2688_v43 = vpop.f32.mrb[21].mxu1 }
0x13c5   :  { %v7950_v57 = vpop.f32.mrb[20].mxu0 }
0x13c6   :  { %v9878_v45 = vadd.f32 %v7955_v42, %v7950_v57  ;;  %v2608_v8 = vpop.f32.mrb[21].mxu0 }
0x13cd   :  { %v7962_v0 = vpop.f32.mrb[22].mxu0 }
0x13ce   :  { %v2788_v4 = vmul.f32 0.35355338, %v7962_v0  ;;  %v2778_v48 = vpop.f32.mrb[23].mxu0 }
0x13cf   :  { %v2787_v10 = vmul.f32 0.35355338, %v2778_v48 }
0x13d0   :  { %v2790_v31 = vadd.f32 %v9202_v9, %v2788_v4  ;;  %v7240_v4 = vld [vmem:[%s10706_s20 + $0x10] sm:$0xff] }
0x13d1   :  { %v2789_v33 = vadd.f32 %v9203_v51, %v2787_v10  ;;  %v3598_v48 = vsel %vm77_vm0, %v7240_v4, 0.0  ;;  %v7241_v10 = vld [vmem:[%s10706_s20 + $0x18] sm:$0xf] }
0x13d2   :  { %v2794_v52 = vsel %vm547_vm4, %v2790_v31, -inf }
0x13d3   :  { %2795 = vmax.xlane.f32.xlu1 %v2794_v52  ;;  %v2791_v37 = vsel %vm543_vm5, %v2789_v33, -inf }
0x13d4   :  { %2792 = vmax.xlane.f32.xlu0 %v2791_v37 }
0x13d5   :  { %v7981_v22 = vpop.f32.mrb[24].mxu0 }
0x13d6   :  { %v3064_v53 = vpop.f32.mrb[25].mxu0  ;;  %v3074_v13 = vmul.f32 0.35355338, %v7981_v22 }
0x13d7   :  { %v3073_v14 = vmul.f32 0.35355338, %v3064_v53 }
0x13d8   :  { %v3076_v47 = vadd.f32 %v9202_v9, %v3074_v13  ;;  %v3601_v9 = vsel %vm81_vm1, %v7241_v10, 0.0 }
0x13d9   :  { %v3075_v21 = vadd.f32 %v9203_v51, %v3073_v14 }
0x13da   :  { %v3080_v58 = vsel %vm547_vm4, %v3076_v47, -inf }
0x13db   :  { %v3077_v55 = vsel %vm543_vm5, %v3075_v21, -inf }
0x13dc   :  { %3078 = vmax.xlane.f32.xlu1 %v3077_v55 }
0x13dd   :  { %v9889_v54 = vpop.f32.mrb[26].mxu0 }
0x13de   :  { %v9891_v56 = vpop.f32.mrb[27].mxu0 }
0x13e0   :  { %3081 = vmax.xlane.f32.xlu1 %v3080_v58 }
0x1460   :  { %v2796_v46 = vpop.xlane.xlu1 %2795 }
0x1461   :  { %v2798_v30 = vsub.f32 %v2790_v31, %v2796_v46  ;;  %v2793_v59 = vpop.xlane.xlu0 %2792 }
0x1462   :  { %v2797_v26 = vsub.f32 %v2789_v33, %v2793_v59 }
0x1463   :  { %v2801_v61 = vmul.f32 1.442695, %v2798_v30 }
0x1464   :  { %v2799_v62 = vmul.f32 1.442695, %v2797_v26  ;;  %v7171_v26 = vld [vmem:[%s10658_s10 + $0x38] sm:$0xff] }
0x1465   :  { %9094 = vpow2.f32 %v2801_v61  ;;  %v7216_v61 = vld [vmem:[%s10661_s13 + $0x80] sm:$0xff] }
0x1466   :  { %9096 = vpow2.f32 %v2799_v62  ;;  %v7217_v62 = vld [vmem:[%s10661_s13 + $0x88] sm:$0xff] }
0x1469   :  { %v3079_v1 = vpop.xlane.xlu1 %3078 }
0x146a   :  { %v3083_v2 = vsub.f32 %v3075_v21, %v3079_v1  ;;  %v8564_v1 = vpack.c.bf16 %v7217_v62, %v7216_v61 }
0x146c   :  { %v3085_v11 = vmul.f32 1.442695, %v3083_v2  ;;  %v7213_v2 = vld [vmem:[%s10660_s12 + $0x1] ss:$0 sm:$0xff] }
0x146d   :  { %v3082_v3 = vpop.xlane.xlu1 %3081 }
0x146e   :  { %v3084_v6 = vsub.f32 %v3076_v47, %v3082_v3  ;;  %v3348_v3 = vadd.f32 %v7213_v2, %v9891_v56  ;;  %v7219_v56 = vld [vmem:[%s10661_s13 + $0x98] sm:$0xff] }
0x146f   :  { %v9095_v7 = vpop.eup %9094 }
0x1470   :  { %v3087_v12 = vmul.f32 1.442695, %v3084_v6  ;;  %v2806_v15 = vsel %vm547_vm4, %v9095_v7, 0.0  ;;  %v9097_v16 = vpop.eup %9096  ;;  %v3358_v6 = vmul.f32 0.044715, %v3348_v3 }
0x1471   :  { %2807 = vadd.xlane.f32.xlu0 %v2806_v15  ;;  %v2803_v17 = vsel %vm543_vm5, %v9097_v16, 0.0 }
0x1472   :  { %9098 = vpow2.f32 %v3087_v12 }
0x1473   :  { %9100 = vpow2.f32 %v3085_v11 }
0x1475   :  { %2804 = vadd.xlane.f32.xlu0 %v2803_v17 }
0x147c   :  { %v9099_v18 = vpop.eup %9098 }
0x147d   :  { %v3092_v19 = vsel %vm547_vm4, %v9099_v18, 0.0  ;;  %v9101_v20 = vpop.eup %9100 }
0x147e   :  { %3093 = vadd.xlane.f32.xlu1 %v3092_v19  ;;  %v3089_v23 = vsel %vm543_vm5, %v9101_v20, 0.0 }
0x1482   :  { %3090 = vadd.xlane.f32.xlu1 %v3089_v23 }
0x148b   :  { %8941 = vrot.lane.b32.xlu0 %v9754_v36, %s10720_s23  ;;  %s10728_s23 = sld [smem:[#allocation9_spill]] }
0x1493   :  { %8946 = vrot.lane.b32.xlu1 %v9754_v36, %s10721_s30 }
0x14aa   :  { %3599 = vadd.xlane.f32.xlu0 %v3598_v48  ;;  %v7226_v48 = vld [vmem:[%s10661_s13 + $0xd0] sm:$0xff] }
0x14b7   :  { %3602 = vadd.xlane.f32.xlu1 %v3601_v9 }
0x14fe   :  { %v2808_v24 = vpop.xlane.xlu0 %2807 }
0x14ff   :  { %9102 = vrcp.f32 %v2808_v24 }
0x1502   :  { %v2805_v25 = vpop.xlane.xlu0 %2804 }
0x1503   :  { %9104 = vrcp.f32 %v2805_v25  ;;  %v7218_v25 = vld [vmem:[%s10661_s13 + $0x90] sm:$0xff] }
0x1506   :  { %v8942_v27 = vpop.permute.xlu0 %8941 }
0x1507   :  { %v8944_v32 = vunpack.i.h.bf16 %v8942_v27  ;;  %v8943_v34 = vunpack.i.l.bf16 %v8942_v27 }
0x1509   :  { %v8538_v35 = vpack.c.bf16 %v8944_v32, %v8943_v34  ;;  %v9103_v40 = vpop.eup %9102  ;;  %v3356_v34 = vmul.f32 0.5, %v3348_v3 }
0x150a   :  { %v2812_v60 = vmul.f32 %v9103_v40, %v9095_v7  ;;  %v3360_v7 = vmul.f32 %v3358_v6, %v3348_v3  ;;  %v7233_v6 = vld [vmem:[%s10662_s14 + $0x1] ss:$0 sm:$0xff] }
0x150b   :  { %v3094_v39 = vpop.xlane.xlu1 %3093  ;;  %8540 = vmatprep.subr.msk.bf16.mxu1 %vm9571_vm8, %v8538_v35 }
0x150c   :  { %8543 = vmatpush3.bf16.msk.msra.mxu1 %vm9571_vm8, %v8538_v35  ;;  %v3362_v11 = vmul.f32 %v3360_v7, %v3348_v3 }
0x150d   :  { %v9105_v36 = vpop.eup %9104  ;;  %7970 = vmatprep.subr.mxu1 %v7170_v38 }
0x150e   :  { %v2810_v41 = vmul.f32 %v9105_v36, %v9097_v16  ;;  %v3364_v12 = vadd.f32 %v3362_v11, %v3348_v3  ;;  %v3353_v16 = vadd.f32 %v9889_v54, %v7213_v2  ;;  %v8568_v54 = vpack.c.bf16 %v7219_v56, %v7218_v25 }
0x150f   :  { %v3091_v42 = vpop.xlane.xlu1 %3090 }
0x1510   :  { %7967 = vmatprep.mubr.msk.f32.mxu1 %vm543_vm5, %v2810_v41  ;;  %9106 = vrcp.f32 %v3091_v42  ;;  %v3366_v15 = vmul.f32 0.7978846, %v3364_v12  ;;  %v7222_v41 = vld [vmem:[%s10661_s13 + $0xb0] sm:$0xff] }
0x1511   :  { %7968 = vmatmul.mubr.msk.f32.vlgmr.msra.gmra.mrb[22].mxu1 %vm543_vm5, %v2812_v60  ;;  %9108 = vrcp.f32 %v3094_v39  ;;  %v7221_v39 = vld [vmem:[%s10661_s13 + $0xa8] sm:$0xff]  ;;  %v7223_v60 = vld [vmem:[%s10661_s13 + $0xb8] sm:$0xff] }
0x1512   :  { %7971 = vmatpush3.msra.mxu1 %v7170_v38  ;;  %9110 = vtanh.f32 %v3366_v15  ;;  %v7242_v15 = vld [vmem:[%s10653_s5] ss:$0 sm:$0xff]  ;;  %s10727_s5 = smov 40  }
0x1513   :  { %v8947_v43 = vpop.permute.xlu1 %8946 }
0x1514   :  { %v8949_v57 = vunpack.i.h.bf16 %v8947_v43  ;;  %v8948_v8 = vunpack.i.l.bf16 %v8947_v43  ;;  %v8576_v43 = vpack.c.bf16 %v7223_v60, %v7222_v41 }
0x1516   :  { %v8550_v0 = vpack.c.bf16 %v8949_v57, %v8948_v8  ;;  %v7224_v57 = vld [vmem:[%s10661_s13 + $0xc0] sm:$0xff]  ;;  %v7225_v8 = vld [vmem:[%s10661_s13 + $0xc8] sm:$0xff] }
0x1518   :  { %8552 = vmatprep.subr.msk.bf16.mxu1 %vm9571_vm8, %v8550_v0 }
0x151a   :  { %v9107_v31 = vpop.eup %9106 }
0x151b   :  { %v9109_v52 = vpop.eup %9108  ;;  %v3096_v37 = vmul.f32 %v9107_v31, %v9101_v20  ;;  %v7228_v31 = vld [vmem:[%s10661_s13 + $0xe0] sm:$0xff] }
0x151c   :  { %v3098_v22 = vmul.f32 %v9109_v52, %v9099_v18  ;;  %v9111_v17 = vpop.eup %9110  ;;  %v3359_v18 = vmul.f32 0.044715, %v3353_v16  ;;  %v7230_v52 = vld [vmem:[%s10661_s13 + $0xf0] sm:$0xff] }
0x151d   :  { %v3370_v24 = vadd.f32 1.0, %v9111_v17 }
0x151e   :  { %v3361_v27 = vmul.f32 %v3359_v18, %v3353_v16 }
0x151f   :  { %v3372_v38 = vmul.f32 %v3370_v24, %v3356_v34 }
0x1520   :  { %v3363_v40 = vmul.f32 %v3361_v27, %v3353_v16 }
0x1522   :  { %v3365_v42 = vadd.f32 %v3363_v40, %v3353_v16 }
0x1537   :  { %v3600_v53 = vpop.xlane.xlu0 %3599 }
0x1538   :  { %v3604_v13 = vmul.f32 0.03125, %v3600_v53 }
0x153a   :  { %v9927_v14 = vsub.f32 %v7240_v4, %v3604_v13  ;;  %v8580_v4 = vpack.c.bf16 %v7225_v8, %v7224_v57 }
0x153c   :  { %v3608_v47 = vmul.f32 %v9927_v14, %v9927_v14 }
0x153e   :  { %v3610_v46 = vsel %vm77_vm0, %v3608_v47, 0.0 }
0x153f   :  { %3611 = vadd.xlane.f32.xlu0 %v3610_v46 }
0x1544   :  { %v3603_v21 = vpop.xlane.xlu1 %3602 }
0x1545   :  { %v3605_v55 = vmul.f32 0.03125, %v3603_v21  ;;  %v3357_v21 = vmul.f32 0.5, %v3353_v16 }
0x1547   :  { %v9931_v58 = vsub.f32 %v7241_v10, %v3605_v55  ;;  %v7227_v10 = vld [vmem:[%s10661_s13 + $0xd8] sm:$0xff] }
0x1548   :  { %v8584_v9 = vpack.c.bf16 %v7227_v10, %v7226_v48  ;;  %v9247_v10 = vmov 0.0|0.0  }
0x1549   :  { %v3609_v30 = vmul.f32 %v9931_v58, %v9931_v58  ;;  %8596 = vmatprep.subr.bf16.mxu0 %v9247_v10 }
0x154b   :  { %v3613_v59 = vsel %vm81_vm1, %v3609_v30, 0.0 }
0x154c   :  { %3614 = vadd.xlane.f32.xlu0 %v3613_v59 }
0x15cc   :  { %v3612_v59 = vpop.xlane.xlu0 %3611 }
0x15d9   :  { %v3615_v61 = vpop.xlane.xlu0 %3614 }
0x15e4   :  { %v7969_v51 = vpop.f32.mrb[22].mxu1 }
0x15e5   :  { %v2892_v33 = vpop.f32.mrb[23].mxu1 }
0x15e6   :  { %7972 = vmatprep.mubr.msk.f32.mxu1 %vm453_vm2, %v2892_v33 }
0x15e7   :  { %7973 = vmatmul.mubr.msk.f32.vlgmr.msra.gmra.mrb[24].mxu1 %vm453_vm2, %v7969_v51  ;;  %v7229_v51 = vld [vmem:[%s10661_s13 + $0xe8] sm:$0xff] }
0x15e8   :  { %8555 = vmatpush3.bf16.msk.msra.mxu1 %vm9571_vm8, %v8550_v0  ;;  %7986 = vmatprep.mubr.msk.f32.mxu1 %vm543_vm5, %v3096_v37  ;;  %v3367_v0 = vmul.f32 0.7978846, %v3365_v42  ;;  %v8588_v33 = vpack.c.bf16 %v7229_v51, %v7228_v31  ;;  %v7231_v37 = vld [vmem:[%s10661_s13 + $0xf8] sm:$0xff] }
0x15e9   :  { %7989 = vmatprep.subr.mxu1 %v7171_v26  ;;  %v3507_v31 = vld [vmem:[%s10665_s17 + $0x18] sm:$0xff] }
0x15ea   :  { %9112 = vtanh.f32 %v3367_v0  ;;  %v3504_v0 = vld [vmem:[%s10665_s17] sm:$0xff] }
0x15eb   :  { %7987 = vmatmul.mubr.msk.f32.vlgmr.msra.gmra.mrb[26].mxu1 %vm543_vm5, %v3098_v22  ;;  %v8592_v22 = vpack.c.bf16 %v7231_v37, %v7230_v52  ;;  %v3685_v52 = vld [vmem:[%s10657_s9 + $0x8] sm:$0xff] }
0x15ec   :  { %7990 = vmatpush3.msra.mxu1 %v7171_v26  ;;  %v3616_v26 = vmul.f32 0.03125, %v3612_v59 }
0x15ed   :  { %8565 = vmatprep.subr.bf16.mxu1 %v8564_v1 }
0x15ee   :  { %v3618_v62 = vadd.f32 1e-05, %v3616_v26 }
0x15f0   :  { %9114 = vrsqrt.f32 %v3618_v62  ;;  %v7234_v62 = vld [vmem:[%s10663_s15] ss:$0 sm:$0xff] }
0x15f4   :  { %v9113_v53 = vpop.eup %9112 }
0x15f5   :  { %v3371_v13 = vadd.f32 1.0, %v9113_v53 }
0x15f7   :  { %v3373_v55 = vmul.f32 %v3371_v13, %v3357_v21 }
0x15fa   :  { %v9115_v3 = vpop.eup %9114 }
0x15fb   :  { %v3622_v7 = vmul.f32 %v9115_v3, %v9927_v14  ;;  %v3686_v3 = vld [vmem:[%s10657_s9 + $0x10] sm:$0xff] }
0x16ba   :  { %v7974_v19 = vpop.f32.mrb[24].mxu1 }
0x16bb   :  { %v2981_v20 = vadd.f32 %v7974_v19, %v9878_v45  ;;  %v2973_v23 = vpop.f32.mrb[25].mxu1  ;;  %v7220_v45 = vld [vmem:[%s10661_s13 + $0xa0] sm:$0xff]  ;;  %v3630_v19 = vmul.f32 %v7242_v15, %v3622_v7 }
0x16bc   :  { %v8572_v36 = vpack.c.bf16 %v7221_v39, %v7220_v45  ;;  %v7243_v23 = vld [vmem:[%s10654_s6] ss:$0 sm:$0xff] }
0x16bd   :  { %v10009_v25 = vadd.f32 %v7243_v23, %v3630_v19 }
0x16be   :  { %v7988_v32 = vpop.f32.mrb[26].mxu1 }
0x16bf   :  { %v3178_v35 = vpop.f32.mrb[27].mxu1  ;;  %v3642_v27 = vsel %vm77_vm0, %v10009_v25, 0.0 }
0x16c0   :  { %7991 = vmatprep.mubr.msk.f32.mxu1 %vm453_vm2, %v3178_v35 }
0x16c1   :  { %7992 = vmatmul.mubr.msk.f32.vlgmr.msra.gmra.mrb[28].mxu1 %vm453_vm2, %v7988_v32 }
0x16c2   :  { %8567 = vmatpush3.bf16.msra.mxu1 %v8564_v1  ;;  %8037 = vmatprep.mubr.f32.mxu1 %v3372_v38  ;;  %v3617_v1 = vmul.f32 0.03125, %v3615_v61 }
0x16c3   :  { %8569 = vmatprep.subr.bf16.mxu1 %v8568_v54 }
0x16c4   :  { %v3619_v2 = vadd.f32 1e-05, %v3617_v1 }
0x16c6   :  { %8571 = vmatpush3.bf16.msra.mxu1 %v8568_v54  ;;  %9116 = vrsqrt.f32 %v3619_v2  ;;  %v7235_v2 = vld [vmem:[%s10664_s16] ss:$0 sm:$0xff] }
0x16c7   :  { %8573 = vmatprep.subr.bf16.mxu1 %v8572_v36 }
0x16ca   :  { %8575 = vmatpush3.bf16.msra.mxu1 %v8572_v36 }
0x16cb   :  { %8577 = vmatprep.subr.bf16.mxu1 %v8576_v43 }
0x16ce   :  { %8579 = vmatpush3.bf16.msra.mxu1 %v8576_v43 }
0x16cf   :  { %8581 = vmatprep.subr.bf16.mxu1 %v8580_v4 }
0x16d0   :  { %v9117_v11 = vpop.eup %9116 }
0x16d2   :  { %8583 = vmatpush3.bf16.msra.mxu1 %v8580_v4  ;;  %v3505_v4 = vld [vmem:[%s10665_s17 + $0x8] sm:$0xff] }
0x16d3   :  { %8585 = vmatprep.subr.bf16.mxu1 %v8584_v9  ;;  %v8597_v48 = vpack.c.bf16 %v3505_v4, %v3504_v0  ;;  %v10112_v0 = vld [vmem:[%s10708_s25] sm:$0xff] }
0x16d5   :  { %8598 = vmatpush3.bf16.msra.mxu0 %v8597_v48 }
0x16d6   :  { %8587 = vmatpush3.bf16.msra.mxu1 %v8584_v9  ;;  %8599 = vmatprep.subr.bf16.mxu0 %v9247_v10  ;;  %v3506_v9 = vld [vmem:[%s10665_s17 + $0x10] sm:$0xff] }
0x16d7   :  { %8589 = vmatprep.subr.bf16.mxu1 %v8588_v33  ;;  %v8600_v51 = vpack.c.bf16 %v3507_v31, %v3506_v9 }
0x16d9   :  { %8601 = vmatpush3.bf16.msra.mxu0 %v8600_v51 }
0x16da   :  { %8591 = vmatpush3.bf16.msra.mxu1 %v8588_v33  ;;  %v3684_v33 = vld [vmem:[%s10657_s9] sm:$0xff] }
0x16db   :  { %8593 = vmatprep.subr.bf16.mxu1 %v8592_v22  ;;  %v8602_v37 = vpack.c.bf16 %v3685_v52, %v3684_v33 }
0x16dd   :  { %8603 = vmatprep.subr.bf16.mxu0 %v8602_v37 }
0x16de   :  { %8595 = vmatpush3.bf16.msra.mxu1 %v8592_v22  ;;  %v9249_v22 = vmov 0.0  }
0x16df   :  { %8048 = vmatprep.mubr.msk.f32.mxu0 %vm9248_vm9, %v9249_v22 }
0x16e1   :  { %8038 = vmatmul.mubr.f32.vlgmr.msra.gmra.mrb[30].mxu1 %v3373_v55 }
0x1794   :  { %v7993_v47 = vpop.f32.mrb[28].mxu1 }
0x1795   :  { %v3267_v46 = vadd.f32 %v7993_v47, %v2981_v20  ;;  %v3259_v30 = vpop.f32.mrb[29].mxu1  ;;  %v3623_v20 = vmul.f32 %v9117_v11, %v9931_v58 }
0x1797   :  { %v3631_v56 = vmul.f32 %v7242_v15, %v3623_v20 }
0x1799   :  { %v10013_v32 = vadd.f32 %v7243_v23, %v3631_v56 }
0x179b   :  { %v3645_v58 = vsel %vm81_vm1, %v10013_v32, 0.0 }
0x17b4   :  { %v8039_v12 = vpop.f32.mrb[30].mxu1 }
0x17b5   :  { %v3470_v16 = vadd.f32 %v8039_v12, %v7233_v6  ;;  %v3465_v17 = vpop.f32.mrb[31].mxu1  ;;  %v3687_v6 = vld [vmem:[%s10657_s9 + $0x18] sm:$0xff]  ;;  %v7244_v12 = vld [vmem:[%s10655_s7] ss:$0 sm:$0xff] }
0x17b7   :  { %v3473_v18 = vadd.f32 %v3470_v16, %v3267_v46  ;;  %v8606_v16 = vpack.c.bf16 %v3687_v6, %v3686_v3 }
0x17b9   :  { %v3474_v24 = vadd.f32 %v3473_v18, %v9711_v49  ;;  %v7245_v18 = vld [vmem:[%s10656_s8] ss:$0 sm:$0xff] }
0x17bb   :  { %v3477_v14 = vsel %vm81_vm1, %v3474_v24, 0.0 }
0x17bc   :  { %3478 = vadd.xlane.f32.xlu0 %v3477_v14 }
0x17c0   :  { %3643 = vadd.xlane.f32.xlu0 %v3642_v27  ;;  %v7236_v27 = vld [vmem:[%s10666_s18] ss:$0 sm:$0xff]  ;;  %s9250_s18 = smov [#allocation2]  }
0x17c4   :  { %3646 = vadd.xlane.f32.xlu0 %v3645_v58 }
0x1849   :  { %v3479_v34 = vpop.xlane.xlu0 %3478 }
0x184a   :  { %v3480_v35 = vmul.f32 0.03125, %v3479_v34 }
0x184c   :  { %v3481_v54 = vsub.f32 %v3474_v24, %v3480_v35 }
0x184d   :  { %v3644_v49 = vpop.xlane.xlu0 %3643 }
0x184e   :  { %v3648_v38 = vmul.f32 0.03125, %v3644_v49  ;;  %v3482_v45 = vmul.f32 %v3481_v54, %v3481_v54 }
0x1850   :  { %v3650_v39 = vsub.f32 %v10009_v25, %v3648_v38  ;;  %v3483_v40 = vsel %vm81_vm1, %v3482_v45, 0.0 }
0x1851   :  { %3484 = vadd.xlane.f32.xlu1 %v3483_v40  ;;  %v3647_v36 = vpop.xlane.xlu0 %3646 }
0x1852   :  { %v3649_v41 = vmul.f32 0.03125, %v3647_v36  ;;  %v3652_v60 = vmul.f32 %v3650_v39, %v3650_v39  ;;  %v10094_v36 = vld [vmem:[%s10707_s21 + $0x8] sm:$0xf] }
0x1854   :  { %v3651_v42 = vsub.f32 %v10013_v32, %v3649_v41  ;;  %v3654_v43 = vsel %vm77_vm0, %v3652_v60, 0.0  ;;  %v10100_v60 = vld [vmem:[%s10708_s25 + $0x8] sm:$0xf]  ;;  %s10724_s25 = smov 88  }
0x1855   :  { %3655 = vadd.xlane.f32.xlu0 %v3654_v43 }
0x1856   :  { %v3653_v57 = vmul.f32 %v3651_v42, %v3651_v42 }
0x1858   :  { %v3657_v8 = vsel %vm81_vm1, %v3653_v57, 0.0  ;;  %v10106_v57 = vld [vmem:[%s10707_s21] sm:$0xff]  ;;  %s10723_s21 = smov 32  }
0x1859   :  { %3658 = vadd.xlane.f32.xlu1 %v3657_v8 }
0x18de   :  { %v3485_v53 = vpop.xlane.xlu1 %3484 }
0x18df   :  { %v3486_v13 = vmul.f32 0.03125, %v3485_v53 }
0x18e1   :  { %v3487_v21 = vadd.f32 1e-05, %v3486_v13 }
0x18e2   :  { %v3656_v55 = vpop.xlane.xlu0 %3655 }
0x18e3   :  { %9118 = vrsqrt.f32 %v3487_v21  ;;  %v3660_v47 = vmul.f32 0.03125, %v3656_v55 }
0x18e5   :  { %v3662_v46 = vadd.f32 1e-05, %v3660_v47 }
0x18e6   :  { %v3659_v30 = vpop.xlane.xlu1 %3658 }
0x18e7   :  { %9120 = vrsqrt.f32 %v3662_v46  ;;  %v3661_v59 = vmul.f32 0.03125, %v3659_v30 }
0x18e9   :  { %v3663_v26 = vadd.f32 1e-05, %v3661_v59 }
0x18eb   :  { %9122 = vrsqrt.f32 %v3663_v26 }
0x18ed   :  { %v9119_v61 = vpop.eup %9118 }
0x18ee   :  { %v3489_v1 = vmul.f32 %v9119_v61, %v3481_v54 }
0x18f0   :  { %v3496_v7 = vmul.f32 %v7234_v62, %v3489_v1 }
0x18f1   :  { %v9121_v11 = vpop.eup %9120 }
0x18f2   :  { %v3503_v15 = vadd.f32 %v7235_v2, %v3496_v7  ;;  %v3666_v17 = vmul.f32 %v9121_v11, %v3650_v39 }
0x18f4   :  { %8049 = vmatmul.mubr.msk.f32.vlgmr.msra.gmra.mrb[28].mxu0 %vm77_vm0, %v3503_v15  ;;  %v3674_v19 = vmul.f32 %v7244_v12, %v3666_v17 }
0x18f5   :  { %v9123_v20 = vpop.eup %9122  ;;  %8605 = vmatpush3.bf16.msra.mxu0 %v8602_v37 }
0x18f6   :  { %v3667_v23 = vmul.f32 %v9123_v20, %v3651_v42  ;;  %8607 = vmatprep.subr.bf16.mxu0 %v8606_v16  ;;  %v10063_v24 = vadd.f32 %v7245_v18, %v3674_v19  ;;  %v10164_v19 = vld [vmem:[%s10711_s2 + $0x18] sm:$0xf] }
0x18f8   :  { %v3675_v14 = vmul.f32 %v7244_v12, %v3667_v23  ;;  %8059 = vmatprep.mubr.msk.f32.mxu0 %vm77_vm0, %v10063_v24 }
0x18f9   :  { %8609 = vmatpush3.bf16.msra.mxu0 %v8606_v16 }
0x18fa   :  { %v10067_v56 = vadd.f32 %v7245_v18, %v3675_v14  ;;  %8611 = vmatprep.subr.bf16.mxu0 %v9398_v50  ;;  %v10169_v14 = vld [vmem:[%s10711_s2 + $0x10] sm:$0xff] }
0x18fc   :  { %8060 = vmatmul.mubr.msk.f32.vlgmr.msra.gmra.mrb[30].mxu0 %vm77_vm0, %v10067_v56 }
0x18fd   :  { %8613 = vmatpush3.bf16.msra.mxu0 %v9398_v50 }
0x18fe   :  { %8615 = vmatprep.subr.bf16.mxu0 %v9419_v5 }
0x1901   :  { %8617 = vmatpush3.bf16.msra.mxu0 %v9419_v5 }
0x1902   :  { %8619 = vmatprep.subr.bf16.mxu0 %v9398_v50 }
0x19c7   :  { %v3584_v58 = vpop.f32.mrb[28].mxu0 }
0x19c8   :  { %v3585_v34 = vadd.f32 %v7236_v27, %v3584_v58  ;;  %v8050_v35 = vpop.f32.mrb[29].mxu0 }
0x19ca   :  { %3589 = vst.msk [vmem:[#allocation2] sm:$0xf] %vm3588_vm10, %v3585_v34 }
0x19cf   :  { %v8061_v54 = vpop.f32.mrb[30].mxu0 }
0x19d0   :  { %3860 = vrot.lane.b32.xlu1 %v8061_v54, %s10722_s4  ;;  %v3760_v49 = vpop.f32.mrb[31].mxu0  ;;  %v3770_v41 = vmul.f32 %v10094_v36, %v8061_v54  ;;  %v3857_v13 = vmul.f32 %v8061_v54, %v9478_v29 }
0x19d1   :  { %3858 = vrot.lane.b32.xlu0 %v3760_v49, %s10722_s4  ;;  %8070 = vmatprep.mubr.msk.f32.mxu0 %vm77_vm0, %v3760_v49  ;;  %v10083_v38 = vpack.i.bf16 %v8061_v54, %v3760_v49  ;;  %v3769_v8 = vmul.f32 %v10106_v57, %v3760_v49  ;;  %v3856_v53 = vmul.f32 %v3760_v49, %v9476_v28 }
0x19d2   :  { %8071 = vmatmul.mubr.msk.f32.vlgmr.msra.gmra.mrb[32].mxu0 %vm77_vm0, %v8061_v54 }
0x19d3   :  { %8621 = vmatpush3.bf16.msra.mxu0 %v9398_v50 }
0x19d4   :  { %8623 = vmatprep.subr.bf16.mxu0 %v9419_v5 }
0x19d7   :  { %8625 = vmatpush3.bf16.msra.mxu0 %v9419_v5 }
0x1a42   :  { %v3861_v39 = vpop.permute.xlu1 %3860 }
0x1a43   :  { %v3859_v45 = vpop.permute.xlu0 %3858 }
0x1a44   :  { %8081 = vmatprep.mubr.msk.f32.mxu0 %vm77_vm0, %v3859_v45 }
0x1a45   :  { %8082 = vmatmul.mubr.msk.f32.vlgmr.msra.gmra.mrb[34].mxu0 %vm77_vm0, %v3861_v39 }
0x1aa5   :  { %v8072_v40 = vpop.f32.mrb[32].mxu0 }
0x1aa6   :  { %v3853_v42 = vmul.f32 %v10100_v60, %v8072_v40  ;;  %v3843_v43 = vpop.f32.mrb[33].mxu0 }
0x1aa7   :  { %v3852_v4 = vmul.f32 %v10112_v0, %v3843_v43 }
0x1aa8   :  { %v10115_v48 = vadd.f32 %v3853_v42, %v3770_v41 }
0x1aa9   :  { %v10117_v9 = vadd.f32 %v3852_v4, %v3769_v8 }
0x1aab   :  { %8088 = vmatprep.mubr.msk.f32.mxu1 %vm453_vm2, %v10117_v9 }
0x1b18   :  { %v8083_v31 = vpop.f32.mrb[34].mxu0 }
0x1b19   :  { %v3932_v51 = vpop.f32.mrb[35].mxu0  ;;  %v3942_v52 = vmul.f32 %v10100_v60, %v8083_v31 }
0x1b1a   :  { %v3941_v33 = vmul.f32 %v10112_v0, %v3932_v51 }
0x1b1c   :  { %3945 = vrot.lane.b32.xlu1 %v3941_v33, %s10723_s21 }
0x1b20   :  { %3947 = vrot.lane.b32.xlu1 %v3942_v52, %s10723_s21 }
0x1b8e   :  { %v3946_v37 = vpop.permute.xlu1 %3945 }
0x1b8f   :  { %v3951_v55 = vadd.f32 %v3946_v37, %v3856_v53 }
0x1b92   :  { %v3948_v21 = vpop.permute.xlu1 %3947 }
0x1b93   :  { %v3952_v47 = vadd.f32 %v3948_v21, %v3857_v13 }
0x1b95   :  { %v10127_v46 = vpack.i.bf16 %v3952_v47, %v3951_v55 }
0x1b97   :  { %8956 = vrot.lane.b32.xlu1 %v10127_v46, %s10724_s25  ;;  %8951 = vrot.lane.b32.xlu0 %v10127_v46, %s10722_s4 }
0x1b9b   :  { %4164 = vrot.lane.b32.xlu1 %v10115_v48, %s10725_s28  ;;  %4162 = vrot.lane.b32.xlu0 %v10117_v9, %s10725_s28 }
0x1b9f   :  { %4529 = vrot.lane.b32.xlu1 %v10117_v9, %s10717_s22  ;;  %8961 = vrot.lane.b32.xlu0 %v10127_v46, %s10716_s3 }
0x1ba3   :  { %4531 = vrot.lane.b32.xlu0 %v10115_v48, %s10717_s22 }
0x1c09   :  { %v8957_v30 = vpop.permute.xlu1 %8956  ;;  %v8952_v59 = vpop.permute.xlu0 %8951 }
0x1c0a   :  { %v8959_v26 = vunpack.i.h.bf16 %v8957_v30  ;;  %v8958_v61 = vunpack.i.l.bf16 %v8957_v30  ;;  %v8954_v62 = vunpack.i.h.bf16 %v8952_v59  ;;  %v8953_v1 = vunpack.i.l.bf16 %v8952_v59 }
0x1c0c   :  { %v8626_v2 = vpack.c.bf16 %v8954_v62, %v8953_v1  ;;  %v8638_v6 = vpack.c.bf16 %v8959_v26, %v8958_v61 }
0x1c0d   :  { %v4163_v3 = vpop.permute.xlu0 %4162  ;;  %v4165_v16 = vpop.permute.xlu1 %4164 }
0x1c0e   :  { %8628 = vmatprep.subr.msk.bf16.mxu1 %vm9500_vm3, %v8626_v2 }
0x1c0f   :  { %8631 = vmatpush3.bf16.xpose.msk.msra.mxu1 %vm9500_vm3, %v8626_v2 }
0x1c10   :  { %8640 = vmatprep.subr.msk.bf16.mxu1 %vm9500_vm3, %v8638_v6 }
0x1c11   :  { %v8962_v7 = vpop.permute.xlu0 %8961  ;;  %v4530_v17 = vpop.permute.xlu1 %4529 }
0x1c12   :  { %v8964_v11 = vunpack.i.h.bf16 %v8962_v7  ;;  %v8963_v12 = vunpack.i.l.bf16 %v8962_v7 }
0x1c14   :  { %v8650_v15 = vpack.c.bf16 %v8964_v11, %v8963_v12 }
0x1c15   :  { %v4532_v18 = vpop.permute.xlu0 %4531 }
0x1c16   :  { %8089 = vmatmul.mubr.msk.f32.vlgmr.msra.gmra.mrb[32].mxu1 %vm453_vm2, %v10115_v48 }
0x1c17   :  { %8643 = vmatpush3.bf16.xpose.msk.msra.mxu1 %vm9500_vm3, %v8638_v6  ;;  %8102 = vmatprep.mubr.msk.f32.mxu1 %vm453_vm2, %v4163_v3 }
0x1c18   :  { %8652 = vmatprep.subr.msk.bf16.mxu1 %vm9500_vm3, %v8650_v15 }
0x1c1e   :  { %8103 = vmatmul.mubr.msk.f32.vlgmr.msra.gmra.mrb[34].mxu1 %vm453_vm2, %v4165_v16 }
0x1c1f   :  { %8655 = vmatpush3.bf16.xpose.msk.msra.mxu1 %vm9500_vm3, %v8650_v15  ;;  %8126 = vmatprep.mubr.msk.f32.mxu1 %vm453_vm2, %v4530_v17 }
0x1c26   :  { %8127 = vmatmul.mubr.msk.f32.vlgmr.msra.gmra.mrb[36].mxu1 %vm453_vm2, %v4532_v18 }
0x1ce9   :  { %v8090_v20 = vpop.f32.mrb[32].mxu1 }
0x1cea   :  { %v4049_v23 = vmul.f32 0.35355338, %v8090_v20  ;;  %v4039_v27 = vpop.f32.mrb[33].mxu1 }
0x1ceb   :  { %v4048_v58 = vmul.f32 0.35355338, %v4039_v27 }
0x1cec   :  { %v4051_v34 = vadd.f32 %v10164_v19, %v4049_v23 }
0x1ced   :  { %v4050_v35 = vadd.f32 %v10169_v14, %v4048_v58 }
0x1cee   :  { %v4055_v54 = vsel %vm547_vm4, %v4051_v34, -inf }
0x1cef   :  { %4056 = vmax.xlane.f32.xlu0 %v4055_v54  ;;  %v4052_v49 = vsel %vm543_vm5, %v4050_v35, -inf }
0x1cf0   :  { %4053 = vmax.xlane.f32.xlu1 %v4052_v49 }
0x1cf1   :  { %v8104_v45 = vpop.f32.mrb[34].mxu1 }
0x1cf2   :  { %v4244_v39 = vpop.f32.mrb[35].mxu1  ;;  %v4254_v40 = vmul.f32 0.35355338, %v8104_v45 }
0x1cf3   :  { %v4253_v41 = vmul.f32 0.35355338, %v4244_v39 }
0x1cf4   :  { %v4256_v43 = vadd.f32 %v10164_v19, %v4254_v40 }
0x1cf5   :  { %v4255_v42 = vadd.f32 %v10169_v14, %v4253_v41 }
0x1cf6   :  { %v4260_v51 = vsel %vm547_vm4, %v4256_v43, -inf }
0x1cf7   :  { %v4257_v8 = vsel %vm543_vm5, %v4255_v42, -inf }
0x1cf8   :  { %4258 = vmax.xlane.f32.xlu0 %v4257_v8 }
0x1cf9   :  { %v8128_v4 = vpop.f32.mrb[36].mxu1 }
0x1cfa   :  { %v4611_v31 = vpop.f32.mrb[37].mxu1  ;;  %v4621_v17 = vmul.f32 0.35355338, %v8128_v4 }
0x1cfb   :  { %v4620_v15 = vmul.f32 0.35355338, %v4611_v31  ;;  %v5105_v31 = vld [vmem:[%s10659_s11] sm:$0xff] }
0x1cfc   :  { %4261 = vmax.xlane.f32.xlu0 %v4260_v51  ;;  %v5106_v51 = vld [vmem:[%s10659_s11 + $0x8] sm:$0xff] }
0x1cfd   :  { %v10194_v16 = vadd.f32 %v10169_v14, %v4620_v15 }
0x1cff   :  { %v4624_v18 = vsel %vm543_vm5, %v10194_v16, -inf }
0x1d7c   :  { %v4057_v33 = vpop.xlane.xlu0 %4056 }
0x1d7d   :  { %v4059_v52 = vsub.f32 %v4051_v34, %v4057_v33  ;;  %v4054_v37 = vpop.xlane.xlu1 %4053 }
0x1d7e   :  { %v4058_v53 = vsub.f32 %v4050_v35, %v4054_v37 }
0x1d7f   :  { %v4062_v13 = vmul.f32 1.442695, %v4059_v52 }
0x1d80   :  { %v4060_v21 = vmul.f32 1.442695, %v4058_v53 }
0x1d81   :  { %9124 = vpow2.f32 %v4062_v13 }
0x1d82   :  { %9126 = vpow2.f32 %v4060_v21 }
0x1d85   :  { %v4259_v55 = vpop.xlane.xlu0 %4258 }
0x1d86   :  { %v4263_v47 = vsub.f32 %v4255_v42, %v4259_v55  ;;  %v8674_v55 = vpack.c.bf16 %v5106_v51, %v5105_v31 }
0x1d88   :  { %v4265_v30 = vmul.f32 1.442695, %v4263_v47 }
0x1d89   :  { %v4262_v59 = vpop.xlane.xlu0 %4261 }
0x1d8a   :  { %9128 = vpow2.f32 %v4265_v30  ;;  %v4264_v26 = vsub.f32 %v4256_v43, %v4262_v59  ;;  %v5107_v59 = vld [vmem:[%s10659_s11 + $0x10] sm:$0xff] }
0x1d8b   :  { %v9125_v61 = vpop.eup %9124 }
0x1d8c   :  { %v9127_v62 = vpop.eup %9126  ;;  %v4267_v1 = vmul.f32 1.442695, %v4264_v26  ;;  %v4067_v2 = vsel %vm547_vm4, %v9125_v61, 0.0  ;;  %v5108_v26 = vld [vmem:[%s10659_s11 + $0x18] sm:$0xff] }
0x1d8d   :  { %4068 = vadd.xlane.f32.xlu0 %v4067_v2  ;;  %v4064_v3 = vsel %vm543_vm5, %v9127_v62, 0.0 }
0x1d8e   :  { %9130 = vpow2.f32 %v4267_v1  ;;  %4065 = vadd.xlane.f32.xlu1 %v4064_v3 }
0x1d94   :  { %v9129_v6 = vpop.eup %9128 }
0x1d95   :  { %v4269_v7 = vsel %vm543_vm5, %v9129_v6, 0.0 }
0x1d96   :  { %4270 = vadd.xlane.f32.xlu1 %v4269_v7 }
0x1d98   :  { %v9131_v11 = vpop.eup %9130 }
0x1d99   :  { %v4272_v12 = vsel %vm547_vm4, %v9131_v11, 0.0 }
0x1d9a   :  { %4273 = vadd.xlane.f32.xlu0 %v4272_v12 }
0x1da7   :  { %8966 = vrot.lane.b32.xlu1 %v10083_v38, %s10715_s26 }
0x1dab   :  { %8976 = vrot.lane.b32.xlu1 %v10127_v46, %s10719_s0  ;;  %v4623_v46 = vadd.f32 %v10164_v19, %v4621_v17 }
0x1dad   :  { %v4627_v20 = vsel %vm547_vm4, %v4623_v46, -inf }
0x1daf   :  { %4817 = vrot.lane.b32.xlu1 %v10117_v9, %s10718_s29 }
0x1db0   :  { %8971 = vrot.lane.b32.xlu0 %v10083_v38, %s10714_s24 }
0x1db3   :  { %4819 = vrot.lane.b32.xlu1 %v10115_v48, %s10718_s29 }
0x1dcf   :  { %4625 = vmax.xlane.f32.xlu0 %v4624_v18 }
0x1dd7   :  { %4628 = vmax.xlane.f32.xlu1 %v4627_v20 }
0x1e1a   :  { %v4069_v23 = vpop.xlane.xlu0 %4068 }
0x1e1b   :  { %v4066_v9 = vpop.xlane.xlu1 %4065 }
0x1e1c   :  { %9132 = vrcp.f32 %v4066_v9 }
0x1e1d   :  { %9134 = vrcp.f32 %v4069_v23 }
0x1e23   :  { %v4271_v27 = vpop.xlane.xlu1 %4270 }
0x1e24   :  { %9136 = vrcp.f32 %v4271_v27 }
0x1e26   :  { %v9133_v48 = vpop.eup %9132 }
0x1e27   :  { %v4274_v58 = vpop.xlane.xlu0 %4273  ;;  %v8967_v34 = vpop.permute.xlu1 %8966  ;;  %v4071_v35 = vmul.f32 %v9133_v48, %v9127_v62 }
0x1e28   :  { %9138 = vrcp.f32 %v4274_v58  ;;  %v8969_v54 = vunpack.i.h.bf16 %v8967_v34  ;;  %v8968_v49 = vunpack.i.l.bf16 %v8967_v34  ;;  %v9135_v39 = vpop.eup %9134 }
0x1e29   :  { %8095 = vmatprep.mubr.msk.f32.mxu0 %vm543_vm5, %v4071_v35  ;;  %v4073_v52 = vmul.f32 %v9135_v39, %v9125_v61  ;;  %v8678_v61 = vpack.c.bf16 %v5108_v26, %v5107_v59 }
0x1e2a   :  { %v8632_v45 = vpack.c.bf16 %v8969_v54, %v8968_v49 }
0x1e2b   :  { %v8972_v40 = vpop.permute.xlu0 %8971  ;;  %v8977_v41 = vpop.permute.xlu1 %8976 }
0x1e2c   :  { %v8974_v42 = vunpack.i.h.bf16 %v8972_v40  ;;  %v8973_v43 = vunpack.i.l.bf16 %v8972_v40  ;;  %v8979_v8 = vunpack.i.h.bf16 %v8977_v41  ;;  %v8978_v4 = vunpack.i.l.bf16 %v8977_v41  ;;  %8634 = vmatprep.subr.msk.bf16.mxu0 %vm9571_vm8, %v8632_v45 }
0x1e2d   :  { %8637 = vmatpush3.bf16.msk.msra.mxu0 %vm9571_vm8, %v8632_v45 }
0x1e2e   :  { %v9137_v33 = vpop.eup %9136  ;;  %v8644_v37 = vpack.c.bf16 %v8974_v42, %v8973_v43  ;;  %v8662_v53 = vpack.c.bf16 %v8979_v8, %v8978_v4 }
0x1e2f   :  { %v4818_v13 = vpop.permute.xlu1 %4817  ;;  %v4276_v21 = vmul.f32 %v9137_v33, %v9129_v6 }
0x1e30   :  { %8096 = vmatmul.mubr.msk.f32.vlgmr.msra.gmra.mrb[36].mxu0 %vm543_vm5, %v4073_v52  ;;  %8646 = vmatprep.subr.msk.bf16.mxu0 %vm9571_vm8, %v8644_v37 }
0x1e31   :  { %8664 = vmatprep.subr.msk.bf16.mxu1 %vm9500_vm3, %v8662_v53  ;;  %8145 = vmatprep.mubr.msk.f32.mxu1 %vm453_vm2, %v4818_v13 }
0x1e32   :  { %v9139_v47 = vpop.eup %9138  ;;  %8649 = vmatpush3.bf16.msk.msra.mxu0 %vm9571_vm8, %v8644_v37  ;;  %8109 = vmatprep.mubr.msk.f32.mxu0 %vm543_vm5, %v4276_v21  ;;  %v3955_v37 = vld [vmem:[%s10658_s10 + $0x10] sm:$0xff] }
0x1e33   :  { %v4278_v30 = vmul.f32 %v9139_v47, %v9131_v11  ;;  %8667 = vmatpush3.bf16.xpose.msk.msra.mxu1 %vm9500_vm3, %v8662_v53  ;;  %v4820_v62 = vpop.permute.xlu1 %4819 }
0x1e34   :  { %8675 = vmatprep.subr.bf16.mxu1 %v8674_v55 }
0x1e35   :  { %8110 = vmatmul.mubr.msk.f32.vlgmr.msra.gmra.mrb[38].mxu0 %vm543_vm5, %v4278_v30 }
0x1e3a   :  { %8146 = vmatmul.mubr.msk.f32.vlgmr.msra.gmra.mrb[38].mxu1 %vm453_vm2, %v4820_v62 }
0x1e3b   :  { %8677 = vmatpush3.bf16.msra.mxu1 %v8674_v55  ;;  %8168 = vmatprep.mubr.msk.f32.mxu1 %vm77_vm0, %v10063_v24 }
0x1e3c   :  { %8679 = vmatprep.subr.bf16.mxu1 %v8678_v61 }
0x1e3f   :  { %8681 = vmatpush3.bf16.msra.mxu1 %v8678_v61 }
0x1e42   :  { %8169 = vmatmul.mubr.msk.f32.vlgmr.msra.gmra.mrb[40].mxu1 %vm77_vm0, %v10067_v56  ;;  %v3954_v56 = vld [vmem:[%s10658_s10 + $0x8] sm:$0xff] }
0x1e43   :  { %8112 = vmatprep.subr.mxu0 %v3954_v56 }
0x1e44   :  { %8113 = vmatpush3.msra.mxu0 %v3954_v56 }
0x1e5c   :  { %v4626_v1 = vpop.xlane.xlu0 %4625 }
0x1e5d   :  { %v4630_v2 = vsub.f32 %v10194_v16, %v4626_v1  ;;  %v3953_v16 = vld [vmem:[%s10658_s10] sm:$0xff] }
0x1e5e   :  { %8117 = vmatprep.subr.mxu0 %v3953_v16 }
0x1e5f   :  { %v4632_v7 = vmul.f32 1.442695, %v4630_v2 }
0x1e64   :  { %v4629_v3 = vpop.xlane.xlu1 %4628 }
0x1e65   :  { %v4631_v6 = vsub.f32 %v4623_v46, %v4629_v3 }
0x1e67   :  { %v4634_v11 = vmul.f32 1.442695, %v4631_v6 }
0x1e69   :  { %9140 = vpow2.f32 %v4634_v11 }
0x1e6a   :  { %9142 = vpow2.f32 %v4632_v7 }
0x1e73   :  { %v9141_v12 = vpop.eup %9140 }
0x1e74   :  { %v4639_v15 = vsel %vm547_vm4, %v9141_v12, 0.0  ;;  %v9143_v17 = vpop.eup %9142 }
0x1e75   :  { %4640 = vadd.xlane.f32.xlu0 %v4639_v15  ;;  %v4636_v24 = vsel %vm543_vm5, %v9143_v17, 0.0 }
0x1e79   :  { %4637 = vadd.xlane.f32.xlu0 %v4636_v24 }
0x1e8f   :  { %8981 = vrot.lane.b32.xlu0 %v10083_v38, %s10726_s1 }
0x1f02   :  { %v4641_v18 = vpop.xlane.xlu0 %4640 }
0x1f03   :  { %v8097_v46 = vpop.f32.mrb[36].mxu0 }
0x1f04   :  { %v4153_v20 = vpop.f32.mrb[37].mxu0 }
0x1f06   :  { %v4638_v9 = vpop.xlane.xlu0 %4637 }
0x1f07   :  { %9144 = vrcp.f32 %v4638_v9  ;;  %v7288_v9 = vld [vmem:[%s10660_s12] ss:$0 sm:$0xff] }
0x1f08   :  { %9146 = vrcp.f32 %v4641_v18  ;;  %v8111_v23 = vpop.f32.mrb[38].mxu0  ;;  %v5209_v18 = vld [vmem:[%s10661_s13] sm:$0xff] }
0x1f09   :  { %v4358_v27 = vpop.f32.mrb[39].mxu0 }
0x1f0a   :  { %v8982_v48 = vpop.permute.xlu0 %8981  ;;  %8114 = vmatprep.mubr.msk.f32.mxu0 %vm453_vm2, %v4358_v27 }
0x1f0b   :  { %v8984_v58 = vunpack.i.h.bf16 %v8982_v48  ;;  %v8983_v34 = vunpack.i.l.bf16 %v8982_v48  ;;  %8115 = vmatmul.mubr.msk.f32.vlgmr.msra.gmra.mrb[40].mxu0 %vm453_vm2, %v8111_v23 }
0x1f0c   :  { %8119 = vmatprep.mubr.msk.f32.mxu0 %vm453_vm2, %v4153_v20  ;;  %8118 = vmatpush3.msra.mxu0 %v3953_v16 }
0x1f0d   :  { %v8656_v35 = vpack.c.bf16 %v8984_v58, %v8983_v34  ;;  %v8147_v54 = vpop.f32.mrb[38].mxu1 }
0x1f0e   :  { %v4899_v49 = vpop.f32.mrb[39].mxu1  ;;  %v4909_v45 = vmul.f32 0.35355338, %v8147_v54 }
0x1f0f   :  { %v4908_v39 = vmul.f32 0.35355338, %v4899_v49  ;;  %8658 = vmatprep.subr.msk.bf16.mxu0 %vm9571_vm8, %v8656_v35 }
0x1f10   :  { %v4911_v8 = vadd.f32 %v10164_v19, %v4909_v45 }
0x1f11   :  { %v9145_v40 = vpop.eup %9144  ;;  %v4910_v41 = vadd.f32 %v10169_v14, %v4908_v39 }
0x1f12   :  { %v9147_v42 = vpop.eup %9146  ;;  %v4643_v43 = vmul.f32 %v9145_v40, %v9143_v17  ;;  %v4915_v52 = vsel %vm547_vm4, %v4911_v8, -inf  ;;  %v3956_v17 = vld [vmem:[%s10658_s10 + $0x18] sm:$0xff]  ;;  %v5211_v40 = vld [vmem:[%s10661_s13 + $0x10] sm:$0xff] }
0x1f13   :  { %v4912_v4 = vsel %vm543_vm5, %v4910_v41, -inf  ;;  %8120 = vmatmul.mubr.msk.f32.vlgmr.msra.gmra.mrb[40].mxu0 %vm453_vm2, %v8097_v46  ;;  %v4645_v31 = vmul.f32 %v9147_v42, %v9141_v12  ;;  %v5210_v46 = vld [vmem:[%s10661_s13 + $0x8] sm:$0xff] }
0x1f14   :  { %4913 = vmax.xlane.f32.xlu1 %v4912_v4  ;;  %8661 = vmatpush3.bf16.msk.msra.mxu0 %vm9571_vm8, %v8656_v35  ;;  %v8682_v20 = vpack.c.bf16 %v5210_v46, %v5209_v18 }
0x1f15   :  { %v8170_v51 = vpop.f32.mrb[40].mxu1  ;;  %8133 = vmatprep.mubr.msk.f32.mxu0 %vm543_vm5, %v4643_v43  ;;  %8136 = vmatprep.subr.mxu0 %v3955_v37 }
0x1f16   :  { %v5182_v33 = vpop.f32.mrb[41].mxu1  ;;  %v5188_v54 = vadd.f32 %v8170_v51, %v7288_v9  ;;  %v5213_v51 = vld [vmem:[%s10661_s13 + $0x20] sm:$0xff] }
0x1f17   :  { %8134 = vmatmul.mubr.msk.f32.vlgmr.msra.gmra.mrb[42].mxu0 %vm543_vm5, %v4645_v31  ;;  %v5183_v23 = vadd.f32 %v7288_v9, %v5182_v33 }
0x1f18   :  { %4916 = vmax.xlane.f32.xlu1 %v4915_v52  ;;  %8137 = vmatpush3.msra.mxu0 %v3955_v37  ;;  %v5194_v45 = vmul.f32 0.044715, %v5188_v54  ;;  %v5214_v52 = vld [vmem:[%s10661_s13 + $0x28] sm:$0xff] }
0x1f19   :  { %v5193_v27 = vmul.f32 0.044715, %v5183_v23 }
0x1f1a   :  { %v5196_v42 = vmul.f32 %v5194_v45, %v5188_v54 }
0x1f1b   :  { %v5195_v48 = vmul.f32 %v5193_v27, %v5183_v23 }
0x1f1c   :  { %v5198_v37 = vmul.f32 %v5196_v42, %v5188_v54  ;;  %v7296_v42 = vld [vmem:[%s10657_s9 + $0x20] sm:$0xff] }
0x1f1d   :  { %v5197_v58 = vmul.f32 %v5195_v48, %v5183_v23 }
0x1f1f   :  { %v5199_v34 = vadd.f32 %v5197_v58, %v5183_v23 }
0x1f21   :  { %v5201_v35 = vmul.f32 0.7978846, %v5199_v34 }
0x1fa1   :  { %v4914_v53 = vpop.xlane.xlu1 %4913 }
0x1fa2   :  { %v4918_v13 = vsub.f32 %v4910_v41, %v4914_v53  ;;  %v5212_v41 = vld [vmem:[%s10661_s13 + $0x18] sm:$0xff]  ;;  %v8690_v53 = vpack.c.bf16 %v5214_v52, %v5213_v51 }
0x1fa3   :  { %v8686_v31 = vpack.c.bf16 %v5212_v41, %v5211_v40 }
0x1fa4   :  { %v4920_v47 = vmul.f32 1.442695, %v4918_v13  ;;  %v5215_v13 = vld [vmem:[%s10661_s13 + $0x30] sm:$0xff] }
0x1fa5   :  { %v4917_v21 = vpop.xlane.xlu1 %4916 }
0x1fa6   :  { %v4919_v55 = vsub.f32 %v4911_v8, %v4917_v21  ;;  %v5191_v8 = vmul.f32 0.5, %v5183_v23  ;;  %v5216_v21 = vld [vmem:[%s10661_s13 + $0x38] sm:$0xff] }
0x1fa8   :  { %v4922_v30 = vmul.f32 1.442695, %v4919_v55  ;;  %v5200_v55 = vadd.f32 %v5198_v37, %v5188_v54 }
0x1faa   :  { %9148 = vpow2.f32 %v4922_v30  ;;  %v5217_v30 = vld [vmem:[%s10661_s13 + $0x40] sm:$0xff] }
0x1fab   :  { %9150 = vpow2.f32 %v4920_v47  ;;  %v8694_v47 = vpack.c.bf16 %v5216_v21, %v5215_v13 }
0x1fb4   :  { %v9149_v59 = vpop.eup %9148 }
0x1fb5   :  { %v4927_v26 = vsel %vm547_vm4, %v9149_v59, 0.0  ;;  %v9151_v61 = vpop.eup %9150 }
0x1fb6   :  { %4928 = vadd.xlane.f32.xlu1 %v4927_v26  ;;  %v4924_v62 = vsel %vm543_vm5, %v9151_v61, 0.0  ;;  %v5202_v26 = vmul.f32 0.7978846, %v5200_v55 }
0x1fba   :  { %4925 = vadd.xlane.f32.xlu1 %v4924_v62  ;;  %v5219_v62 = vld [vmem:[%s10661_s13 + $0x50] sm:$0xff] }
0x1fcb   :  { %8986 = vrot.lane.b32.xlu1 %v10083_v38, %s10727_s5 }
0x1fea   :  { %v8135_v1 = vpop.f32.mrb[42].mxu0 }
0x1feb   :  { %v4725_v2 = vpop.f32.mrb[43].mxu0 }
0x1fec   :  { %8138 = vmatprep.mubr.msk.f32.mxu0 %vm453_vm2, %v4725_v2 }
0x1fed   :  { %8139 = vmatmul.mubr.msk.f32.vlgmr.msra.gmra.mrb[40].mxu0 %vm453_vm2, %v8135_v1  ;;  %v5220_v1 = vld [vmem:[%s10661_s13 + $0x58] sm:$0xff] }
0x1fee   :  { %v8702_v2 = vpack.c.bf16 %v5220_v1, %v5219_v62 }
0x2043   :  { %v4929_v3 = vpop.xlane.xlu1 %4928 }
0x2044   :  { %9152 = vrcp.f32 %v4929_v3  ;;  %v5221_v3 = vld [vmem:[%s10661_s13 + $0x60] sm:$0xff] }
0x2047   :  { %v4926_v6 = vpop.xlane.xlu1 %4925 }
0x2048   :  { %9154 = vrcp.f32 %v4926_v6  ;;  %v5222_v6 = vld [vmem:[%s10661_s13 + $0x68] sm:$0xff] }
0x2049   :  { %9156 = vtanh.f32 %v5201_v35 }
0x204a   :  { %9158 = vtanh.f32 %v5202_v26 }
0x204b   :  { %v8987_v7 = vpop.permute.xlu1 %8986 }
0x204c   :  { %v8989_v11 = vunpack.i.h.bf16 %v8987_v7  ;;  %v8988_v12 = vunpack.i.l.bf16 %v8987_v7  ;;  %v8706_v7 = vpack.c.bf16 %v5222_v6, %v5221_v3 }
0x204e   :  { %v8668_v15 = vpack.c.bf16 %v8989_v11, %v8988_v12  ;;  %v9153_v38 = vpop.eup %9152  ;;  %v5223_v11 = vld [vmem:[%s10661_s13 + $0x70] sm:$0xff]  ;;  %v5224_v12 = vld [vmem:[%s10661_s13 + $0x78] sm:$0xff] }
0x204f   :  { %v4933_v16 = vmul.f32 %v9153_v38, %v9149_v59  ;;  %v5218_v59 = vld [vmem:[%s10661_s13 + $0x48] sm:$0xff] }
0x2050   :  { %8670 = vmatprep.subr.msk.bf16.mxu0 %vm9571_vm8, %v8668_v15 }
0x2051   :  { %8673 = vmatpush3.bf16.msk.msra.mxu0 %vm9571_vm8, %v8668_v15  ;;  %v8710_v15 = vpack.c.bf16 %v5224_v12, %v5223_v11 }
0x2052   :  { %v9155_v24 = vpop.eup %9154  ;;  %8155 = vmatprep.subr.mxu0 %v3956_v17 }
0x2053   :  { %v4931_v56 = vmul.f32 %v9155_v24, %v9151_v61  ;;  %v9157_v49 = vpop.eup %9156  ;;  %v8698_v61 = vpack.c.bf16 %v5218_v59, %v5217_v30  ;;  %v5192_v24 = vmul.f32 0.5, %v5188_v54  ;;  %v7295_v59 = vld [vmem:[%s10656_s8 + $0x1] ss:$0 sm:$0xff] }
0x2054   :  { %v5205_v39 = vadd.f32 1.0, %v9157_v49 }
0x2055   :  { %8152 = vmatprep.mubr.msk.f32.mxu0 %vm543_vm5, %v4931_v56 }
0x2056   :  { %8153 = vmatmul.mubr.msk.f32.vlgmr.msra.gmra.mrb[44].mxu0 %vm543_vm5, %v4933_v16  ;;  %v5207_v33 = vmul.f32 %v5205_v39, %v5191_v8  ;;  %v7291_v16 = vld [vmem:[%s10662_s14] ss:$0 sm:$0xff] }
0x2057   :  { %8156 = vmatpush3.msra.mxu0 %v3956_v17  ;;  %v9159_v17 = vpop.eup %9158 }
0x2058   :  { %8683 = vmatprep.subr.bf16.mxu0 %v8682_v20  ;;  %v5206_v38 = vadd.f32 1.0, %v9159_v17 }
0x205a   :  { %v5208_v56 = vmul.f32 %v5206_v38, %v5192_v24 }
0x2129   :  { %v8154_v43 = vpop.f32.mrb[44].mxu0 }
0x212a   :  { %v5013_v4 = vpop.f32.mrb[45].mxu0 }
0x212b   :  { %8157 = vmatprep.mubr.msk.f32.mxu0 %vm453_vm2, %v5013_v4  ;;  %v7298_v4 = vld [vmem:[%s10657_s9 + $0x30] sm:$0xff] }
0x212c   :  { %8158 = vmatmul.mubr.msk.f32.vlgmr.msra.gmra.mrb[40].mxu0 %vm453_vm2, %v8154_v43  ;;  %v7297_v43 = vld [vmem:[%s10657_s9 + $0x28] sm:$0xff] }
0x212d   :  { %8685 = vmatpush3.bf16.msra.mxu0 %v8682_v20  ;;  %8203 = vmatprep.mubr.f32.mxu0 %v5207_v33  ;;  %v8714_v8 = vpack.c.bf16 %v7297_v43, %v7296_v42 }
0x212e   :  { %8687 = vmatprep.subr.bf16.mxu0 %v8686_v31 }
0x212f   :  { %8715 = vmatprep.subr.bf16.mxu1 %v8714_v8 }
0x2130   :  { %8717 = vmatpush3.bf16.msra.mxu1 %v8714_v8 }
0x2131   :  { %8689 = vmatpush3.bf16.msra.mxu0 %v8686_v31  ;;  %v7299_v31 = vld [vmem:[%s10657_s9 + $0x38] sm:$0xff] }
0x2132   :  { %8691 = vmatprep.subr.bf16.mxu0 %v8690_v53  ;;  %v8718_v33 = vpack.c.bf16 %v7299_v31, %v7298_v4 }
0x2134   :  { %8719 = vmatprep.subr.bf16.mxu1 %v8718_v33 }
0x2135   :  { %8693 = vmatpush3.bf16.msra.mxu0 %v8690_v53  ;;  %8721 = vmatpush3.bf16.msra.mxu1 %v8718_v33 }
0x2136   :  { %8695 = vmatprep.subr.bf16.mxu0 %v8694_v47  ;;  %8723 = vmatprep.subr.bf16.mxu1 %v9398_v50 }
0x2139   :  { %8697 = vmatpush3.bf16.msra.mxu0 %v8694_v47  ;;  %v7294_v47 = vld [vmem:[%s10655_s7 + $0x1] ss:$0 sm:$0xff] }
0x213a   :  { %8699 = vmatprep.subr.bf16.mxu0 %v8698_v61 }
0x213d   :  { %8701 = vmatpush3.bf16.msra.mxu0 %v8698_v61 }
0x213e   :  { %8703 = vmatprep.subr.bf16.mxu0 %v8702_v2 }
0x2141   :  { %8705 = vmatpush3.bf16.msra.mxu0 %v8702_v2 }
0x2142   :  { %8707 = vmatprep.subr.bf16.mxu0 %v8706_v7 }
0x2145   :  { %8709 = vmatpush3.bf16.msra.mxu0 %v8706_v7 }
0x2146   :  { %8711 = vmatprep.subr.bf16.mxu0 %v8710_v15 }
0x2149   :  { %8713 = vmatpush3.bf16.msra.mxu0 %v8710_v15 }
0x214c   :  { %8204 = vmatmul.mubr.f32.vlgmr.msra.gmra.mrb[40].mxu0 %v5208_v56 }
0x221f   :  { %v8205_v18 = vpop.f32.mrb[40].mxu0 }
0x2220   :  { %v5304_v46 = vadd.f32 %v8205_v18, %v7291_v16  ;;  %v5298_v20 = vpop.f32.mrb[41].mxu0 }
0x2221   :  { %v5299_v9 = vadd.f32 %v7291_v16, %v5298_v20 }
0x2222   :  { %v10334_v23 = vadd.f32 %v5304_v46, %v10013_v32 }
0x2223   :  { %v5309_v27 = vadd.f32 %v5299_v9, %v10009_v25 }
0x2224   :  { %v5316_v48 = vsel %vm81_vm1, %v10334_v23, 0.0 }
0x2225   :  { %5317 = vadd.xlane.f32.xlu1 %v5316_v48  ;;  %v5313_v58 = vsel %vm77_vm0, %v5309_v27, 0.0 }
0x2226   :  { %5314 = vadd.xlane.f32.xlu0 %v5313_v58 }
0x22b2   :  { %v5318_v34 = vpop.xlane.xlu1 %5317 }
0x22b3   :  { %v5320_v35 = vmul.f32 0.03125, %v5318_v34  ;;  %v5315_v54 = vpop.xlane.xlu0 %5314 }
0x22b4   :  { %v5319_v49 = vmul.f32 0.03125, %v5315_v54 }
0x22b5   :  { %v5322_v45 = vsub.f32 %v10334_v23, %v5320_v35 }
0x22b6   :  { %v5321_v39 = vsub.f32 %v5309_v27, %v5319_v49 }
0x22b7   :  { %v5324_v41 = vmul.f32 %v5322_v45, %v5322_v45 }
0x22b8   :  { %v5323_v40 = vmul.f32 %v5321_v39, %v5321_v39 }
0x22b9   :  { %v5328_v25 = vsel %vm81_vm1, %v5324_v41, 0.0 }
0x22ba   :  { %v5325_v32 = vsel %vm77_vm0, %v5323_v40, 0.0 }
0x22bb   :  { %5326 = vadd.xlane.f32.xlu0 %v5325_v32 }
0x22bf   :  { %5329 = vadd.xlane.f32.xlu0 %v5328_v25 }
0x2348   :  { %v5327_v51 = vpop.xlane.xlu0 %5326 }
0x2349   :  { %v5331_v52 = vmul.f32 0.03125, %v5327_v51 }
0x234b   :  { %v5333_v37 = vadd.f32 1e-05, %v5331_v52 }
0x234c   :  { %v5330_v53 = vpop.xlane.xlu0 %5329 }
0x234d   :  { %9160 = vrsqrt.f32 %v5333_v37  ;;  %v5332_v13 = vmul.f32 0.03125, %v5330_v53 }
0x234f   :  { %v5334_v21 = vadd.f32 1e-05, %v5332_v13 }
0x2351   :  { %9162 = vrsqrt.f32 %v5334_v21 }
0x2357   :  { %v9161_v55 = vpop.eup %9160 }
0x2358   :  { %v5337_v30 = vmul.f32 %v9161_v55, %v5321_v39 }
0x235a   :  { %v5345_v26 = vmul.f32 %v7294_v47, %v5337_v30 }
0x235b   :  { %v9163_v61 = vpop.eup %9162 }
0x235c   :  { %v5338_v62 = vmul.f32 %v9163_v61, %v5322_v45  ;;  %v10362_v1 = vadd.f32 %v7295_v59, %v5345_v26 }
0x235e   :  { %v5346_v2 = vmul.f32 %v7294_v47, %v5338_v62  ;;  %8214 = vmatprep.mubr.msk.f32.mxu1 %vm77_vm0, %v10362_v1 }
0x2360   :  { %v10366_v3 = vadd.f32 %v7295_v59, %v5346_v2 }
0x2362   :  { %8215 = vmatmul.mubr.msk.f32.vlgmr.msra.gmra.mrb[42].mxu1 %vm77_vm0, %v10366_v3 }
0x2363   :  { %8725 = vmatpush3.bf16.msra.mxu1 %v9398_v50 }
0x2364   :  { %8727 = vmatprep.subr.bf16.mxu1 %v9419_v5 }
0x2367   :  { %8729 = vmatpush3.bf16.msra.mxu1 %v9419_v5 }
0x2368   :  { %8731 = vmatprep.subr.bf16.mxu1 %v9398_v50 }
0x2435   :  { %v8216_v6 = vpop.f32.mrb[42].mxu1 }
0x2436   :  { %5531 = vrot.lane.b32.xlu1 %v8216_v6, %s10722_s4  ;;  %v5431_v7 = vpop.f32.mrb[43].mxu1  ;;  %v5441_v38 = vmul.f32 %v10094_v36, %v8216_v6 }
0x2437   :  { %5529 = vrot.lane.b32.xlu0 %v5431_v7, %s10722_s4  ;;  %8225 = vmatprep.mubr.msk.f32.mxu1 %vm77_vm0, %v5431_v7  ;;  %v10377_v11 = vpack.i.bf16 %v8216_v6, %v5431_v7  ;;  %v5440_v16 = vmul.f32 %v10106_v57, %v5431_v7  ;;  %v5528_v57 = vmul.f32 %v8216_v6, %v9478_v29 }
0x2438   :  { %8226 = vmatmul.mubr.msk.f32.vlgmr.msra.gmra.mrb[44].mxu1 %vm77_vm0, %v8216_v6  ;;  %v5527_v48 = vmul.f32 %v5431_v7, %v9476_v28 }
0x2439   :  { %8733 = vmatpush3.bf16.msra.mxu1 %v9398_v50 }
0x243a   :  { %8735 = vmatprep.subr.bf16.mxu1 %v9419_v5 }
0x243d   :  { %8737 = vmatpush3.bf16.msra.mxu1 %v9419_v5 }
0x24a8   :  { %v5532_v15 = vpop.permute.xlu1 %5531 }
0x24a9   :  { %v5530_v12 = vpop.permute.xlu0 %5529 }
0x24aa   :  { %8236 = vmatprep.mubr.msk.f32.mxu1 %vm77_vm0, %v5530_v12 }
0x24ab   :  { %8237 = vmatmul.mubr.msk.f32.vlgmr.msra.gmra.mrb[46].mxu1 %vm77_vm0, %v5532_v15 }
0x250b   :  { %v8227_v17 = vpop.f32.mrb[44].mxu1 }
0x250c   :  { %v5524_v24 = vmul.f32 %v10100_v60, %v8227_v17  ;;  %v5514_v56 = vpop.f32.mrb[45].mxu1 }
0x250d   :  { %v5523_v50 = vmul.f32 %v10112_v0, %v5514_v56 }
0x250e   :  { %v10389_v18 = vadd.f32 %v5524_v24, %v5441_v38 }
0x250f   :  { %v10391_v46 = vadd.f32 %v5523_v50, %v5440_v16 }
0x2511   :  { %8243 = vmatprep.mubr.msk.f32.mxu1 %vm453_vm2, %v10391_v46 }
0x257e   :  { %v8238_v5 = vpop.f32.mrb[46].mxu1 }
0x257f   :  { %v5613_v20 = vmul.f32 %v10100_v60, %v8238_v5  ;;  %v5603_v9 = vpop.f32.mrb[47].mxu1 }
0x2580   :  { %v5612_v36 = vmul.f32 %v10112_v0, %v5603_v9 }
0x2581   :  { %5618 = vrot.lane.b32.xlu1 %v5613_v20, %s10723_s21 }
0x2582   :  { %5616 = vrot.lane.b32.xlu0 %v5612_v36, %s10723_s21 }
0x25f3   :  { %v5619_v27 = vpop.permute.xlu1 %5618 }
0x25f4   :  { %v5623_v58 = vadd.f32 %v5619_v27, %v5528_v57  ;;  %v5617_v34 = vpop.permute.xlu0 %5616 }
0x25f5   :  { %v5622_v35 = vadd.f32 %v5617_v34, %v5527_v48 }
0x25f7   :  { %v10401_v54 = vpack.i.bf16 %v5623_v58, %v5622_v35 }
0x25f9   :  { %8996 = vrot.lane.b32.xlu1 %v10401_v54, %s10724_s25  ;;  %8991 = vrot.lane.b32.xlu0 %v10401_v54, %s10722_s4 }
0x25fd   :  { %5835 = vrot.lane.b32.xlu1 %v10389_v18, %s10725_s28  ;;  %5833 = vrot.lane.b32.xlu0 %v10391_v46, %s10725_s28 }
0x266b   :  { %v8997_v29 = vpop.permute.xlu1 %8996  ;;  %v8992_v60 = vpop.permute.xlu0 %8991 }
0x266c   :  { %v8999_v28 = vunpack.i.h.bf16 %v8997_v29  ;;  %v8998_v0 = vunpack.i.l.bf16 %v8997_v29  ;;  %v8994_v49 = vunpack.i.h.bf16 %v8992_v60  ;;  %v8993_v45 = vunpack.i.l.bf16 %v8992_v60 }
0x266e   :  { %v8738_v39 = vpack.c.bf16 %v8994_v49, %v8993_v45  ;;  %v8750_v40 = vpack.c.bf16 %v8999_v28, %v8998_v0 }
0x266f   :  { %v5834_v32 = vpop.permute.xlu0 %5833  ;;  %v5836_v41 = vpop.permute.xlu1 %5835 }
0x2670   :  { %8740 = vmatprep.subr.msk.bf16.mxu1 %vm9500_vm3, %v8738_v39 }
0x2671   :  { %8743 = vmatpush3.bf16.xpose.msk.msra.mxu1 %vm9500_vm3, %v8738_v39 }
0x2672   :  { %8752 = vmatprep.subr.msk.bf16.mxu1 %vm9500_vm3, %v8750_v40 }
0x2678   :  { %8244 = vmatmul.mubr.msk.f32.vlgmr.msra.gmra.mrb[48].mxu1 %vm453_vm2, %v10389_v18 }
0x2679   :  { %8755 = vmatpush3.bf16.xpose.msk.msra.mxu1 %vm9500_vm3, %v8750_v40  ;;  %8257 = vmatprep.mubr.msk.f32.mxu1 %vm453_vm2, %v5834_v32 }
0x2680   :  { %8258 = vmatmul.mubr.msk.f32.vlgmr.msra.gmra.mrb[50].mxu1 %vm453_vm2, %v5836_v41  ;;  %v7307_v41 = vld [vmem:[%s10658_s10 + $0x28] sm:$0xff] }
0x274b   :  { %v8245_v25 = vpop.f32.mrb[48].mxu1 }
0x274c   :  { %v5720_v42 = vmul.f32 0.35355338, %v8245_v25  ;;  %v5710_v43 = vpop.f32.mrb[49].mxu1 }
0x274d   :  { %v5719_v8 = vmul.f32 0.35355338, %v5710_v43 }
0x274e   :  { %v5722_v4 = vadd.f32 %v10164_v19, %v5720_v42 }
0x274f   :  { %v5721_v31 = vadd.f32 %v10169_v14, %v5719_v8 }
0x2750   :  { %v5726_v33 = vsel %vm547_vm4, %v5722_v4, -inf }
0x2751   :  { %5727 = vmax.xlane.f32.xlu1 %v5726_v33  ;;  %v5723_v51 = vsel %vm543_vm5, %v5721_v31, -inf }
0x2752   :  { %5724 = vmax.xlane.f32.xlu0 %v5723_v51 }
0x2753   :  { %v8259_v52 = vpop.f32.mrb[50].mxu1 }
0x2754   :  { %v5915_v37 = vpop.f32.mrb[51].mxu1  ;;  %v5925_v53 = vmul.f32 0.35355338, %v8259_v52 }
0x2755   :  { %v5924_v13 = vmul.f32 0.35355338, %v5915_v37 }
0x2756   :  { %v5927_v55 = vadd.f32 %v10164_v19, %v5925_v53 }
0x2757   :  { %v5926_v21 = vadd.f32 %v10169_v14, %v5924_v13 }
0x2758   :  { %v5931_v30 = vsel %vm547_vm4, %v5927_v55, -inf }
0x2759   :  { %v5928_v47 = vsel %vm543_vm5, %v5926_v21, -inf }
0x275a   :  { %5929 = vmax.xlane.f32.xlu0 %v5928_v47 }
0x275e   :  { %5932 = vmax.xlane.f32.xlu0 %v5931_v30 }
0x27de   :  { %v5728_v59 = vpop.xlane.xlu1 %5727 }
0x27df   :  { %v5730_v26 = vsub.f32 %v5722_v4, %v5728_v59  ;;  %v5725_v61 = vpop.xlane.xlu0 %5724  ;;  %v7346_v59 = vld [vmem:[%s10659_s11 + $0x20] sm:$0xff] }
0x27e0   :  { %v5729_v62 = vsub.f32 %v5721_v31, %v5725_v61  ;;  %v7306_v31 = vld [vmem:[%s10658_s10 + $0x20] sm:$0xff] }
0x27e1   :  { %v5733_v2 = vmul.f32 1.442695, %v5730_v26  ;;  %8272 = vmatprep.subr.mxu1 %v7306_v31  ;;  %v7347_v26 = vld [vmem:[%s10659_s11 + $0x28] sm:$0xff] }
0x27e2   :  { %v5731_v6 = vmul.f32 1.442695, %v5729_v62  ;;  %8273 = vmatpush3.msra.mxu1 %v7306_v31  ;;  %v8786_v61 = vpack.c.bf16 %v7347_v26, %v7346_v59 }
0x27e3   :  { %9164 = vpow2.f32 %v5733_v2  ;;  %v7348_v2 = vld [vmem:[%s10659_s11 + $0x30] sm:$0xff] }
0x27e4   :  { %9166 = vpow2.f32 %v5731_v6  ;;  %v7349_v6 = vld [vmem:[%s10659_s11 + $0x38] sm:$0xff] }
0x27e7   :  { %v5930_v7 = vpop.xlane.xlu0 %5929 }
0x27e8   :  { %v5934_v12 = vsub.f32 %v5926_v21, %v5930_v7  ;;  %v8790_v7 = vpack.c.bf16 %v7349_v6, %v7348_v2 }
0x27ea   :  { %v5936_v15 = vmul.f32 1.442695, %v5934_v12 }
0x27eb   :  { %v5933_v14 = vpop.xlane.xlu0 %5932 }
0x27ec   :  { %9168 = vpow2.f32 %v5936_v15  ;;  %v5935_v19 = vsub.f32 %v5927_v55, %v5933_v14 }
0x27ed   :  { %v9165_v17 = vpop.eup %9164 }
0x27ee   :  { %v9167_v38 = vpop.eup %9166  ;;  %v5938_v24 = vmul.f32 1.442695, %v5935_v19  ;;  %v5738_v56 = vsel %vm547_vm4, %v9165_v17, 0.0 }
0x27ef   :  { %5739 = vadd.xlane.f32.xlu1 %v5738_v56  ;;  %v5735_v16 = vsel %vm543_vm5, %v9167_v38, 0.0 }
0x27f0   :  { %9170 = vpow2.f32 %v5938_v24  ;;  %5736 = vadd.xlane.f32.xlu0 %v5735_v16  ;;  %v9208_v16 = vld [vmem:[%s10711_s2 + $0x18] sm:$0xf] }
0x27f6   :  { %v9169_v50 = vpop.eup %9168 }
0x27f7   :  { %v5940_v5 = vsel %vm543_vm5, %v9169_v50, 0.0 }
0x27f8   :  { %5941 = vadd.xlane.f32.xlu0 %v5940_v5 }
0x27fa   :  { %v9171_v20 = vpop.eup %9170 }
0x27fb   :  { %v5943_v9 = vsel %vm547_vm4, %v9171_v20, 0.0 }
0x27fc   :  { %5944 = vadd.xlane.f32.xlu1 %v5943_v9 }
0x280d   :  { %9006 = vrot.lane.b32.xlu1 %v10377_v11, %s10714_s24 }
0x280e   :  { %9001 = vrot.lane.b32.xlu0 %v10377_v11, %s10715_s26 }
0x2811   :  { %9011 = vrot.lane.b32.xlu1 %v10401_v54, %s10716_s3 }
0x2812   :  { %6200 = vrot.lane.b32.xlu0 %v10389_v18, %s10717_s22 }
0x2815   :  { %6198 = vrot.lane.b32.xlu1 %v10391_v46, %s10717_s22 }
0x2816   :  { %6484 = vrot.lane.b32.xlu0 %v10391_v46, %s10718_s29 }
0x2819   :  { %9016 = vrot.lane.b32.xlu1 %v10401_v54, %s10719_s0 }
0x281d   :  { %6486 = vrot.lane.b32.xlu1 %v10389_v18, %s10718_s29 }
0x287c   :  { %v5740_v57 = vpop.xlane.xlu1 %5739 }
0x287d   :  { %v5737_v36 = vpop.xlane.xlu0 %5736 }
0x287e   :  { %9172 = vrcp.f32 %v5737_v36 }
0x287f   :  { %9174 = vrcp.f32 %v5740_v57 }
0x2885   :  { %v5942_v27 = vpop.xlane.xlu0 %5941 }
0x2886   :  { %9176 = vrcp.f32 %v5942_v27 }
0x2888   :  { %v9173_v48 = vpop.eup %9172 }
0x2889   :  { %v5945_v58 = vpop.xlane.xlu1 %5944  ;;  %v9002_v34 = vpop.permute.xlu0 %9001  ;;  %v5742_v35 = vmul.f32 %v9173_v48, %v9167_v38 }
0x288a   :  { %9178 = vrcp.f32 %v5945_v58  ;;  %v9004_v29 = vunpack.i.h.bf16 %v9002_v34  ;;  %v9003_v60 = vunpack.i.l.bf16 %v9002_v34  ;;  %v9175_v54 = vpop.eup %9174 }
0x288b   :  { %8250 = vmatprep.mubr.msk.f32.mxu0 %vm543_vm5, %v5742_v35  ;;  %v5744_v45 = vmul.f32 %v9175_v54, %v9165_v17 }
0x288c   :  { %v8744_v46 = vpack.c.bf16 %v9004_v29, %v9003_v60 }
0x288d   :  { %v9007_v28 = vpop.permute.xlu1 %9006  ;;  %v6201_v30 = vpop.permute.xlu0 %6200 }
0x288e   :  { %v9009_v0 = vunpack.i.h.bf16 %v9007_v28  ;;  %v9008_v18 = vunpack.i.l.bf16 %v9007_v28  ;;  %8746 = vmatprep.subr.msk.bf16.mxu0 %vm9571_vm8, %v8744_v46 }
0x288f   :  { %8749 = vmatpush3.bf16.msk.msra.mxu0 %vm9571_vm8, %v8744_v46 }
0x2890   :  { %v9177_v49 = vpop.eup %9176  ;;  %v8756_v39 = vpack.c.bf16 %v9009_v0, %v9008_v18 }
0x2891   :  { %v9012_v40 = vpop.permute.xlu1 %9011  ;;  %v5947_v32 = vmul.f32 %v9177_v49, %v9169_v50  ;;  %v6485_v62 = vpop.permute.xlu0 %6484 }
0x2892   :  { %8251 = vmatmul.mubr.msk.f32.vlgmr.msra.gmra.mrb[46].mxu0 %vm543_vm5, %v5744_v45  ;;  %8758 = vmatprep.subr.msk.bf16.mxu0 %vm9571_vm8, %v8756_v39  ;;  %v9014_v25 = vunpack.i.h.bf16 %v9012_v40  ;;  %v9013_v42 = vunpack.i.l.bf16 %v9012_v40 }
0x2893   :  { %8761 = vmatpush3.bf16.msk.msra.mxu0 %vm9571_vm8, %v8756_v39  ;;  %8264 = vmatprep.mubr.msk.f32.mxu0 %vm543_vm5, %v5947_v32 }
0x2894   :  { %v9179_v43 = vpop.eup %9178  ;;  %8267 = vmatprep.subr.mxu0 %v7307_v41  ;;  %v8762_v4 = vpack.c.bf16 %v9014_v25, %v9013_v42 }
0x2895   :  { %v5949_v8 = vmul.f32 %v9179_v43, %v9171_v20  ;;  %v6199_v33 = vpop.permute.xlu1 %6198 }
0x2897   :  { %8265 = vmatmul.mubr.msk.f32.vlgmr.msra.gmra.mrb[48].mxu0 %vm543_vm5, %v5949_v8 }
0x2898   :  { %8268 = vmatpush3.msra.mxu0 %v7307_v41 }
0x2899   :  { %8764 = vmatprep.subr.msk.bf16.mxu0 %vm9500_vm3, %v8762_v4  ;;  %v9017_v52 = vpop.permute.xlu1 %9016 }
0x289a   :  { %v9019_v53 = vunpack.i.h.bf16 %v9017_v52  ;;  %v9018_v13 = vunpack.i.l.bf16 %v9017_v52 }
0x289c   :  { %v8774_v47 = vpack.c.bf16 %v9019_v53, %v9018_v13 }
0x289d   :  { %v6487_v12 = vpop.permute.xlu1 %6486 }
0x2965   :  { %v8252_v51 = vpop.f32.mrb[46].mxu0 }
0x2966   :  { %v5824_v37 = vpop.f32.mrb[47].mxu0 }
0x2967   :  { %8274 = vmatprep.mubr.msk.f32.mxu1 %vm453_vm2, %v5824_v37 }
0x2968   :  { %8275 = vmatmul.mubr.msk.f32.vlgmr.msra.gmra.mrb[52].mxu1 %vm453_vm2, %v8252_v51 }
0x296a   :  { %v8266_v21 = vpop.f32.mrb[48].mxu0 }
0x296b   :  { %v6029_v55 = vpop.f32.mrb[49].mxu0 }
0x296c   :  { %8269 = vmatprep.mubr.msk.f32.mxu0 %vm453_vm2, %v6029_v55 }
0x296d   :  { %8270 = vmatmul.mubr.msk.f32.vlgmr.msra.gmra.mrb[50].mxu0 %vm453_vm2, %v8266_v21 }
0x296e   :  { %8767 = vmatpush3.bf16.xpose.msk.msra.mxu0 %vm9500_vm3, %v8762_v4  ;;  %8281 = vmatprep.mubr.msk.f32.mxu0 %vm453_vm2, %v6199_v33 }
0x296f   :  { %8776 = vmatprep.subr.msk.bf16.mxu0 %vm9500_vm3, %v8774_v47 }
0x2975   :  { %8282 = vmatmul.mubr.msk.f32.vlgmr.msra.gmra.mrb[52].mxu0 %vm453_vm2, %v6201_v30  ;;  %v7308_v30 = vld [vmem:[%s10658_s10 + $0x30] sm:$0xff] }
0x2976   :  { %8779 = vmatpush3.bf16.xpose.msk.msra.mxu0 %vm9500_vm3, %v8774_v47  ;;  %8300 = vmatprep.mubr.msk.f32.mxu0 %vm453_vm2, %v6485_v62 }
0x2977   :  { %8787 = vmatprep.subr.bf16.mxu0 %v8786_v61 }
0x297d   :  { %8301 = vmatmul.mubr.msk.f32.vlgmr.msra.gmra.mrb[54].mxu0 %vm453_vm2, %v6487_v12 }
0x297e   :  { %8789 = vmatpush3.bf16.msra.mxu0 %v8786_v61  ;;  %8323 = vmatprep.mubr.msk.f32.mxu0 %vm77_vm0, %v10362_v1 }
0x297f   :  { %8791 = vmatprep.subr.bf16.mxu0 %v8790_v7 }
0x2982   :  { %8793 = vmatpush3.bf16.msra.mxu0 %v8790_v7 }
0x2983   :  { %8826 = vmatprep.subr.bf16.mxu0 %v9247_v10 }
0x2985   :  { %8324 = vmatmul.mubr.msk.f32.vlgmr.msra.gmra.mrb[56].mxu0 %vm77_vm0, %v10366_v3  ;;  %v9209_v3 = vld [vmem:[%s10711_s2 + $0x10] sm:$0xff]  ;;  %s10729_s2 = sld [smem:[#allocation10_spill]] }
0x2986   :  { %8369 = vmatprep.mubr.msk.f32.mxu0 %vm9248_vm9, %v9249_v22 }
0x2a3b   :  { %v8276_v44 = vpop.f32.mrb[52].mxu1 }
0x2a3c   :  { %v6190_v15 = vpop.f32.mrb[53].mxu1 }
0x2a40   :  { %v8271_v14 = vpop.f32.mrb[50].mxu0 }
0x2a41   :  { %v10504_v19 = vadd.f32 %v8276_v44, %v8271_v14  ;;  %v6110_v17 = vpop.f32.mrb[51].mxu0 }
0x2a48   :  { %v8283_v38 = vpop.f32.mrb[52].mxu0 }
0x2a49   :  { %v6290_v24 = vmul.f32 0.35355338, %v8283_v38  ;;  %v6280_v56 = vpop.f32.mrb[53].mxu0 }
0x2a4a   :  { %v6289_v1 = vmul.f32 0.35355338, %v6280_v56 }
0x2a4b   :  { %v6292_v50 = vadd.f32 %v9208_v16, %v6290_v24 }
0x2a4c   :  { %v6291_v22 = vadd.f32 %v9209_v3, %v6289_v1  ;;  %v7309_v1 = vld [vmem:[%s10658_s10 + $0x38] sm:$0xff] }
0x2a4d   :  { %v6296_v5 = vsel %vm547_vm4, %v6292_v50, -inf }
0x2a4e   :  { %6297 = vmax.xlane.f32.xlu1 %v6296_v5  ;;  %v6293_v20 = vsel %vm543_vm5, %v6291_v22, -inf }
0x2a4f   :  { %6294 = vmax.xlane.f32.xlu0 %v6293_v20 }
0x2a50   :  { %v8302_v9 = vpop.f32.mrb[54].mxu0 }
0x2a51   :  { %v6566_v36 = vpop.f32.mrb[55].mxu0  ;;  %v6576_v57 = vmul.f32 0.35355338, %v8302_v9 }
0x2a52   :  { %v6575_v27 = vmul.f32 0.35355338, %v6566_v36 }
0x2a53   :  { %v6578_v58 = vadd.f32 %v9208_v16, %v6576_v57  ;;  %v7354_v16 = vld [vmem:[%s10661_s13 + $0x80] sm:$0xff] }
0x2a54   :  { %v6577_v48 = vadd.f32 %v9209_v3, %v6575_v27  ;;  %v7351_v3 = vld [vmem:[%s10660_s12 + $0x1] ss:$0 sm:$0xff] }
0x2a55   :  { %v6582_v60 = vsel %vm547_vm4, %v6578_v58, -inf }
0x2a56   :  { %v6579_v34 = vsel %vm543_vm5, %v6577_v48, -inf }
0x2a57   :  { %6580 = vmax.xlane.f32.xlu1 %v6579_v34 }
0x2a58   :  { %v10515_v35 = vpop.f32.mrb[56].mxu0 }
0x2a59   :  { %v10517_v29 = vpop.f32.mrb[57].mxu0  ;;  %v6853_v27 = vadd.f32 %v10515_v35, %v7351_v3 }
0x2a5b   :  { %6583 = vmax.xlane.f32.xlu1 %v6582_v60 }
0x2adb   :  { %v6298_v46 = vpop.xlane.xlu1 %6297 }
0x2adc   :  { %v6300_v54 = vsub.f32 %v6292_v50, %v6298_v46  ;;  %v6295_v28 = vpop.xlane.xlu0 %6294  ;;  %v8794_v50 = vpack.c.bf16 %v7355_v63, %v7354_v16 }
0x2add   :  { %v6299_v0 = vsub.f32 %v6291_v22, %v6295_v28  ;;  %v6848_v22 = vadd.f32 %v7351_v3, %v10517_v29  ;;  %v7356_v28 = vld [vmem:[%s10661_s13 + $0x90] sm:$0xff]  ;;  %v7357_v29 = vld [vmem:[%s10661_s13 + $0x98] sm:$0xff]  ;;  %v7002_v3 = vld [vmem:[%s10665_s17] sm:$0xff] }
0x2ade   :  { %v6303_v18 = vmul.f32 1.442695, %v6300_v54  ;;  %v8798_v35 = vpack.c.bf16 %v7357_v29, %v7356_v28 }
0x2adf   :  { %v6301_v49 = vmul.f32 1.442695, %v6299_v0  ;;  %v6858_v5 = vmul.f32 0.044715, %v6848_v22 }
0x2ae0   :  { %9180 = vpow2.f32 %v6303_v18 }
0x2ae1   :  { %9182 = vpow2.f32 %v6301_v49  ;;  %v6860_v20 = vmul.f32 %v6858_v5, %v6848_v22  ;;  %v6856_v49 = vmul.f32 0.5, %v6848_v22 }
0x2ae3   :  { %v6862_v9 = vmul.f32 %v6860_v20, %v6848_v22  ;;  %v7005_v20 = vld [vmem:[%s10665_s17 + $0x18] sm:$0xff] }
0x2ae4   :  { %v6581_v45 = vpop.xlane.xlu1 %6580 }
0x2ae5   :  { %v6585_v39 = vsub.f32 %v6577_v48, %v6581_v45  ;;  %v6864_v36 = vadd.f32 %v6862_v9, %v6848_v22  ;;  %v7003_v22 = vld [vmem:[%s10665_s17 + $0x8] sm:$0xff] }
0x2ae6   :  { %v8827_v5 = vpack.c.bf16 %v7003_v22, %v7002_v3 }
0x2ae7   :  { %v6587_v25 = vmul.f32 1.442695, %v6585_v39  ;;  %v6866_v57 = vmul.f32 0.7978846, %v6864_v36 }
0x2ae8   :  { %v6584_v40 = vpop.xlane.xlu1 %6583  ;;  %8828 = vmatpush3.bf16.msra.mxu0 %v8827_v5 }
0x2ae9   :  { %v6586_v32 = vsub.f32 %v6578_v58, %v6584_v40  ;;  %v6859_v58 = vmul.f32 0.044715, %v6853_v27  ;;  %v7359_v40 = vld [vmem:[%s10661_s13 + $0xa8] sm:$0xff]  ;;  %8829 = vmatprep.subr.bf16.mxu0 %v9247_v10 }
0x2aea   :  { %v9181_v41 = vpop.eup %9180 }
0x2aeb   :  { %v6589_v42 = vmul.f32 1.442695, %v6586_v32  ;;  %v6308_v43 = vsel %vm547_vm4, %v9181_v41, 0.0  ;;  %v9183_v8 = vpop.eup %9182  ;;  %v6861_v0 = vmul.f32 %v6859_v58, %v6853_v27  ;;  %v7372_v58 = vld [vmem:[%s10663_s15] ss:$0 sm:$0xff] }
0x2aec   :  { %6309 = vadd.xlane.f32.xlu0 %v6308_v43  ;;  %v6305_v4 = vsel %vm543_vm5, %v9183_v8, 0.0 }
0x2aed   :  { %9184 = vpow2.f32 %v6589_v42  ;;  %v6863_v32 = vmul.f32 %v6861_v0, %v6853_v27  ;;  %v7361_v42 = vld [vmem:[%s10661_s13 + $0xb8] sm:$0xff] }
0x2aee   :  { %9186 = vpow2.f32 %v6587_v25  ;;  %v7360_v25 = vld [vmem:[%s10661_s13 + $0xb0] sm:$0xff] }
0x2aef   :  { %v6865_v43 = vadd.f32 %v6863_v32, %v6853_v27 }
0x2af0   :  { %6306 = vadd.xlane.f32.xlu0 %v6305_v4  ;;  %v7362_v4 = vld [vmem:[%s10661_s13 + $0xc0] sm:$0xff] }
0x2af7   :  { %v9185_v31 = vpop.eup %9184 }
0x2af8   :  { %v6594_v33 = vsel %vm547_vm4, %v9185_v31, 0.0  ;;  %v9187_v51 = vpop.eup %9186 }
0x2af9   :  { %6595 = vadd.xlane.f32.xlu1 %v6594_v33  ;;  %v6591_v52 = vsel %vm543_vm5, %v9187_v51, 0.0  ;;  %v6867_v33 = vmul.f32 0.7978846, %v6865_v43 }
0x2afd   :  { %6592 = vadd.xlane.f32.xlu1 %v6591_v52  ;;  %v7364_v52 = vld [vmem:[%s10661_s13 + $0xd0] sm:$0xff] }
0x2b06   :  { %9021 = vrot.lane.b32.xlu0 %v10377_v11, %s10726_s1  ;;  %s7093_s1 = sshll.u32 %s9250_s18, 4  ;;  %s7094_s1 = int_to_ptr.vmem [resolvable:$true] %s7093_s1 }
0x2b07   :  { %s9210_s15 = scalar_lea.vmem %s7094_s1, 128  ;;  %p9215_p1 = scmp.lt.s32.totalorder %s7094_s1, %s7094_s1 }
0x2b08   :  { %p9211_p0 = scmp.ne.s32.totalorder %s7094_s1, %s9210_s15  ;;  %p9216_p2 = scmp.lt.s32.totalorder %s9210_s15, %s9210_s15 }
0x2b0a   :  { %p9217_p3 = por %p9216_p2, %p9215_p1 }
0x2b0c   :  { %p9218_p4 = pnand %p9217_p3, %p9211_p0 }
0x2b0e   :  { %9026 = vrot.lane.b32.xlu1 %v10377_v11, %s10727_s5 }
0x2b79   :  { %v6310_v37 = vpop.xlane.xlu0 %6309 }
0x2b7a   :  { %9188 = vrcp.f32 %v6310_v37  ;;  %v7365_v37 = vld [vmem:[%s10661_s13 + $0xd8] sm:$0xff] }
0x2b7d   :  { %v6307_v53 = vpop.xlane.xlu0 %6306 }
0x2b7e   :  { %9190 = vrcp.f32 %v6307_v53  ;;  %v8814_v53 = vpack.c.bf16 %v7365_v37, %v7364_v52 }
0x2b81   :  { %v9022_v13 = vpop.permute.xlu0 %9021 }
0x2b82   :  { %v9024_v21 = vunpack.i.h.bf16 %v9022_v13  ;;  %v9023_v55 = vunpack.i.l.bf16 %v9022_v13  ;;  %v7366_v13 = vld [vmem:[%s10661_s13 + $0xe0] sm:$0xff] }
0x2b84   :  { %v8768_v47 = vpack.c.bf16 %v9024_v21, %v9023_v55  ;;  %v9189_v26 = vpop.eup %9188  ;;  %v7367_v21 = vld [vmem:[%s10661_s13 + $0xe8] sm:$0xff] }
0x2b85   :  { %v6314_v62 = vmul.f32 %v9189_v26, %v9181_v41  ;;  %v8818_v55 = vpack.c.bf16 %v7367_v21, %v7366_v13 }
0x2b86   :  { %v6596_v59 = vpop.xlane.xlu1 %6595  ;;  %8770 = vmatprep.subr.msk.bf16.mxu1 %vm9571_vm8, %v8768_v47 }
0x2b87   :  { %8773 = vmatpush3.bf16.msk.msra.mxu1 %vm9571_vm8, %v8768_v47  ;;  %v7368_v47 = vld [vmem:[%s10661_s13 + $0xf0] sm:$0xff] }
0x2b88   :  { %v9191_v11 = vpop.eup %9190  ;;  %8291 = vmatprep.subr.mxu1 %v7308_v30 }
0x2b89   :  { %v6312_v61 = vmul.f32 %v9191_v11, %v9183_v8  ;;  %v8806_v8 = vpack.c.bf16 %v7361_v42, %v7360_v25 }
0x2b8a   :  { %v6593_v2 = vpop.xlane.xlu1 %6592 }
0x2b8b   :  { %8288 = vmatprep.mubr.msk.f32.mxu1 %vm543_vm5, %v6312_v61  ;;  %9192 = vrcp.f32 %v6593_v2  ;;  %v6857_v61 = vmul.f32 0.5, %v6853_v27 }
0x2b8c   :  { %8289 = vmatmul.mubr.msk.f32.vlgmr.msra.gmra.mrb[54].mxu1 %vm543_vm5, %v6314_v62  ;;  %9194 = vrcp.f32 %v6596_v59 }
0x2b8d   :  { %8292 = vmatpush3.msra.mxu1 %v7308_v30  ;;  %9196 = vtanh.f32 %v6866_v57  ;;  %v7369_v30 = vld [vmem:[%s10661_s13 + $0xf8] sm:$0xff] }
0x2b8e   :  { %v9027_v6 = vpop.permute.xlu1 %9026  ;;  %9198 = vtanh.f32 %v6867_v33  ;;  %v8822_v59 = vpack.c.bf16 %v7369_v30, %v7368_v47 }
0x2b8f   :  { %v9029_v7 = vunpack.i.h.bf16 %v9027_v6  ;;  %v9028_v12 = vunpack.i.l.bf16 %v9027_v6 }
0x2b91   :  { %v8780_v44 = vpack.c.bf16 %v9029_v7, %v9028_v12  ;;  %v7371_v12 = vld [vmem:[%s10662_s14 + $0x1] ss:$0 sm:$0xff] }
0x2b93   :  { %8782 = vmatprep.subr.msk.bf16.mxu1 %vm9571_vm8, %v8780_v44 }
0x2b95   :  { %v9193_v15 = vpop.eup %9192 }
0x2b96   :  { %v9195_v38 = vpop.eup %9194  ;;  %v6598_v24 = vmul.f32 %v9193_v15, %v9187_v51 }
0x2b97   :  { %v6600_v56 = vmul.f32 %v9195_v38, %v9185_v31  ;;  %v9197_v48 = vpop.eup %9196  ;;  %v7363_v31 = vld [vmem:[%s10661_s13 + $0xc8] sm:$0xff] }
0x2b98   :  { %v6870_v54 = vadd.f32 1.0, %v9197_v48  ;;  %v8810_v51 = vpack.c.bf16 %v7363_v31, %v7362_v4  ;;  %v9199_v26 = vpop.eup %9198 }
0x2b99   :  { %v6871_v11 = vadd.f32 1.0, %v9199_v26 }
0x2b9a   :  { %v6872_v39 = vmul.f32 %v6870_v54, %v6856_v49  ;;  %v7374_v54 = vld [vmem:[%s10729_s2] ss:$0 sm:$0xff] }
0x2b9b   :  { %v6873_v62 = vmul.f32 %v6871_v11, %v6857_v61 }
0x2c5f   :  { %v8290_v14 = vpop.f32.mrb[54].mxu1 }
0x2c60   :  { %v6394_v17 = vpop.f32.mrb[55].mxu1 }
0x2c61   :  { %8293 = vmatprep.mubr.msk.f32.mxu1 %vm453_vm2, %v6394_v17 }
0x2c62   :  { %8294 = vmatmul.mubr.msk.f32.vlgmr.msra.gmra.mrb[56].mxu1 %vm453_vm2, %v8290_v14 }
0x2c63   :  { %8785 = vmatpush3.bf16.msk.msra.mxu1 %vm9571_vm8, %v8780_v44  ;;  %8307 = vmatprep.mubr.msk.f32.mxu1 %vm543_vm5, %v6598_v24 }
0x2c64   :  { %8310 = vmatprep.subr.mxu1 %v7309_v1 }
0x2c66   :  { %8308 = vmatmul.mubr.msk.f32.vlgmr.msra.gmra.mrb[58].mxu1 %vm543_vm5, %v6600_v56 }
0x2c67   :  { %8311 = vmatpush3.msra.mxu1 %v7309_v1 }
0x2c68   :  { %8795 = vmatprep.subr.bf16.mxu1 %v8794_v50 }
0x2d35   :  { %v8295_v34 = vpop.f32.mrb[56].mxu1 }
0x2d36   :  { %v6483_v60 = vadd.f32 %v8295_v34, %v10504_v19  ;;  %v6475_v46 = vpop.f32.mrb[57].mxu1  ;;  %v7358_v19 = vld [vmem:[%s10661_s13 + $0xa0] sm:$0xff] }
0x2d37   :  { %v8802_v41 = vpack.c.bf16 %v7359_v40, %v7358_v19  ;;  %v7373_v34 = vld [vmem:[%s10728_s23] ss:$0 sm:$0xff] }
0x2d39   :  { %v8309_v18 = vpop.f32.mrb[58].mxu1 }
0x2d3a   :  { %v6680_v45 = vpop.f32.mrb[59].mxu1 }
0x2d3b   :  { %8312 = vmatprep.mubr.msk.f32.mxu1 %vm453_vm2, %v6680_v45 }
0x2d3c   :  { %8313 = vmatmul.mubr.msk.f32.vlgmr.msra.gmra.mrb[60].mxu1 %vm453_vm2, %v8309_v18 }
0x2d3d   :  { %8797 = vmatpush3.bf16.msra.mxu1 %v8794_v50  ;;  %8358 = vmatprep.mubr.f32.mxu1 %v6872_v39 }
0x2d3e   :  { %8799 = vmatprep.subr.bf16.mxu1 %v8798_v35 }
0x2d41   :  { %8801 = vmatpush3.bf16.msra.mxu1 %v8798_v35 }
0x2d42   :  { %8803 = vmatprep.subr.bf16.mxu1 %v8802_v41 }
0x2d45   :  { %8805 = vmatpush3.bf16.msra.mxu1 %v8802_v41 }
0x2d46   :  { %8807 = vmatprep.subr.bf16.mxu1 %v8806_v8 }
0x2d49   :  { %8809 = vmatpush3.bf16.msra.mxu1 %v8806_v8 }
0x2d4a   :  { %8811 = vmatprep.subr.bf16.mxu1 %v8810_v51 }
0x2d4d   :  { %8813 = vmatpush3.bf16.msra.mxu1 %v8810_v51 }
0x2d4e   :  { %8815 = vmatprep.subr.bf16.mxu1 %v8814_v53 }
0x2d51   :  { %8817 = vmatpush3.bf16.msra.mxu1 %v8814_v53 }
0x2d52   :  { %8819 = vmatprep.subr.bf16.mxu1 %v8818_v55 }
0x2d55   :  { %8821 = vmatpush3.bf16.msra.mxu1 %v8818_v55 }
0x2d56   :  { %8823 = vmatprep.subr.bf16.mxu1 %v8822_v59 }
0x2d59   :  { %8825 = vmatpush3.bf16.msra.mxu1 %v8822_v59 }
0x2d5c   :  { %8359 = vmatmul.mubr.f32.vlgmr.msra.gmra.mrb[62].mxu1 %v6873_v62 }
0x2e0f   :  { %v8314_v2 = vpop.f32.mrb[60].mxu1 }
0x2e10   :  { %v6769_v6 = vadd.f32 %v8314_v2, %v6483_v60  ;;  %v6761_v7 = vpop.f32.mrb[61].mxu1 }
0x2e2f   :  { %v8360_v44 = vpop.f32.mrb[62].mxu1 }
0x2e30   :  { %v6968_v15 = vadd.f32 %v8360_v44, %v7371_v12  ;;  %v6963_v14 = vpop.f32.mrb[63].mxu1 }
0x2e32   :  { %v6971_v17 = vadd.f32 %v6968_v15, %v6769_v6 }
0x2e34   :  { %v6972_v38 = vadd.f32 %v6971_v17, %v10334_v23  ;;  %v7004_v23 = vld [vmem:[%s10665_s17 + $0x10] sm:$0xff] }
0x2e35   :  { %v8830_v9 = vpack.c.bf16 %v7005_v20, %v7004_v23 }
0x2e36   :  { %v6975_v24 = vsel %vm81_vm1, %v6972_v38, 0.0 }
0x2e37   :  { %6976 = vadd.xlane.f32.xlu0 %v6975_v24  ;;  %8831 = vmatpush3.bf16.msra.mxu0 %v8830_v9 }
0x2ec4   :  { %v6977_v56 = vpop.xlane.xlu0 %6976 }
0x2ec5   :  { %v6978_v1 = vmul.f32 0.03125, %v6977_v56 }
0x2ec7   :  { %v6979_v16 = vsub.f32 %v6972_v38, %v6978_v1 }
0x2ec9   :  { %v6980_v63 = vmul.f32 %v6979_v16, %v6979_v16 }
0x2ecb   :  { %v6981_v50 = vsel %vm81_vm1, %v6980_v63, 0.0 }
0x2ecc   :  { %6982 = vadd.xlane.f32.xlu1 %v6981_v50 }
0x2f59   :  { %v6983_v36 = vpop.xlane.xlu1 %6982 }
0x2f5a   :  { %v6984_v57 = vmul.f32 0.03125, %v6983_v36 }
0x2f5c   :  { %v6985_v27 = vadd.f32 1e-05, %v6984_v57 }
0x2f5e   :  { %9200 = vrsqrt.f32 %v6985_v27 }
0x2f68   :  { %v9201_v48 = vpop.eup %9200 }
0x2f69   :  { %v6987_v10 = vmul.f32 %v9201_v48, %v6979_v16 }
0x2f6b   :  { %v6994_v60 = vmul.f32 %v7372_v58, %v6987_v10 }
0x2f6d   :  { %v7001_v46 = vadd.f32 %v7373_v34, %v6994_v60 }
0x2f6f   :  { %8370 = vmatmul.mubr.msk.f32.vlgmr.msra.gmra.mrb[58].mxu0 %vm77_vm0, %v7001_v46 }
0x3042   :  { %v7082_v28 = vpop.f32.mrb[58].mxu0 }
0x3043   :  { %v7083_v29 = vadd.f32 %v7374_v54, %v7082_v28  ;;  %v8371_v0 = vpop.f32.mrb[59].mxu0 }
0x3045   :  { %7087 = vst.msk [vmem:[#allocation2 + $0x4] sm:$0xf] %vm3588_vm10, %v7083_v29 }
0x3046   :  { %9221 = shalt.err (!%p9218_p4)
}
0x3047   :  { %s10730_s30 = sld [smem:[#allocation11_spill]] }
0x304d   :  { %s9222_s9 = scalar_lea.hbm %s10730_s30, 128 }
0x304e   :  { %p9223_p5 = scmp.ne.s32.totalorder %s10730_s30, %s9222_s9  ;;  %p9226_p6 = scmp.lt.u32.totalorder %s9222_s9, %s10730_s30 }
0x3050   :  { %p9228_p7 = pnand %p9226_p6, %p9223_p5 }
0x3052   :  { %9231 = shalt.err (!%p9228_p7)
}
0x3053   :  { %s9251_s24 = smov 4  }
0x3054   :  { %7099 = dma.vmem_to_hbm [thread:$0]  %s7094_s1, 128, %s10730_s30, [#allocation3], %s10715_s26, %s10715_s26, %s9251_s24  }
0x3055   :  { %9232 = dma.done.wait [#allocation3], 128  }
0x3056   :  { %9233 = vsyncadd [#allocation3], 4294967168 }
0x3057   :  { %7103 = vsyncpa [#allocation3], 1 }

</bundles_post_ra>
